<compile_context>
chip_gen: v6e
topology: v6e:2x2x1
jax: 0.10.0
libtpu: 0.0.40
codegen_flags: <defaults>
</compile_context>

<pallas_src>
import functools

import jax
import jax.numpy as jnp
from jax import lax
from jax.experimental import pallas as pl
from jax.experimental.pallas import tpu as pltpu


# --------------------------------------------------------------------------
# Fused k-hop smoothing:  e = adj_norm^n_hops @ features  (adj stays in VMEM)
# --------------------------------------------------------------------------

def _hop_smooth_kernel(adj_ref, x_ref, o_ref, *, n_hops):
    adj = adj_ref[...].astype(jnp.bfloat16)            # resident across hops

    def hop(_, e):
        return jnp.dot(adj, e.astype(jnp.bfloat16),
                       preferred_element_type=jnp.float32)

    e = lax.fori_loop(0, n_hops, hop, x_ref[...], unroll=True)
    o_ref[...] = e.astype(o_ref.dtype)


def pallas_hop_smooth(adj_norm, x, n_hops):
    N, F = x.shape
    # TODO(synk): tile over row-blocks of adj_norm once N*N f32 no longer fits
    #             VMEM (esp. v7x's 64 MiB) and set vmem_limit_bytes explicitly.
    return pl.pallas_call(
        functools.partial(_hop_smooth_kernel, n_hops=n_hops),
        out_shape=jax.ShapeDtypeStruct((N, F), jnp.float32),
        grid=(1,),
        in_specs=[pl.BlockSpec((N, N), lambda i: (0, 0)),
                  pl.BlockSpec((N, F), lambda i: (0, 0))],
        out_specs=pl.BlockSpec((N, F), lambda i: (0, 0)),
        compiler_params=pltpu.CompilerParams(
            dimension_semantics=("arbitrary",)),
    )(adj_norm, x)


# --------------------------------------------------------------------------
# Tiled linear (+ bias, optional ReLU) with f32 accumulator
# --------------------------------------------------------------------------

def _linear_kernel(x_ref, w_ref, b_ref, o_ref, acc_ref, *, act):
    @pl.when(pl.program_id(2) == 0)
    def _():
        acc_ref[...] = jnp.zeros_like(acc_ref)

    acc_ref[...] += jnp.dot(x_ref[...].astype(jnp.bfloat16),
                            w_ref[...].astype(jnp.bfloat16),
                            preferred_element_type=jnp.float32)

    @pl.when(pl.program_id(2) == pl.num_programs(2) - 1)
    def _():
        y = acc_ref[...] + b_ref[...]
        if act:                                    # module's `activation` (ReLU)
            y = jnp.maximum(y, 0.0)
        o_ref[...] = y.astype(o_ref.dtype)


def pallas_linear(x, w, b, act=False, tm=256, tn=256, tk=256):
    M, K = x.shape
    K2, N = w.shape
    assert K == K2
    tm, tn, tk = min(tm, M), min(tn, N), min(tk, K)
    assert M % tm == 0 and N % tn == 0 and K % tk == 0, "demo dims must tile"
    return pl.pallas_call(
        functools.partial(_linear_kernel, act=act),
        out_shape=jax.ShapeDtypeStruct((M, N), jnp.float32),
        grid=(M // tm, N // tn, K // tk),
        in_specs=[pl.BlockSpec((tm, tk), lambda i, j, k: (i, k)),
                  pl.BlockSpec((tk, tn), lambda i, j, k: (k, j)),
                  pl.BlockSpec((1, tn), lambda i, j, k: (0, j))],
        out_specs=pl.BlockSpec((tm, tn), lambda i, j, k: (i, j)),
        scratch_shapes=[pltpu.VMEM((tm, tn), jnp.float32)],
        compiler_params=pltpu.CompilerParams(
            dimension_semantics=("parallel", "parallel", "arbitrary")),
    )(x, w, b.reshape(1, N))


# --------------------------------------------------------------------------
# Fused deformable block: phi-linear -> K-kernel attention -> output linear
# --------------------------------------------------------------------------

def _deform_block_kernel(e_ref, w_phi_ref, b_phi_ref, delta_ref, adj_ref,
                         h_ref, w_out_ref, b_out_ref,
                         h_out_ref, ent_ref,
                         phi_sc, gram_sc, pj2_sc, acc_sc,
                         *, act, n_kernels, n_nodes):
    k = pl.program_id(0)

    # ---- k-invariant work hoisted out of the K loop (runs once, at k == 0) ----
    @pl.when(k == 0)
    def _():
        phi = jnp.dot(e_ref[...].astype(jnp.bfloat16),
                      w_phi_ref[...].astype(jnp.bfloat16),
                      preferred_element_type=jnp.float32) + b_phi_ref[...]
        phi_sc[...] = phi
        phib = phi.astype(jnp.bfloat16)
        # Gram matrix G[i, j] = phi_i . phi_j  (shared by all K kernels)
        gram_sc[...] = lax.dot_general(phib, phib, (((1,), (1,)), ((), ())),
                                       preferred_element_type=jnp.float32)
        # ||phi_j||^2 laid out along lanes (row vector over neighbor index j)
        pj2_sc[...] = jnp.sum(phi * phi, axis=1)[None, :]
        acc_sc[...] = jnp.zeros_like(acc_sc)
        ent_ref[...] = jnp.zeros_like(ent_ref)

    phi = phi_sc[...]                       # (N, P)
    adj = adj_ref[...]                      # (N, N), 1.0 on edges (incl. self)
    delta = delta_ref[0]                    # (1, P) this kernel's learned offset

    # scores[i, j] = -||phi_j - (phi_i + delta_k)||^2 ; the per-row constant
    # ||phi_i + delta_k||^2 drops (row softmax is shift-invariant), so only the
    # cheap (1, N) offset term depends on k:
    #   scores ~ 2*G[i,j] + 2*(delta_k . phi_j) - ||phi_j||^2
    dphi = jnp.sum(phi * delta, axis=1)[None, :]                 # (1, N)
    scores = 2.0 * gram_sc[...] + (2.0 * dphi - pj2_sc[...])
    scores = jnp.where(adj > 0.0, scores, jnp.float32(-1e30))    # finite, f32

    # masked row softmax over neighbors j (kept in f32: v5e has no bf16 VPU/EUP)
    m = jnp.max(scores, axis=1, keepdims=True)
    ez = jnp.where(adj > 0.0, jnp.exp(scores - m), 0.0)
    denom = jnp.sum(ez, axis=1, keepdims=True) + 1e-12           # isolated rows
    attn = ez * pl.reciprocal(denom, approx=True)                # EUP slot

    # aggregate neighbor features; stream this kernel's slice of the output
    # linear:  agg_cat @ W_out == sum_k agg_k @ W_out[k]
    agg = jnp.dot(attn.astype(jnp.bfloat16), h_ref[...].astype(jnp.bfloat16),
                  preferred_element_type=jnp.float32)            # (N, H)
    acc_sc[...] += jnp.dot(agg.astype(jnp.bfloat16),
                           w_out_ref[0].astype(jnp.bfloat16),
                           preferred_element_type=jnp.float32)

    # focus (entropy) surrogate reduced to one scalar inside the kernel
    ent_ref[...] = ent_ref[...] + (-jnp.sum(attn * jnp.log(attn + 1e-12)))

    @pl.when(k == n_kernels - 1)
    def _():
        y = acc_sc[...] + b_out_ref[...]
        if act:
            y = jnp.maximum(y, 0.0)
        h_out_ref[...] = y.astype(h_out_ref.dtype)
        ent_ref[...] = ent_ref[...] * (1.0 / (n_kernels * n_nodes))


def pallas_deform_block(e, w_phi, b_phi, delta, adj_mask, h, w_out, b_out, act):
    N, in_dim = e.shape
    H = h.shape[1]
    K, P = delta.shape
    out_dim = w_out.shape[1]
    delta3 = delta.reshape(K, 1, P)
    w_out3 = w_out.reshape(K, H, out_dim)

    h_new, ent = pl.pallas_call(
        functools.partial(_deform_block_kernel, act=act,
                          n_kernels=K, n_nodes=N),
        out_shape=(jax.ShapeDtypeStruct((N, out_dim), jnp.float32),
                   jax.ShapeDtypeStruct((1, 1), jnp.float32)),
        grid=(K,),
        in_specs=[pl.BlockSpec((N, in_dim), lambda k: (0, 0)),       # e
                  pl.BlockSpec((in_dim, P), lambda k: (0, 0)),       # w_phi
                  pl.BlockSpec((1, P), lambda k: (0, 0)),            # b_phi
                  pl.BlockSpec((1, 1, P), lambda k: (k, 0, 0)),      # delta_k
                  pl.BlockSpec((N, N), lambda k: (0, 0)),            # adj mask
                  pl.BlockSpec((N, H), lambda k: (0, 0)),            # h
                  pl.BlockSpec((1, H, out_dim), lambda k: (k, 0, 0)),# w_out_k
                  pl.BlockSpec((1, out_dim), lambda k: (0, 0))],     # b_out
        out_specs=(pl.BlockSpec((N, out_dim), lambda k: (0, 0)),
                   pl.BlockSpec((1, 1), lambda k: (0, 0))),
        scratch_shapes=[pltpu.VMEM((N, P), jnp.float32),      # phi
                        pltpu.VMEM((N, N), jnp.float32),      # Gram phi@phi.T
                        pltpu.VMEM((1, N), jnp.float32),      # ||phi_j||^2
                        pltpu.VMEM((N, out_dim), jnp.float32)],  # out acc
        # The K axis carries the fused output-linear accumulator and the
        # entropy sum, so it must stay sequential.  To split across v7x's two
        # TensorCores, un-fuse the output linear and mark K "parallel".
        compiler_params=pltpu.CompilerParams(
            dimension_semantics=("arbitrary",)),
    )(e, w_phi, b_phi.reshape(1, P), delta3, adj_mask, h, w_out3,
      b_out.reshape(1, out_dim))
    return h_new, ent[0, 0]


# --------------------------------------------------------------------------
# Row-wise log-softmax
# --------------------------------------------------------------------------

def _log_softmax_kernel(x_ref, o_ref):
    x = x_ref[...]
    m = jnp.max(x, axis=1, keepdims=True)
    z = x - m
    lse = jnp.log(jnp.sum(jnp.exp(z), axis=1, keepdims=True))
    o_ref[...] = (z - lse).astype(o_ref.dtype)


def pallas_log_softmax(x):
    M, N = x.shape
    return pl.pallas_call(
        _log_softmax_kernel,
        out_shape=jax.ShapeDtypeStruct((M, N), jnp.float32),
        grid=(1,),
        in_specs=[pl.BlockSpec((M, N), lambda i: (0, 0))],
        out_specs=pl.BlockSpec((M, N), lambda i: (0, 0)),
        compiler_params=pltpu.CompilerParams(
            dimension_semantics=("arbitrary",)),
    )(x)


# --------------------------------------------------------------------------
# Parameter init (deterministic, xavier-normal with gain=1.414 like the module)
# --------------------------------------------------------------------------

def _xavier(key, shape, gain=1.414):
    fan_in, fan_out = shape
    std = gain * (2.0 / (fan_in + fan_out)) ** 0.5
    return std * jax.random.normal(key, shape, dtype=jnp.float32)


def init_params(key, in_dim, hidden_dim, n_classes, n_blocks, n_kernels, phi_dim):
    keys = jax.random.split(key, 2 + 4 * n_blocks)
    params = {
        "w_feat": _xavier(keys[0], (in_dim, hidden_dim)),
        "b_feat": jnp.zeros((hidden_dim,), jnp.float32),
        "blocks": [],
    }
    for i in range(n_blocks):
        out_dim = hidden_dim if i < n_blocks - 1 else n_classes
        k0, k1, k2, k3 = keys[2 + 4 * i: 6 + 4 * i]
        params["blocks"].append({
            "w_phi": _xavier(k0, (in_dim, phi_dim)),
            "b_phi": jnp.zeros((phi_dim,), jnp.float32),
            "delta": 0.1 * jax.random.normal(k1, (n_kernels, phi_dim),
                                             dtype=jnp.float32),
            "w_out": _xavier(k2, (n_kernels * hidden_dim, out_dim)),
            "b_out": jnp.zeros((out_dim,), jnp.float32),
        })
    return params


# --------------------------------------------------------------------------
# Forward pass (mirrors DeformableGCN.forward)
# --------------------------------------------------------------------------

def deformable_gcn_forward(params, features, adj_norm, adj_mask,
                           n_hops, n_blocks):
    # k-hop smoothed reference features for the positional embedding phi
    e = pallas_hop_smooth(adj_norm, features, n_hops)

    # h = activation(feat_lin(features))
    h = pallas_linear(features, params["w_feat"], params["b_feat"], act=True)

    l_sep_sum = jnp.float32(0.0)
    l_focus_sum = jnp.float32(0.0)
    for i, bp in enumerate(params["blocks"]):
        is_last = i == n_blocks - 1
        # dropout (feat_drop) is identity at inference time
        h, l_focus = pallas_deform_block(
            e, bp["w_phi"], bp["b_phi"], bp["delta"], adj_mask, h,
            bp["w_out"], bp["b_out"], act=not is_last)

        # surrogate separation loss over tiny (K, P) offsets: plain JAX
        d = bp["delta"]
        dn = d / (jnp.linalg.norm(d, axis=1, keepdims=True) + 1e-12)
        sim = dn @ dn.T
        Kn = d.shape[0]
        l_sep = jnp.sum((sim - jnp.eye(Kn)) ** 2) / max(Kn * (Kn - 1), 1)

        l_sep_sum = l_sep_sum + l_sep / n_blocks
        l_focus_sum = l_focus_sum + l_focus / n_blocks

    return pallas_log_softmax(h), l_sep_sum, l_focus_sum


# --------------------------------------------------------------------------
# Example run
# --------------------------------------------------------------------------

def build_ring_graph(n_nodes):
    """Deterministic small graph: ring with +/-1, +/-2 neighbors + self loops."""
    idx = jnp.arange(n_nodes)
    adj = jnp.zeros((n_nodes, n_nodes), jnp.float32)
    for off in (-2, -1, 0, 1, 2):
        adj = adj.at[idx, (idx + off) % n_nodes].set(1.0)
    deg = jnp.sum(adj, axis=1, keepdims=True)
    adj_norm = adj / deg          # row-normalized A_hat for hop smoothing
    adj_mask = (adj > 0).astype(jnp.float32)
    return adj_norm, adj_mask


if __name__ == "__main__":
    # lane-friendly small demo dims (node count / hidden multiples of 128)
    N_NODES = 128
    IN_DIM = 64
    HIDDEN_DIM = 128
    N_CLASSES = 8
    N_BLOCKS = 2
    N_KERNELS = 4
    PHI_DIM = 16
    N_HOPS = 2
    # n_neighbor: full graph neighborhood used instead of top-k (see TODO)

    key = jax.random.PRNGKey(0)
    k_feat, k_params = jax.random.split(key)
    features = jax.random.normal(k_feat, (N_NODES, IN_DIM), dtype=jnp.float32)
    params = init_params(k_params, IN_DIM, HIDDEN_DIM, N_CLASSES,
                         N_BLOCKS, N_KERNELS, PHI_DIM)
    adj_norm, adj_mask = build_ring_graph(N_NODES)

    fwd = jax.jit(functools.partial(deformable_gcn_forward,
                                    n_hops=N_HOPS, n_blocks=N_BLOCKS))
    log_probs, l_sep, l_focus = fwd(params, features, adj_norm, adj_mask)

    jax.block_until_ready((log_probs, l_sep, l_focus))
    assert log_probs.shape == (N_NODES, N_CLASSES)
    assert bool(jnp.all(jnp.isfinite(log_probs)))
    assert bool(jnp.isfinite(l_sep)) and bool(jnp.isfinite(l_focus))
    print("KERNEL_OK")
</pallas_src>

<mosaic_0001>
module attributes {stable_mosaic.version = 11 : i64} {
  func.func @_hop_smooth_kernel(%arg0: i32, %arg1: memref<128x128xf32, #tpu.memory_space<vmem>>, %arg2: memref<128x64xf32, #tpu.memory_space<vmem>>, %arg3: memref<128x64xf32, #tpu.memory_space<vmem>>) attributes {dimension_semantics = [#tpu.dimension_semantics<arbitrary>], iteration_bounds = array<i64: 1>, scalar_prefetch = 0 : i64, scratch_operands = 0 : i64, tpu.core_type = #tpu.core_type<tc>, window_params = [{pipeline_mode = #tpu.pipeline_mode<synchronous>, transform_indices = @transform_0, window_bounds = array<i64: 128, 128>}, {pipeline_mode = #tpu.pipeline_mode<synchronous>, transform_indices = @transform_1, window_bounds = array<i64: 128, 64>}, {pipeline_mode = #tpu.pipeline_mode<synchronous>, transform_indices = @transform_2, window_bounds = array<i64: 128, 64>}]} {
    %c0 = arith.constant 0 : index
    %c0_0 = arith.constant 0 : index
    %0 = vector.load %arg1[%c0, %c0_0] : memref<128x128xf32, #tpu.memory_space<vmem>>, vector<128x128xf32>
    %1 = arith.truncf %0 : vector<128x128xf32> to vector<128x128xbf16>
    %c0_1 = arith.constant 0 : index
    %c0_2 = arith.constant 0 : index
    %2 = vector.load %arg2[%c0_1, %c0_2] : memref<128x64xf32, #tpu.memory_space<vmem>>, vector<128x64xf32>
    %c0_i32 = arith.constant 0 : i32
    %3 = arith.truncf %2 : vector<128x64xf32> to vector<128x64xbf16>
    %cst = arith.constant dense<0.000000e+00> : vector<128x64xf32>
    %4 = tpu.matmul %1, %3, %cst {dimension_numbers = #tpu.dot_dimension_numbers<[1], [0], [0], [1], [0, 0, 1, 1], [], []>} : vector<128x128xbf16>, vector<128x64xbf16>, vector<128x64xf32> -> vector<128x64xf32>
    %c1_i32 = arith.constant 1 : i32
    %5 = arith.truncf %4 : vector<128x64xf32> to vector<128x64xbf16>
    %cst_3 = arith.constant dense<0.000000e+00> : vector<128x64xf32>
    %6 = tpu.matmul %1, %5, %cst_3 {dimension_numbers = #tpu.dot_dimension_numbers<[1], [0], [0], [1], [0, 0, 1, 1], [], []>} : vector<128x128xbf16>, vector<128x64xbf16>, vector<128x64xf32> -> vector<128x64xf32>
    %c0_4 = arith.constant 0 : index
    %c0_5 = arith.constant 0 : index
    %7 = vector.load %arg3[%c0_4, %c0_5] : memref<128x64xf32, #tpu.memory_space<vmem>>, vector<128x64xf32>
    tpu.vector_store %arg3[%c0_4, %c0_5], %6 {strides = array<i32>} : memref<128x64xf32, #tpu.memory_space<vmem>>, vector<128x64xf32>,
    return
  }
  func.func @transform_0(%arg0: i32) -> (i32, i32) {
    %c0_i32 = arith.constant 0 : i32
    %c0_i32_0 = arith.constant 0 : i32
    %c0_i32_1 = arith.constant 0 : i32
    return %c0_i32, %c0_i32_0 : i32, i32
  }
  func.func @transform_1(%arg0: i32) -> (i32, i32) {
    %c0_i32 = arith.constant 0 : i32
    %c0_i32_0 = arith.constant 0 : i32
    %c0_i32_1 = arith.constant 0 : i32
    return %c0_i32, %c0_i32_0 : i32, i32
  }
  func.func @transform_2(%arg0: i32) -> (i32, i32) {
    %c0_i32 = arith.constant 0 : i32
    %c0_i32_0 = arith.constant 0 : i32
    %c0_i32_1 = arith.constant 0 : i32
    return %c0_i32, %c0_i32_0 : i32, i32
  }
}

module attributes {stable_mosaic.version = 11 : i64} {
  func.func @_linear_kernel(%arg0: i32, %arg1: i32, %arg2: i32, %arg3: memref<128x64xf32, #tpu.memory_space<vmem>>, %arg4: memref<64x128xf32, #tpu.memory_space<vmem>>, %arg5: memref<1x128xf32, #tpu.memory_space<vmem>>, %arg6: memref<128x128xf32, #tpu.memory_space<vmem>>, %arg7: memref<128x128xf32, #tpu.memory_space<vmem>>) attributes {dimension_semantics = [#tpu.dimension_semantics<parallel>, #tpu.dimension_semantics<parallel>, #tpu.dimension_semantics<arbitrary>], iteration_bounds = array<i64: 1, 1, 1>, scalar_prefetch = 0 : i64, scratch_operands = 1 : i64, tpu.core_type = #tpu.core_type<tc>, window_params = [{transform_indices = @transform_0, window_bounds = array<i64: 128, 64>}, {transform_indices = @transform_1, window_bounds = array<i64: 64, 128>}, {transform_indices = @transform_2, window_bounds = array<i64: 1, 128>}, {transform_indices = @transform_3, window_bounds = array<i64: 128, 128>}]} {
    %c0_i32 = arith.constant 0 : i32
    %0 = arith.cmpi eq, %arg2, %c0_i32 : i32
    %1 = arith.extui %0 : i1 to i32
    %c0_i32_0 = arith.constant 0 : i32
    %2 = arith.cmpi ne, %1, %c0_i32_0 : i32
    scf.if %2 {
      %cst_10 = arith.constant 0.000000e+00 : f32
      %14 = vector.broadcast %cst_10 : f32 to vector<128x128xf32>
      %c0_11 = arith.constant 0 : index
      %c0_12 = arith.constant 0 : index
      %15 = vector.load %arg7[%c0_11, %c0_12] : memref<128x128xf32, #tpu.memory_space<vmem>>, vector<128x128xf32>
      tpu.vector_store %arg7[%c0_11, %c0_12], %14 {strides = array<i32>} : memref<128x128xf32, #tpu.memory_space<vmem>>, vector<128x128xf32>,
    } else {
    }
    %c0 = arith.constant 0 : index
    %c0_1 = arith.constant 0 : index
    %3 = vector.load %arg7[%c0, %c0_1] : memref<128x128xf32, #tpu.memory_space<vmem>>, vector<128x128xf32>
    %c0_2 = arith.constant 0 : index
    %c0_3 = arith.constant 0 : index
    %4 = vector.load %arg3[%c0_2, %c0_3] : memref<128x64xf32, #tpu.memory_space<vmem>>, vector<128x64xf32>
    %5 = arith.truncf %4 : vector<128x64xf32> to vector<128x64xbf16>
    %c0_4 = arith.constant 0 : index
    %c0_5 = arith.constant 0 : index
    %6 = vector.load %arg4[%c0_4, %c0_5] : memref<64x128xf32, #tpu.memory_space<vmem>>, vector<64x128xf32>
    %7 = arith.truncf %6 : vector<64x128xf32> to vector<64x128xbf16>
    %cst = arith.constant dense<0.000000e+00> : vector<128x128xf32>
    %8 = tpu.matmul %5, %7, %cst {dimension_numbers = #tpu.dot_dimension_numbers<[1], [0], [0], [1], [0, 0, 1, 1], [], []>} : vector<128x64xbf16>, vector<64x128xbf16>, vector<128x128xf32> -> vector<128x128xf32>
    %9 = arith.addf %3, %8 : vector<128x128xf32>
    %c0_6 = arith.constant 0 : index
    %c0_7 = arith.constant 0 : index
    %10 = vector.load %arg7[%c0_6, %c0_7] : memref<128x128xf32, #tpu.memory_space<vmem>>, vector<128x128xf32>
    tpu.vector_store %arg7[%c0_6, %c0_7], %9 {strides = array<i32>} : memref<128x128xf32, #tpu.memory_space<vmem>>, vector<128x128xf32>,
    %c0_i32_8 = arith.constant 0 : i32
    %11 = arith.cmpi eq, %arg2, %c0_i32_8 : i32
    %12 = arith.extui %11 : i1 to i32
    %c0_i32_9 = arith.constant 0 : i32
    %13 = arith.cmpi ne, %12, %c0_i32_9 : i32
    scf.if %13 {
      %c0_10 = arith.constant 0 : index
      %c0_11 = arith.constant 0 : index
      %14 = vector.load %arg7[%c0_10, %c0_11] : memref<128x128xf32, #tpu.memory_space<vmem>>, vector<128x128xf32>
      %c0_12 = arith.constant 0 : index
      %c0_13 = arith.constant 0 : index
      %15 = vector.load %arg5[%c0_12, %c0_13] : memref<1x128xf32, #tpu.memory_space<vmem>>, vector<1x128xf32>
      %16 = vector.broadcast %15 : vector<1x128xf32> to vector<128x128xf32>
      %17 = arith.addf %14, %16 : vector<128x128xf32>
      %cst_14 = arith.constant 0.000000e+00 : f32
      %18 = vector.broadcast %cst_14 : f32 to vector<128x128xf32>
      %19 = arith.maximumf %17, %18 : vector<128x128xf32>
      %c0_15 = arith.constant 0 : index
      %c0_16 = arith.constant 0 : index
      %20 = vector.load %arg6[%c0_15, %c0_16] : memref<128x128xf32, #tpu.memory_space<vmem>>, vector<128x128xf32>
      tpu.vector_store %arg6[%c0_15, %c0_16], %19 {strides = array<i32>} : memref<128x128xf32, #tpu.memory_space<vmem>>, vector<128x128xf32>,
    } else {
    }
    return
  }
  func.func @transform_0(%arg0: i32, %arg1: i32, %arg2: i32) -> (i32, i32) {
    %c0_i32 = arith.constant 0 : i32
    return %arg0, %arg2 : i32, i32
  }
  func.func @transform_1(%arg0: i32, %arg1: i32, %arg2: i32) -> (i32, i32) {
    %c0_i32 = arith.constant 0 : i32
    return %arg2, %arg1 : i32, i32
  }
  func.func @transform_2(%arg0: i32, %arg1: i32, %arg2: i32) -> (i32, i32) {
    %c0_i32 = arith.constant 0 : i32
    %c0_i32_0 = arith.constant 0 : i32
    return %c0_i32, %arg1 : i32, i32
  }
  func.func @transform_3(%arg0: i32, %arg1: i32, %arg2: i32) -> (i32, i32) {
    %c0_i32 = arith.constant 0 : i32
    return %arg0, %arg1 : i32, i32
  }
}

module attributes {stable_mosaic.version = 11 : i64} {
  func.func @_deform_block_kernel(%arg0: i32, %arg1: memref<128x64xf32, #tpu.memory_space<vmem>>, %arg2: memref<64x16xf32, #tpu.memory_space<vmem>>, %arg3: memref<1x16xf32, #tpu.memory_space<vmem>>, %arg4: memref<1x1x16xf32, #tpu.memory_space<vmem>>, %arg5: memref<128x128xf32, #tpu.memory_space<vmem>>, %arg6: memref<128x128xf32, #tpu.memory_space<vmem>>, %arg7: memref<1x128x128xf32, #tpu.memory_space<vmem>>, %arg8: memref<1x128xf32, #tpu.memory_space<vmem>>, %arg9: memref<128x128xf32, #tpu.memory_space<vmem>>, %arg10: memref<1x1xf32, #tpu.memory_space<vmem>>, %arg11: memref<128x16xf32, #tpu.memory_space<vmem>>, %arg12: memref<128x128xf32, #tpu.memory_space<vmem>>, %arg13: memref<1x128xf32, #tpu.memory_space<vmem>>, %arg14: memref<128x128xf32, #tpu.memory_space<vmem>>) attributes {dimension_semantics = [#tpu.dimension_semantics<arbitrary>], iteration_bounds = array<i64: 4>, scalar_prefetch = 0 : i64, scratch_operands = 4 : i64, tpu.core_type = #tpu.core_type<tc>, window_params = [{pipeline_mode = #tpu.pipeline_mode<synchronous>, transform_indices = @transform_0, window_bounds = array<i64: 128, 64>}, {pipeline_mode = #tpu.pipeline_mode<synchronous>, transform_indices = @transform_1, window_bounds = array<i64: 64, 16>}, {pipeline_mode = #tpu.pipeline_mode<synchronous>, transform_indices = @transform_2, window_bounds = array<i64: 1, 16>}, {transform_indices = @transform_3, window_bounds = array<i64: 1, 1, 16>}, {pipeline_mode = #tpu.pipeline_mode<synchronous>, transform_indices = @transform_4, window_bounds = array<i64: 128, 128>}, {pipeline_mode = #tpu.pipeline_mode<synchronous>, transform_indices = @transform_5, window_bounds = array<i64: 128, 128>}, {transform_indices = @transform_6, window_bounds = array<i64: 1, 128, 128>}, {pipeline_mode = #tpu.pipeline_mode<synchronous>, transform_indices = @transform_7, window_bounds = array<i64: 1, 128>}, {pipeline_mode = #tpu.pipeline_mode<synchronous>, transform_indices = @transform_8, window_bounds = array<i64: 128, 128>}, {pipeline_mode = #tpu.pipeline_mode<synchronous>, transform_indices = @transform_9, window_bounds = array<i64: 1, 1>}]} {
    %c0_i32 = arith.constant 0 : i32
    %0 = arith.cmpi eq, %arg0, %c0_i32 : i32
    %1 = arith.extui %0 : i1 to i32
    %c0_i32_0 = arith.constant 0 : i32
    %2 = arith.cmpi ne, %1, %c0_i32_0 : i32
    scf.if %2 {
      %c0_39 = arith.constant 0 : index
      %c0_40 = arith.constant 0 : index
      %68 = vector.load %arg1[%c0_39, %c0_40] : memref<128x64xf32, #tpu.memory_space<vmem>>, vector<128x64xf32>
      %69 = arith.truncf %68 : vector<128x64xf32> to vector<128x64xbf16>
      %c0_41 = arith.constant 0 : index
      %c0_42 = arith.constant 0 : index
      %70 = vector.load %arg2[%c0_41, %c0_42] : memref<64x16xf32, #tpu.memory_space<vmem>>, vector<64x16xf32>
      %71 = arith.truncf %70 : vector<64x16xf32> to vector<64x16xbf16>
      %cst_43 = arith.constant dense<0.000000e+00> : vector<128x16xf32>
      %72 = tpu.matmul %69, %71, %cst_43 {dimension_numbers = #tpu.dot_dimension_numbers<[1], [0], [0], [1], [0, 0, 1, 1], [], []>} : vector<128x64xbf16>, vector<64x16xbf16>, vector<128x16xf32> -> vector<128x16xf32>
      %c0_44 = arith.constant 0 : index
      %c0_45 = arith.constant 0 : index
      %73 = vector.load %arg3[%c0_44, %c0_45] : memref<1x16xf32, #tpu.memory_space<vmem>>, vector<1x16xf32>
      %74 = vector.broadcast %73 : vector<1x16xf32> to vector<128x16xf32>
      %75 = arith.addf %72, %74 : vector<128x16xf32>
      %c0_46 = arith.constant 0 : index
      %c0_47 = arith.constant 0 : index
      %76 = vector.load %arg11[%c0_46, %c0_47] : memref<128x16xf32, #tpu.memory_space<vmem>>, vector<128x16xf32>
      tpu.vector_store %arg11[%c0_46, %c0_47], %75 {strides = array<i32>} : memref<128x16xf32, #tpu.memory_space<vmem>>, vector<128x16xf32>,
      %77 = arith.truncf %75 : vector<128x16xf32> to vector<128x16xbf16>
      %cst_48 = arith.constant dense<0.000000e+00> : vector<128x128xf32>
      %78 = tpu.matmul %77, %77, %cst_48 {dimension_numbers = #tpu.dot_dimension_numbers<[1], [1], [0], [0], [0, 0, 1, 0], [], []>} : vector<128x16xbf16>, vector<128x16xbf16>, vector<128x128xf32> -> vector<128x128xf32>
      %c0_49 = arith.constant 0 : index
      %c0_50 = arith.constant 0 : index
      %79 = vector.load %arg12[%c0_49, %c0_50] : memref<128x128xf32, #tpu.memory_space<vmem>>, vector<128x128xf32>
      tpu.vector_store %arg12[%c0_49, %c0_50], %78 {strides = array<i32>} : memref<128x128xf32, #tpu.memory_space<vmem>>, vector<128x128xf32>,
      %80 = arith.mulf %75, %75 : vector<128x16xf32>
      %cst_51 = arith.constant dense<0.000000e+00> : vector<128xf32>
      %81 = vector.multi_reduction <add>, %80, %cst_51 [1] : vector<128x16xf32> to vector<128xf32>
      %82 = vector.shape_cast %81 : vector<128xf32> to vector<1x128xf32>
      %c0_52 = arith.constant 0 : index
      %c0_53 = arith.constant 0 : index
      %83 = vector.load %arg13[%c0_52, %c0_53] : memref<1x128xf32, #tpu.memory_space<vmem>>, vector<1x128xf32>
      tpu.vector_store %arg13[%c0_52, %c0_53], %82 {strides = array<i32>} : memref<1x128xf32, #tpu.memory_space<vmem>>, vector<1x128xf32>,
      %cst_54 = arith.constant 0.000000e+00 : f32
      %84 = vector.broadcast %cst_54 : f32 to vector<128x128xf32>
      %c0_55 = arith.constant 0 : index
      %c0_56 = arith.constant 0 : index
      %85 = vector.load %arg14[%c0_55, %c0_56] : memref<128x128xf32, #tpu.memory_space<vmem>>, vector<128x128xf32>
      tpu.vector_store %arg14[%c0_55, %c0_56], %84 {strides = array<i32>} : memref<128x128xf32, #tpu.memory_space<vmem>>, vector<128x128xf32>,
      %cst_57 = arith.constant 0.000000e+00 : f32
      %86 = vector.broadcast %cst_57 : f32 to vector<1x1xf32>
      %c0_58 = arith.constant 0 : index
      %c0_59 = arith.constant 0 : index
      %87 = vector.load %arg10[%c0_58, %c0_59] : memref<1x1xf32, #tpu.memory_space<vmem>>, vector<1x1xf32>
      tpu.vector_store %arg10[%c0_58, %c0_59], %86 {strides = array<i32>} : memref<1x1xf32, #tpu.memory_space<vmem>>, vector<1x1xf32>,
    } else {
    }
    %c0 = arith.constant 0 : index
    %c0_1 = arith.constant 0 : index
    %3 = vector.load %arg11[%c0, %c0_1] : memref<128x16xf32, #tpu.memory_space<vmem>>, vector<128x16xf32>
    %c0_2 = arith.constant 0 : index
    %c0_3 = arith.constant 0 : index
    %4 = vector.load %arg5[%c0_2, %c0_3] : memref<128x128xf32, #tpu.memory_space<vmem>>, vector<128x128xf32>
    %c0_4 = arith.constant 0 : index
    %c0_5 = arith.constant 0 : index
    %c0_6 = arith.constant 0 : index
    %5 = vector.load %arg4[%c0_4, %c0_5, %c0_6] : memref<1x1x16xf32, #tpu.memory_space<vmem>>, vector<1x1x16xf32>
    %6 = vector.shape_cast %5 : vector<1x1x16xf32> to vector<1x16xf32>
    %7 = vector.broadcast %6 : vector<1x16xf32> to vector<128x16xf32>
    %8 = arith.mulf %3, %7 : vector<128x16xf32>
    %cst = arith.constant dense<0.000000e+00> : vector<128xf32>
    %9 = vector.multi_reduction <add>, %8, %cst [1] : vector<128x16xf32> to vector<128xf32>
    %10 = vector.shape_cast %9 : vector<128xf32> to vector<1x128xf32>
    %c0_7 = arith.constant 0 : index
    %c0_8 = arith.constant 0 : index
    %11 = vector.load %arg12[%c0_7, %c0_8] : memref<128x128xf32, #tpu.memory_space<vmem>>, vector<128x128xf32>
    %cst_9 = arith.constant 2.000000e+00 : f32
    %12 = vector.broadcast %cst_9 : f32 to vector<128x128xf32>
    %13 = arith.mulf %12, %11 : vector<128x128xf32>
    %cst_10 = arith.constant 2.000000e+00 : f32
    %14 = vector.broadcast %cst_10 : f32 to vector<1x128xf32>
    %15 = arith.mulf %14, %10 : vector<1x128xf32>
    %c0_11 = arith.constant 0 : index
    %c0_12 = arith.constant 0 : index
    %16 = vector.load %arg13[%c0_11, %c0_12] : memref<1x128xf32, #tpu.memory_space<vmem>>, vector<1x128xf32>
    %17 = arith.subf %15, %16 : vector<1x128xf32>
    %18 = vector.broadcast %17 : vector<1x128xf32> to vector<128x128xf32>
    %19 = arith.addf %13, %18 : vector<128x128xf32>
    %cst_13 = arith.constant 0.000000e+00 : f32
    %20 = vector.broadcast %cst_13 : f32 to vector<128x128xf32>
    %21 = arith.cmpf ogt, %4, %20 : vector<128x128xf32>
    %cst_14 = arith.constant -1.000000e+30 : f32
    %22 = vector.broadcast %cst_14 : f32 to vector<128x128xf32>
    %23 = arith.select %21, %19, %22 : vector<128x128xi1>, vector<128x128xf32>
    %cst_15 = arith.constant dense<0xFF800000> : vector<128xf32>
    %24 = vector.multi_reduction <maximumf>, %23, %cst_15 [1] : vector<128x128xf32> to vector<128xf32>
    %25 = vector.shape_cast %24 : vector<128xf32> to vector<128x1xf32>
    %cst_16 = arith.constant 0.000000e+00 : f32
    %26 = vector.broadcast %cst_16 : f32 to vector<128x128xf32>
    %27 = arith.cmpf ogt, %4, %26 : vector<128x128xf32>
    %28 = vector.broadcast %25 : vector<128x1xf32> to vector<128x128xf32>
    %29 = arith.subf %23, %28 : vector<128x128xf32>
    %30 = math.exp %29 : vector<128x128xf32>
    %cst_17 = arith.constant 0.000000e+00 : f32
    %31 = vector.broadcast %cst_17 : f32 to vector<128x128xf32>
    %32 = arith.select %27, %30, %31 : vector<128x128xi1>, vector<128x128xf32>
    %cst_18 = arith.constant dense<0.000000e+00> : vector<128xf32>
    %33 = vector.multi_reduction <add>, %32, %cst_18 [1] : vector<128x128xf32> to vector<128xf32>
    %34 = vector.shape_cast %33 : vector<128xf32> to vector<128x1xf32>
    %cst_19 = arith.constant 9.99999996E-13 : f32
    %35 = vector.broadcast %cst_19 : f32 to vector<128x1xf32>
    %36 = arith.addf %34, %35 : vector<128x1xf32>
    %37 = tpu.reciprocal %36 {approx = true} : vector<128x1xf32> -> vector<128x1xf32>
    %38 = vector.broadcast %37 : vector<128x1xf32> to vector<128x128xf32>
    %39 = arith.mulf %32, %38 : vector<128x128xf32>
    %40 = arith.truncf %39 : vector<128x128xf32> to vector<128x128xbf16>
    %c0_20 = arith.constant 0 : index
    %c0_21 = arith.constant 0 : index
    %41 = vector.load %arg6[%c0_20, %c0_21] : memref<128x128xf32, #tpu.memory_space<vmem>>, vector<128x128xf32>
    %42 = arith.truncf %41 : vector<128x128xf32> to vector<128x128xbf16>
    %cst_22 = arith.constant dense<0.000000e+00> : vector<128x128xf32>
    %43 = tpu.matmul %40, %42, %cst_22 {dimension_numbers = #tpu.dot_dimension_numbers<[1], [0], [0], [1], [0, 0, 1, 1], [], []>} : vector<128x128xbf16>, vector<128x128xbf16>, vector<128x128xf32> -> vector<128x128xf32>
    %c0_23 = arith.constant 0 : index
    %c0_24 = arith.constant 0 : index
    %44 = vector.load %arg14[%c0_23, %c0_24] : memref<128x128xf32, #tpu.memory_space<vmem>>, vector<128x128xf32>
    %45 = arith.truncf %43 : vector<128x128xf32> to vector<128x128xbf16>
    %c0_25 = arith.constant 0 : index
    %c0_26 = arith.constant 0 : index
    %c0_27 = arith.constant 0 : index
    %46 = vector.load %arg7[%c0_25, %c0_26, %c0_27] : memref<1x128x128xf32, #tpu.memory_space<vmem>>, vector<1x128x128xf32>
    %47 = vector.shape_cast %46 : vector<1x128x128xf32> to vector<128x128xf32>
    %48 = arith.truncf %47 : vector<128x128xf32> to vector<128x128xbf16>
    %cst_28 = arith.constant dense<0.000000e+00> : vector<128x128xf32>
    %49 = tpu.matmul %45, %48, %cst_28 {dimension_numbers = #tpu.dot_dimension_numbers<[1], [0], [0], [1], [0, 0, 1, 1], [], []>} : vector<128x128xbf16>, vector<128x128xbf16>, vector<128x128xf32> -> vector<128x128xf32>
    %50 = arith.addf %44, %49 : vector<128x128xf32>
    %c0_29 = arith.constant 0 : index
    %c0_30 = arith.constant 0 : index
    %51 = vector.load %arg14[%c0_29, %c0_30] : memref<128x128xf32, #tpu.memory_space<vmem>>, vector<128x128xf32>
    tpu.vector_store %arg14[%c0_29, %c0_30], %50 {strides = array<i32>} : memref<128x128xf32, #tpu.memory_space<vmem>>, vector<128x128xf32>,
    %c0_31 = arith.constant 0 : index
    %c0_32 = arith.constant 0 : index
    %52 = vector.load %arg10[%c0_31, %c0_32] : memref<1x1xf32, #tpu.memory_space<vmem>>, vector<1x1xf32>
    %cst_33 = arith.constant 9.99999996E-13 : f32
    %53 = vector.broadcast %cst_33 : f32 to vector<128x128xf32>
    %54 = arith.addf %39, %53 : vector<128x128xf32>
    %55 = math.log %54 : vector<128x128xf32>
    %56 = arith.mulf %39, %55 : vector<128x128xf32>
    %57 = vector.shape_cast %56 : vector<128x128xf32> to vector<1x128x128xf32>
    %cst_34 = arith.constant dense<0.000000e+00> : vector<1xf32>
    %58 = vector.multi_reduction <add>, %57, %cst_34 [1, 2] : vector<1x128x128xf32> to vector<1xf32>
    %59 = vector.shape_cast %58 : vector<1xf32> to vector<1x1x1xf32>
    %60 = vector.extract %59[0, 0, 0] : f32 from vector<1x1x1xf32>
    %cst_35 = arith.constant 0.000000e+00 : f32
    %61 = arith.subf %cst_35, %60 : f32
    %62 = vector.broadcast %61 : f32 to vector<1x1xf32>
    %63 = arith.addf %52, %62 : vector<1x1xf32>
    %c0_36 = arith.constant 0 : index
    %c0_37 = arith.constant 0 : index
    %64 = vector.load %arg10[%c0_36, %c0_37] : memref<1x1xf32, #tpu.memory_space<vmem>>, vector<1x1xf32>
    tpu.vector_store %arg10[%c0_36, %c0_37], %63 {strides = array<i32>} : memref<1x1xf32, #tpu.memory_space<vmem>>, vector<1x1xf32>,
    %c3_i32 = arith.constant 3 : i32
    %65 = arith.cmpi eq, %arg0, %c3_i32 : i32
    %66 = arith.extui %65 : i1 to i32
    %c0_i32_38 = arith.constant 0 : i32
    %67 = arith.cmpi ne, %66, %c0_i32_38 : i32
    scf.if %67 {
      %c0_39 = arith.constant 0 : index
      %c0_40 = arith.constant 0 : index
      %68 = vector.load %arg14[%c0_39, %c0_40] : memref<128x128xf32, #tpu.memory_space<vmem>>, vector<128x128xf32>
      %c0_41 = arith.constant 0 : index
      %c0_42 = arith.constant 0 : index
      %69 = vector.load %arg8[%c0_41, %c0_42] : memref<1x128xf32, #tpu.memory_space<vmem>>, vector<1x128xf32>
      %70 = vector.broadcast %69 : vector<1x128xf32> to vector<128x128xf32>
      %71 = arith.addf %68, %70 : vector<128x128xf32>
      %cst_43 = arith.constant 0.000000e+00 : f32
      %72 = vector.broadcast %cst_43 : f32 to vector<128x128xf32>
      %73 = arith.maximumf %71, %72 : vector<128x128xf32>
      %c0_44 = arith.constant 0 : index
      %c0_45 = arith.constant 0 : index
      %74 = vector.load %arg9[%c0_44, %c0_45] : memref<128x128xf32, #tpu.memory_space<vmem>>, vector<128x128xf32>
      tpu.vector_store %arg9[%c0_44, %c0_45], %73 {strides = array<i32>} : memref<128x128xf32, #tpu.memory_space<vmem>>, vector<128x128xf32>,
      %c0_46 = arith.constant 0 : index
      %c0_47 = arith.constant 0 : index
      %75 = vector.load %arg10[%c0_46, %c0_47] : memref<1x1xf32, #tpu.memory_space<vmem>>, vector<1x1xf32>
      %cst_48 = arith.constant 0.001953125 : f32
      %76 = vector.broadcast %cst_48 : f32 to vector<1x1xf32>
      %77 = arith.mulf %75, %76 : vector<1x1xf32>
      %c0_49 = arith.constant 0 : index
      %c0_50 = arith.constant 0 : index
      %78 = vector.load %arg10[%c0_49, %c0_50] : memref<1x1xf32, #tpu.memory_space<vmem>>, vector<1x1xf32>
      tpu.vector_store %arg10[%c0_49, %c0_50], %77 {strides = array<i32>} : memref<1x1xf32, #tpu.memory_space<vmem>>, vector<1x1xf32>,
    } else {
    }
    return
  }
  func.func @transform_0(%arg0: i32) -> (i32, i32) {
    %c0_i32 = arith.constant 0 : i32
    %c0_i32_0 = arith.constant 0 : i32
    %c0_i32_1 = arith.constant 0 : i32
    return %c0_i32, %c0_i32_0 : i32, i32
  }
  func.func @transform_1(%arg0: i32) -> (i32, i32) {
    %c0_i32 = arith.constant 0 : i32
    %c0_i32_0 = arith.constant 0 : i32
    %c0_i32_1 = arith.constant 0 : i32
    return %c0_i32, %c0_i32_0 : i32, i32
  }
  func.func @transform_2(%arg0: i32) -> (i32, i32) {
    %c0_i32 = arith.constant 0 : i32
    %c0_i32_0 = arith.constant 0 : i32
    %c0_i32_1 = arith.constant 0 : i32
    return %c0_i32, %c0_i32_0 : i32, i32
  }
  func.func @transform_3(%arg0: i32) -> (i32, i32, i32) {
    %c0_i32 = arith.constant 0 : i32
    %c0_i32_0 = arith.constant 0 : i32
    %c0_i32_1 = arith.constant 0 : i32
    return %arg0, %c0_i32, %c0_i32_0 : i32, i32, i32
  }
  func.func @transform_4(%arg0: i32) -> (i32, i32) {
    %c0_i32 = arith.constant 0 : i32
    %c0_i32_0 = arith.constant 0 : i32
    %c0_i32_1 = arith.constant 0 : i32
    return %c0_i32, %c0_i32_0 : i32, i32
  }
  func.func @transform_5(%arg0: i32) -> (i32, i32) {
    %c0_i32 = arith.constant 0 : i32
    %c0_i32_0 = arith.constant 0 : i32
    %c0_i32_1 = arith.constant 0 : i32
    return %c0_i32, %c0_i32_0 : i32, i32
  }
  func.func @transform_6(%arg0: i32) -> (i32, i32, i32) {
    %c0_i32 = arith.constant 0 : i32
    %c0_i32_0 = arith.constant 0 : i32
    %c0_i32_1 = arith.constant 0 : i32
    return %arg0, %c0_i32, %c0_i32_0 : i32, i32, i32
  }
  func.func @transform_7(%arg0: i32) -> (i32, i32) {
    %c0_i32 = arith.constant 0 : i32
    %c0_i32_0 = arith.constant 0 : i32
    %c0_i32_1 = arith.constant 0 : i32
    return %c0_i32, %c0_i32_0 : i32, i32
  }
  func.func @transform_8(%arg0: i32) -> (i32, i32) {
    %c0_i32 = arith.constant 0 : i32
    %c0_i32_0 = arith.constant 0 : i32
    %c0_i32_1 = arith.constant 0 : i32
    return %c0_i32, %c0_i32_0 : i32, i32
  }
  func.func @transform_9(%arg0: i32) -> (i32, i32) {
    %c0_i32 = arith.constant 0 : i32
    %c0_i32_0 = arith.constant 0 : i32
    %c0_i32_1 = arith.constant 0 : i32
    return %c0_i32, %c0_i32_0 : i32, i32
  }
}

module attributes {stable_mosaic.version = 11 : i64} {
  func.func @_deform_block_kernel(%arg0: i32, %arg1: memref<128x64xf32, #tpu.memory_space<vmem>>, %arg2: memref<64x16xf32, #tpu.memory_space<vmem>>, %arg3: memref<1x16xf32, #tpu.memory_space<vmem>>, %arg4: memref<1x1x16xf32, #tpu.memory_space<vmem>>, %arg5: memref<128x128xf32, #tpu.memory_space<vmem>>, %arg6: memref<128x128xf32, #tpu.memory_space<vmem>>, %arg7: memref<1x128x8xf32, #tpu.memory_space<vmem>>, %arg8: memref<1x8xf32, #tpu.memory_space<vmem>>, %arg9: memref<128x8xf32, #tpu.memory_space<vmem>>, %arg10: memref<1x1xf32, #tpu.memory_space<vmem>>, %arg11: memref<128x16xf32, #tpu.memory_space<vmem>>, %arg12: memref<128x128xf32, #tpu.memory_space<vmem>>, %arg13: memref<1x128xf32, #tpu.memory_space<vmem>>, %arg14: memref<128x8xf32, #tpu.memory_space<vmem>>) attributes {dimension_semantics = [#tpu.dimension_semantics<arbitrary>], iteration_bounds = array<i64: 4>, scalar_prefetch = 0 : i64, scratch_operands = 4 : i64, tpu.core_type = #tpu.core_type<tc>, window_params = [{pipeline_mode = #tpu.pipeline_mode<synchronous>, transform_indices = @transform_0, window_bounds = array<i64: 128, 64>}, {pipeline_mode = #tpu.pipeline_mode<synchronous>, transform_indices = @transform_1, window_bounds = array<i64: 64, 16>}, {pipeline_mode = #tpu.pipeline_mode<synchronous>, transform_indices = @transform_2, window_bounds = array<i64: 1, 16>}, {transform_indices = @transform_3, window_bounds = array<i64: 1, 1, 16>}, {pipeline_mode = #tpu.pipeline_mode<synchronous>, transform_indices = @transform_4, window_bounds = array<i64: 128, 128>}, {pipeline_mode = #tpu.pipeline_mode<synchronous>, transform_indices = @transform_5, window_bounds = array<i64: 128, 128>}, {transform_indices = @transform_6, window_bounds = array<i64: 1, 128, 8>}, {pipeline_mode = #tpu.pipeline_mode<synchronous>, transform_indices = @transform_7, window_bounds = array<i64: 1, 8>}, {pipeline_mode = #tpu.pipeline_mode<synchronous>, transform_indices = @transform_8, window_bounds = array<i64: 128, 8>}, {pipeline_mode = #tpu.pipeline_mode<synchronous>, transform_indices = @transform_9, window_bounds = array<i64: 1, 1>}]} {
    %c0_i32 = arith.constant 0 : i32
    %0 = arith.cmpi eq, %arg0, %c0_i32 : i32
    %1 = arith.extui %0 : i1 to i32
    %c0_i32_0 = arith.constant 0 : i32
    %2 = arith.cmpi ne, %1, %c0_i32_0 : i32
    scf.if %2 {
      %c0_39 = arith.constant 0 : index
      %c0_40 = arith.constant 0 : index
      %68 = vector.load %arg1[%c0_39, %c0_40] : memref<128x64xf32, #tpu.memory_space<vmem>>, vector<128x64xf32>
      %69 = arith.truncf %68 : vector<128x64xf32> to vector<128x64xbf16>
      %c0_41 = arith.constant 0 : index
      %c0_42 = arith.constant 0 : index
      %70 = vector.load %arg2[%c0_41, %c0_42] : memref<64x16xf32, #tpu.memory_space<vmem>>, vector<64x16xf32>
      %71 = arith.truncf %70 : vector<64x16xf32> to vector<64x16xbf16>
      %cst_43 = arith.constant dense<0.000000e+00> : vector<128x16xf32>
      %72 = tpu.matmul %69, %71, %cst_43 {dimension_numbers = #tpu.dot_dimension_numbers<[1], [0], [0], [1], [0, 0, 1, 1], [], []>} : vector<128x64xbf16>, vector<64x16xbf16>, vector<128x16xf32> -> vector<128x16xf32>
      %c0_44 = arith.constant 0 : index
      %c0_45 = arith.constant 0 : index
      %73 = vector.load %arg3[%c0_44, %c0_45] : memref<1x16xf32, #tpu.memory_space<vmem>>, vector<1x16xf32>
      %74 = vector.broadcast %73 : vector<1x16xf32> to vector<128x16xf32>
      %75 = arith.addf %72, %74 : vector<128x16xf32>
      %c0_46 = arith.constant 0 : index
      %c0_47 = arith.constant 0 : index
      %76 = vector.load %arg11[%c0_46, %c0_47] : memref<128x16xf32, #tpu.memory_space<vmem>>, vector<128x16xf32>
      tpu.vector_store %arg11[%c0_46, %c0_47], %75 {strides = array<i32>} : memref<128x16xf32, #tpu.memory_space<vmem>>, vector<128x16xf32>,
      %77 = arith.truncf %75 : vector<128x16xf32> to vector<128x16xbf16>
      %cst_48 = arith.constant dense<0.000000e+00> : vector<128x128xf32>
      %78 = tpu.matmul %77, %77, %cst_48 {dimension_numbers = #tpu.dot_dimension_numbers<[1], [1], [0], [0], [0, 0, 1, 0], [], []>} : vector<128x16xbf16>, vector<128x16xbf16>, vector<128x128xf32> -> vector<128x128xf32>
      %c0_49 = arith.constant 0 : index
      %c0_50 = arith.constant 0 : index
      %79 = vector.load %arg12[%c0_49, %c0_50] : memref<128x128xf32, #tpu.memory_space<vmem>>, vector<128x128xf32>
      tpu.vector_store %arg12[%c0_49, %c0_50], %78 {strides = array<i32>} : memref<128x128xf32, #tpu.memory_space<vmem>>, vector<128x128xf32>,
      %80 = arith.mulf %75, %75 : vector<128x16xf32>
      %cst_51 = arith.constant dense<0.000000e+00> : vector<128xf32>
      %81 = vector.multi_reduction <add>, %80, %cst_51 [1] : vector<128x16xf32> to vector<128xf32>
      %82 = vector.shape_cast %81 : vector<128xf32> to vector<1x128xf32>
      %c0_52 = arith.constant 0 : index
      %c0_53 = arith.constant 0 : index
      %83 = vector.load %arg13[%c0_52, %c0_53] : memref<1x128xf32, #tpu.memory_space<vmem>>, vector<1x128xf32>
      tpu.vector_store %arg13[%c0_52, %c0_53], %82 {strides = array<i32>} : memref<1x128xf32, #tpu.memory_space<vmem>>, vector<1x128xf32>,
      %cst_54 = arith.constant 0.000000e+00 : f32
      %84 = vector.broadcast %cst_54 : f32 to vector<128x8xf32>
      %c0_55 = arith.constant 0 : index
      %c0_56 = arith.constant 0 : index
      %85 = vector.load %arg14[%c0_55, %c0_56] : memref<128x8xf32, #tpu.memory_space<vmem>>, vector<128x8xf32>
      tpu.vector_store %arg14[%c0_55, %c0_56], %84 {strides = array<i32>} : memref<128x8xf32, #tpu.memory_space<vmem>>, vector<128x8xf32>,
      %cst_57 = arith.constant 0.000000e+00 : f32
      %86 = vector.broadcast %cst_57 : f32 to vector<1x1xf32>
      %c0_58 = arith.constant 0 : index
      %c0_59 = arith.constant 0 : index
      %87 = vector.load %arg10[%c0_58, %c0_59] : memref<1x1xf32, #tpu.memory_space<vmem>>, vector<1x1xf32>
      tpu.vector_store %arg10[%c0_58, %c0_59], %86 {strides = array<i32>} : memref<1x1xf32, #tpu.memory_space<vmem>>, vector<1x1xf32>,
    } else {
    }
    %c0 = arith.constant 0 : index
    %c0_1 = arith.constant 0 : index
    %3 = vector.load %arg11[%c0, %c0_1] : memref<128x16xf32, #tpu.memory_space<vmem>>, vector<128x16xf32>
    %c0_2 = arith.constant 0 : index
    %c0_3 = arith.constant 0 : index
    %4 = vector.load %arg5[%c0_2, %c0_3] : memref<128x128xf32, #tpu.memory_space<vmem>>, vector<128x128xf32>
    %c0_4 = arith.constant 0 : index
    %c0_5 = arith.constant 0 : index
    %c0_6 = arith.constant 0 : index
    %5 = vector.load %arg4[%c0_4, %c0_5, %c0_6] : memref<1x1x16xf32, #tpu.memory_space<vmem>>, vector<1x1x16xf32>
    %6 = vector.shape_cast %5 : vector<1x1x16xf32> to vector<1x16xf32>
    %7 = vector.broadcast %6 : vector<1x16xf32> to vector<128x16xf32>
    %8 = arith.mulf %3, %7 : vector<128x16xf32>
    %cst = arith.constant dense<0.000000e+00> : vector<128xf32>
    %9 = vector.multi_reduction <add>, %8, %cst [1] : vector<128x16xf32> to vector<128xf32>
    %10 = vector.shape_cast %9 : vector<128xf32> to vector<1x128xf32>
    %c0_7 = arith.constant 0 : index
    %c0_8 = arith.constant 0 : index
    %11 = vector.load %arg12[%c0_7, %c0_8] : memref<128x128xf32, #tpu.memory_space<vmem>>, vector<128x128xf32>
    %cst_9 = arith.constant 2.000000e+00 : f32
    %12 = vector.broadcast %cst_9 : f32 to vector<128x128xf32>
    %13 = arith.mulf %12, %11 : vector<128x128xf32>
    %cst_10 = arith.constant 2.000000e+00 : f32
    %14 = vector.broadcast %cst_10 : f32 to vector<1x128xf32>
    %15 = arith.mulf %14, %10 : vector<1x128xf32>
    %c0_11 = arith.constant 0 : index
    %c0_12 = arith.constant 0 : index
    %16 = vector.load %arg13[%c0_11, %c0_12] : memref<1x128xf32, #tpu.memory_space<vmem>>, vector<1x128xf32>
    %17 = arith.subf %15, %16 : vector<1x128xf32>
    %18 = vector.broadcast %17 : vector<1x128xf32> to vector<128x128xf32>
    %19 = arith.addf %13, %18 : vector<128x128xf32>
    %cst_13 = arith.constant 0.000000e+00 : f32
    %20 = vector.broadcast %cst_13 : f32 to vector<128x128xf32>
    %21 = arith.cmpf ogt, %4, %20 : vector<128x128xf32>
    %cst_14 = arith.constant -1.000000e+30 : f32
    %22 = vector.broadcast %cst_14 : f32 to vector<128x128xf32>
    %23 = arith.select %21, %19, %22 : vector<128x128xi1>, vector<128x128xf32>
    %cst_15 = arith.constant dense<0xFF800000> : vector<128xf32>
    %24 = vector.multi_reduction <maximumf>, %23, %cst_15 [1] : vector<128x128xf32> to vector<128xf32>
    %25 = vector.shape_cast %24 : vector<128xf32> to vector<128x1xf32>
    %cst_16 = arith.constant 0.000000e+00 : f32
    %26 = vector.broadcast %cst_16 : f32 to vector<128x128xf32>
    %27 = arith.cmpf ogt, %4, %26 : vector<128x128xf32>
    %28 = vector.broadcast %25 : vector<128x1xf32> to vector<128x128xf32>
    %29 = arith.subf %23, %28 : vector<128x128xf32>
    %30 = math.exp %29 : vector<128x128xf32>
    %cst_17 = arith.constant 0.000000e+00 : f32
    %31 = vector.broadcast %cst_17 : f32 to vector<128x128xf32>
    %32 = arith.select %27, %30, %31 : vector<128x128xi1>, vector<128x128xf32>
    %cst_18 = arith.constant dense<0.000000e+00> : vector<128xf32>
    %33 = vector.multi_reduction <add>, %32, %cst_18 [1] : vector<128x128xf32> to vector<128xf32>
    %34 = vector.shape_cast %33 : vector<128xf32> to vector<128x1xf32>
    %cst_19 = arith.constant 9.99999996E-13 : f32
    %35 = vector.broadcast %cst_19 : f32 to vector<128x1xf32>
    %36 = arith.addf %34, %35 : vector<128x1xf32>
    %37 = tpu.reciprocal %36 {approx = true} : vector<128x1xf32> -> vector<128x1xf32>
    %38 = vector.broadcast %37 : vector<128x1xf32> to vector<128x128xf32>
    %39 = arith.mulf %32, %38 : vector<128x128xf32>
    %40 = arith.truncf %39 : vector<128x128xf32> to vector<128x128xbf16>
    %c0_20 = arith.constant 0 : index
    %c0_21 = arith.constant 0 : index
    %41 = vector.load %arg6[%c0_20, %c0_21] : memref<128x128xf32, #tpu.memory_space<vmem>>, vector<128x128xf32>
    %42 = arith.truncf %41 : vector<128x128xf32> to vector<128x128xbf16>
    %cst_22 = arith.constant dense<0.000000e+00> : vector<128x128xf32>
    %43 = tpu.matmul %40, %42, %cst_22 {dimension_numbers = #tpu.dot_dimension_numbers<[1], [0], [0], [1], [0, 0, 1, 1], [], []>} : vector<128x128xbf16>, vector<128x128xbf16>, vector<128x128xf32> -> vector<128x128xf32>
    %c0_23 = arith.constant 0 : index
    %c0_24 = arith.constant 0 : index
    %44 = vector.load %arg14[%c0_23, %c0_24] : memref<128x8xf32, #tpu.memory_space<vmem>>, vector<128x8xf32>
    %45 = arith.truncf %43 : vector<128x128xf32> to vector<128x128xbf16>
    %c0_25 = arith.constant 0 : index
    %c0_26 = arith.constant 0 : index
    %c0_27 = arith.constant 0 : index
    %46 = vector.load %arg7[%c0_25, %c0_26, %c0_27] : memref<1x128x8xf32, #tpu.memory_space<vmem>>, vector<1x128x8xf32>
    %47 = vector.shape_cast %46 : vector<1x128x8xf32> to vector<128x8xf32>
    %48 = arith.truncf %47 : vector<128x8xf32> to vector<128x8xbf16>
    %cst_28 = arith.constant dense<0.000000e+00> : vector<128x8xf32>
    %49 = tpu.matmul %45, %48, %cst_28 {dimension_numbers = #tpu.dot_dimension_numbers<[1], [0], [0], [1], [0, 0, 1, 1], [], []>} : vector<128x128xbf16>, vector<128x8xbf16>, vector<128x8xf32> -> vector<128x8xf32>
    %50 = arith.addf %44, %49 : vector<128x8xf32>
    %c0_29 = arith.constant 0 : index
    %c0_30 = arith.constant 0 : index
    %51 = vector.load %arg14[%c0_29, %c0_30] : memref<128x8xf32, #tpu.memory_space<vmem>>, vector<128x8xf32>
    tpu.vector_store %arg14[%c0_29, %c0_30], %50 {strides = array<i32>} : memref<128x8xf32, #tpu.memory_space<vmem>>, vector<128x8xf32>,
    %c0_31 = arith.constant 0 : index
    %c0_32 = arith.constant 0 : index
    %52 = vector.load %arg10[%c0_31, %c0_32] : memref<1x1xf32, #tpu.memory_space<vmem>>, vector<1x1xf32>
    %cst_33 = arith.constant 9.99999996E-13 : f32
    %53 = vector.broadcast %cst_33 : f32 to vector<128x128xf32>
    %54 = arith.addf %39, %53 : vector<128x128xf32>
    %55 = math.log %54 : vector<128x128xf32>
    %56 = arith.mulf %39, %55 : vector<128x128xf32>
    %57 = vector.shape_cast %56 : vector<128x128xf32> to vector<1x128x128xf32>
    %cst_34 = arith.constant dense<0.000000e+00> : vector<1xf32>
    %58 = vector.multi_reduction <add>, %57, %cst_34 [1, 2] : vector<1x128x128xf32> to vector<1xf32>
    %59 = vector.shape_cast %58 : vector<1xf32> to vector<1x1x1xf32>
    %60 = vector.extract %59[0, 0, 0] : f32 from vector<1x1x1xf32>
    %cst_35 = arith.constant 0.000000e+00 : f32
    %61 = arith.subf %cst_35, %60 : f32
    %62 = vector.broadcast %61 : f32 to vector<1x1xf32>
    %63 = arith.addf %52, %62 : vector<1x1xf32>
    %c0_36 = arith.constant 0 : index
    %c0_37 = arith.constant 0 : index
    %64 = vector.load %arg10[%c0_36, %c0_37] : memref<1x1xf32, #tpu.memory_space<vmem>>, vector<1x1xf32>
    tpu.vector_store %arg10[%c0_36, %c0_37], %63 {strides = array<i32>} : memref<1x1xf32, #tpu.memory_space<vmem>>, vector<1x1xf32>,
    %c3_i32 = arith.constant 3 : i32
    %65 = arith.cmpi eq, %arg0, %c3_i32 : i32
    %66 = arith.extui %65 : i1 to i32
    %c0_i32_38 = arith.constant 0 : i32
    %67 = arith.cmpi ne, %66, %c0_i32_38 : i32
    scf.if %67 {
      %c0_39 = arith.constant 0 : index
      %c0_40 = arith.constant 0 : index
      %68 = vector.load %arg14[%c0_39, %c0_40] : memref<128x8xf32, #tpu.memory_space<vmem>>, vector<128x8xf32>
      %c0_41 = arith.constant 0 : index
      %c0_42 = arith.constant 0 : index
      %69 = vector.load %arg8[%c0_41, %c0_42] : memref<1x8xf32, #tpu.memory_space<vmem>>, vector<1x8xf32>
      %70 = vector.broadcast %69 : vector<1x8xf32> to vector<128x8xf32>
      %71 = arith.addf %68, %70 : vector<128x8xf32>
      %c0_43 = arith.constant 0 : index
      %c0_44 = arith.constant 0 : index
      %72 = vector.load %arg9[%c0_43, %c0_44] : memref<128x8xf32, #tpu.memory_space<vmem>>, vector<128x8xf32>
      tpu.vector_store %arg9[%c0_43, %c0_44], %71 {strides = array<i32>} : memref<128x8xf32, #tpu.memory_space<vmem>>, vector<128x8xf32>,
      %c0_45 = arith.constant 0 : index
      %c0_46 = arith.constant 0 : index
      %73 = vector.load %arg10[%c0_45, %c0_46] : memref<1x1xf32, #tpu.memory_space<vmem>>, vector<1x1xf32>
      %cst_47 = arith.constant 0.001953125 : f32
      %74 = vector.broadcast %cst_47 : f32 to vector<1x1xf32>
      %75 = arith.mulf %73, %74 : vector<1x1xf32>
      %c0_48 = arith.constant 0 : index
      %c0_49 = arith.constant 0 : index
      %76 = vector.load %arg10[%c0_48, %c0_49] : memref<1x1xf32, #tpu.memory_space<vmem>>, vector<1x1xf32>
      tpu.vector_store %arg10[%c0_48, %c0_49], %75 {strides = array<i32>} : memref<1x1xf32, #tpu.memory_space<vmem>>, vector<1x1xf32>,
    } else {
    }
    return
  }
  func.func @transform_0(%arg0: i32) -> (i32, i32) {
    %c0_i32 = arith.constant 0 : i32
    %c0_i32_0 = arith.constant 0 : i32
    %c0_i32_1 = arith.constant 0 : i32
    return %c0_i32, %c0_i32_0 : i32, i32
  }
  func.func @transform_1(%arg0: i32) -> (i32, i32) {
    %c0_i32 = arith.constant 0 : i32
    %c0_i32_0 = arith.constant 0 : i32
    %c0_i32_1 = arith.constant 0 : i32
    return %c0_i32, %c0_i32_0 : i32, i32
  }
  func.func @transform_2(%arg0: i32) -> (i32, i32) {
    %c0_i32 = arith.constant 0 : i32
    %c0_i32_0 = arith.constant 0 : i32
    %c0_i32_1 = arith.constant 0 : i32
    return %c0_i32, %c0_i32_0 : i32, i32
  }
  func.func @transform_3(%arg0: i32) -> (i32, i32, i32) {
    %c0_i32 = arith.constant 0 : i32
    %c0_i32_0 = arith.constant 0 : i32
    %c0_i32_1 = arith.constant 0 : i32
    return %arg0, %c0_i32, %c0_i32_0 : i32, i32, i32
  }
  func.func @transform_4(%arg0: i32) -> (i32, i32) {
    %c0_i32 = arith.constant 0 : i32
    %c0_i32_0 = arith.constant 0 : i32
    %c0_i32_1 = arith.constant 0 : i32
    return %c0_i32, %c0_i32_0 : i32, i32
  }
  func.func @transform_5(%arg0: i32) -> (i32, i32) {
    %c0_i32 = arith.constant 0 : i32
    %c0_i32_0 = arith.constant 0 : i32
    %c0_i32_1 = arith.constant 0 : i32
    return %c0_i32, %c0_i32_0 : i32, i32
  }
  func.func @transform_6(%arg0: i32) -> (i32, i32, i32) {
    %c0_i32 = arith.constant 0 : i32
    %c0_i32_0 = arith.constant 0 : i32
    %c0_i32_1 = arith.constant 0 : i32
    return %arg0, %c0_i32, %c0_i32_0 : i32, i32, i32
  }
  func.func @transform_7(%arg0: i32) -> (i32, i32) {
    %c0_i32 = arith.constant 0 : i32
    %c0_i32_0 = arith.constant 0 : i32
    %c0_i32_1 = arith.constant 0 : i32
    return %c0_i32, %c0_i32_0 : i32, i32
  }
  func.func @transform_8(%arg0: i32) -> (i32, i32) {
    %c0_i32 = arith.constant 0 : i32
    %c0_i32_0 = arith.constant 0 : i32
    %c0_i32_1 = arith.constant 0 : i32
    return %c0_i32, %c0_i32_0 : i32, i32
  }
  func.func @transform_9(%arg0: i32) -> (i32, i32) {
    %c0_i32 = arith.constant 0 : i32
    %c0_i32_0 = arith.constant 0 : i32
    %c0_i32_1 = arith.constant 0 : i32
    return %c0_i32, %c0_i32_0 : i32, i32
  }
}

module attributes {stable_mosaic.version = 11 : i64} {
  func.func @_log_softmax_kernel(%arg0: i32, %arg1: memref<128x8xf32, #tpu.memory_space<vmem>>, %arg2: memref<128x8xf32, #tpu.memory_space<vmem>>) attributes {dimension_semantics = [#tpu.dimension_semantics<arbitrary>], iteration_bounds = array<i64: 1>, scalar_prefetch = 0 : i64, scratch_operands = 0 : i64, tpu.core_type = #tpu.core_type<tc>, window_params = [{pipeline_mode = #tpu.pipeline_mode<synchronous>, transform_indices = @transform_0, window_bounds = array<i64: 128, 8>}, {pipeline_mode = #tpu.pipeline_mode<synchronous>, transform_indices = @transform_1, window_bounds = array<i64: 128, 8>}]} {
    %c0 = arith.constant 0 : index
    %c0_0 = arith.constant 0 : index
    %0 = vector.load %arg1[%c0, %c0_0] : memref<128x8xf32, #tpu.memory_space<vmem>>, vector<128x8xf32>
    %cst = arith.constant dense<0xFF800000> : vector<128xf32>
    %1 = vector.multi_reduction <maximumf>, %0, %cst [1] : vector<128x8xf32> to vector<128xf32>
    %2 = vector.shape_cast %1 : vector<128xf32> to vector<128x1xf32>
    %3 = vector.broadcast %2 : vector<128x1xf32> to vector<128x8xf32>
    %4 = arith.subf %0, %3 : vector<128x8xf32>
    %5 = math.exp %4 : vector<128x8xf32>
    %cst_1 = arith.constant dense<0.000000e+00> : vector<128xf32>
    %6 = vector.multi_reduction <add>, %5, %cst_1 [1] : vector<128x8xf32> to vector<128xf32>
    %7 = vector.shape_cast %6 : vector<128xf32> to vector<128x1xf32>
    %8 = math.log %7 : vector<128x1xf32>
    %9 = vector.broadcast %8 : vector<128x1xf32> to vector<128x8xf32>
    %10 = arith.subf %4, %9 : vector<128x8xf32>
    %c0_2 = arith.constant 0 : index
    %c0_3 = arith.constant 0 : index
    %11 = vector.load %arg2[%c0_2, %c0_3] : memref<128x8xf32, #tpu.memory_space<vmem>>, vector<128x8xf32>
    tpu.vector_store %arg2[%c0_2, %c0_3], %10 {strides = array<i32>} : memref<128x8xf32, #tpu.memory_space<vmem>>, vector<128x8xf32>,
    return
  }
  func.func @transform_0(%arg0: i32) -> (i32, i32) {
    %c0_i32 = arith.constant 0 : i32
    %c0_i32_0 = arith.constant 0 : i32
    %c0_i32_1 = arith.constant 0 : i32
    return %c0_i32, %c0_i32_0 : i32, i32
  }
  func.func @transform_1(%arg0: i32) -> (i32, i32) {
    %c0_i32 = arith.constant 0 : i32
    %c0_i32_0 = arith.constant 0 : i32
    %c0_i32_1 = arith.constant 0 : i32
    return %c0_i32, %c0_i32_0 : i32, i32
  }
}

</mosaic_0001>

<bundles_post_ra>
// kernel: deformable_gcn_forward.5
= control target key start
LH: loop header
LB: loop body
LE: loop exit
PB: predicated region body
PF: predicated region fallthrough
CT: control target
= control target key end

     0   :  { %vm262_vm0 = vcmask 523264   ;;  %s562_s1 = inlined_call_operand.vmem [shape: f32[128,64], index: 1, kind: input, shape index: {}]   ;;  %s563_s0 = inlined_call_operand.vmem [shape: f32[128,128], index: 0, kind: input, shape index: {}]   ;;  %s564_s2 = inlined_call_operand.vmem [shape: f32[128,64], index: 2, kind: output, shape index: {}]  }
   0x1   :  { %v50_v0 = vld [vmem:[%s562_s1 + $0x70] sm:$0xff]  ;;  %v51_v1 = vld [vmem:[%s562_s1 + $0x78] sm:$0xff]  ;;  %v48_v2 = vld [vmem:[%s562_s1 + $0x60] sm:$0xff] }
   0x2   :  { %v59_v3 = vpack.c.bf16 %v51_v1, %v50_v0  ;;  %v49_v4 = vld [vmem:[%s562_s1 + $0x68] sm:$0xff]  ;;  %v46_v6 = vld [vmem:[%s562_s1 + $0x50] sm:$0xff]  ;;  %v47_v7 = vld [vmem:[%s562_s1 + $0x58] sm:$0xff] }
   0x3   :  { %v58_v5 = vpack.c.bf16 %v49_v4, %v48_v2  ;;  %v57_v8 = vpack.c.bf16 %v47_v7, %v46_v6  ;;  %v12_v9 = vld [vmem:[%s563_s0] sm:$0xff]  ;;  %v13_v10 = vld [vmem:[%s563_s0 + $0x8] sm:$0xff]  ;;  %v42_v15 = vld [vmem:[%s562_s1 + $0x30] sm:$0xff] }
   0x4   :  { %315 = vmatprep.subr.bf16.mxu0 %v59_v3  ;;  %v44_v11 = vld [vmem:[%s562_s1 + $0x40] sm:$0xff]  ;;  %v45_v12 = vld [vmem:[%s562_s1 + $0x48] sm:$0xff]  ;;  %v28_v13 = vpack.c.bf16 %v13_v10, %v12_v9  ;;  %v43_v16 = vld [vmem:[%s562_s1 + $0x38] sm:$0xff] }
   0x5   :  { %316 = vmatpush3.bf16.msra.mxu0 %v59_v3  ;;  %v56_v14 = vpack.c.bf16 %v45_v12, %v44_v11  ;;  %v55_v17 = vpack.c.bf16 %v43_v16, %v42_v15  ;;  %v40_v18 = vld [vmem:[%s562_s1 + $0x20] sm:$0xff]  ;;  %v41_v19 = vld [vmem:[%s562_s1 + $0x28] sm:$0xff]  ;;  %v38_v21 = vld [vmem:[%s562_s1 + $0x10] sm:$0xff] }
   0x6   :  { %317 = vmatprep.subr.bf16.mxu0 %v58_v5  ;;  %331 = vmatprep.mubr.bf16.mxu0 %v28_v13  ;;  %v54_v20 = vpack.c.bf16 %v41_v19, %v40_v18  ;;  %v39_v22 = vld [vmem:[%s562_s1 + $0x18] sm:$0xff]  ;;  %v36_v24 = vld [vmem:[%s562_s1] sm:$0xff]  ;;  %v37_v25 = vld [vmem:[%s562_s1 + $0x8] sm:$0xff] }
   0x7   :  { %363 = vmatprep.mubr.bf16.mxu1 %v28_v13  ;;  %v53_v23 = vpack.c.bf16 %v39_v22, %v38_v21  ;;  %v52_v26 = vpack.c.bf16 %v37_v25, %v36_v24  ;;  %v14_v27 = vld [vmem:[%s563_s0 + $0x10] sm:$0xff]  ;;  %v15_v28 = vld [vmem:[%s563_s0 + $0x18] sm:$0xff]  ;;  %v16_v29 = vld [vmem:[%s563_s0 + $0x20] sm:$0xff] }
   0x8   :  { %v17_v30 = vld [vmem:[%s563_s0 + $0x28] sm:$0xff]  ;;  %v460_v31 = vpack.c.bf16 %v15_v28, %v14_v27  ;;  %v18_v33 = vld [vmem:[%s563_s0 + $0x30] sm:$0xff]  ;;  %v19_v34 = vld [vmem:[%s563_s0 + $0x38] sm:$0xff] }
   0x9   :  { %318 = vmatpush3.bf16.msra.mxu0 %v58_v5  ;;  %v462_v32 = vpack.c.bf16 %v17_v30, %v16_v29  ;;  %v20_v35 = vld [vmem:[%s563_s0 + $0x40] sm:$0xff]  ;;  %v21_v36 = vld [vmem:[%s563_s0 + $0x48] sm:$0xff]  ;;  %v31_v37 = vpack.c.bf16 %v19_v34, %v18_v33  ;;  %v22_v39 = vld [vmem:[%s563_s0 + $0x50] sm:$0xff] }
   0xa   :  { %319 = vmatprep.subr.bf16.mxu0 %v57_v8  ;;  %v32_v38 = vpack.c.bf16 %v21_v36, %v20_v35  ;;  %v23_v40 = vld [vmem:[%s563_s0 + $0x58] sm:$0xff]  ;;  %v24_v41 = vld [vmem:[%s563_s0 + $0x60] sm:$0xff]  ;;  %v25_v42 = vld [vmem:[%s563_s0 + $0x68] sm:$0xff] }
   0xb   :  { %v33_v43 = vpack.c.bf16 %v23_v40, %v22_v39  ;;  %v34_v44 = vpack.c.bf16 %v25_v42, %v24_v41  ;;  %v26_v45 = vld [vmem:[%s563_s0 + $0x70] sm:$0xff]  ;;  %v27_v46 = vld [vmem:[%s563_s0 + $0x78] sm:$0xff] }
   0xc   :  { %v35_v47 = vpack.c.bf16 %v27_v46, %v26_v45 }
   0xd   :  { %320 = vmatpush3.bf16.msra.mxu0 %v57_v8 }
   0xe   :  { %321 = vmatprep.subr.bf16.mxu0 %v56_v14 }
  0x11   :  { %322 = vmatpush3.bf16.msra.mxu0 %v56_v14 }
  0x12   :  { %323 = vmatprep.subr.bf16.mxu0 %v55_v17 }
  0x15   :  { %324 = vmatpush3.bf16.msra.mxu0 %v55_v17 }
  0x16   :  { %325 = vmatprep.subr.bf16.mxu0 %v54_v20 }
  0x19   :  { %326 = vmatpush3.bf16.msra.mxu0 %v54_v20 }
  0x1a   :  { %327 = vmatprep.subr.bf16.mxu0 %v53_v23 }
  0x1d   :  { %328 = vmatpush3.bf16.msra.mxu0 %v53_v23 }
  0x1e   :  { %329 = vmatprep.subr.bf16.mxu0 %v52_v26 }
  0x21   :  { %330 = vmatpush3.bf16.msra.mxu0 %v52_v26 }
  0x24   :  { %332 = vmatmul.mubr.bf16.vlgmr.msra.gmra.mxu0 %v460_v31 }
  0x25   :  { %335 = vmatprep.mubr.bf16.mxu0 %v462_v32 }
  0x2c   :  { %336 = vmatmul.mubr.bf16.gmra.mxu0 %v31_v37 }
  0x2d   :  { %339 = vmatprep.mubr.bf16.mxu0 %v32_v38 }
  0x34   :  { %340 = vmatmul.mubr.bf16.gmra.mxu0 %v33_v43 }
  0x35   :  { %343 = vmatprep.mubr.bf16.mxu0 %v34_v44 }
  0x3c   :  { %344 = vmatmul.mubr.bf16.gmra.mxu0 %v35_v47 }
  0xe4   :  { %v333_v48 = vpop.f32.mrf.mxu0 }
  0xe6   :  { %v94_v49 = vpop.f32.mrf.mxu0 }
  0xe8   :  { %v334_v50 = vpop.f32.mrf.mxu0 }
  0xe9   :  { %v158_v6 = vpack.c.bf16 %v334_v50, %v333_v48 }
  0xea   :  { %v97_v51 = vpop.f32.mrf.mxu0 }
  0xeb   :  { %v157_v7 = vpack.c.bf16 %v97_v51, %v94_v49 }
  0xec   :  { %v337_v52 = vpop.f32.mrf.mxu0 }
  0xee   :  { %v110_v53 = vpop.f32.mrf.mxu0 }
  0xf0   :  { %v338_v54 = vpop.f32.mrf.mxu0 }
  0xf1   :  { %v160_v4 = vpack.c.bf16 %v338_v54, %v337_v52 }
  0xf2   :  { %v113_v55 = vpop.f32.mrf.mxu0 }
  0xf3   :  { %v159_v5 = vpack.c.bf16 %v113_v55, %v110_v53 }
  0xf4   :  { %v341_v56 = vpop.f32.mrf.mxu0 }
  0xf6   :  { %v126_v57 = vpop.f32.mrf.mxu0 }
  0xf8   :  { %v342_v58 = vpop.f32.mrf.mxu0 }
  0xf9   :  { %v162_v2 = vpack.c.bf16 %v342_v58, %v341_v56 }
  0xfa   :  { %v129_v59 = vpop.f32.mrf.mxu0 }
  0xfb   :  { %v161_v3 = vpack.c.bf16 %v129_v59, %v126_v57 }
  0xfc   :  { %v345_v60 = vpop.f32.mrf.mxu0 }
  0xfe   :  { %v142_v61 = vpop.f32.mrf.mxu0 }
 0x100   :  { %v346_v62 = vpop.f32.mrf.mxu0 }
 0x101   :  { %v164_v63 = vpack.c.bf16 %v346_v62, %v345_v60 }
 0x102   :  { %v145_v0 = vpop.f32.mrf.mxu0 }
 0x103   :  { %v163_v1 = vpack.c.bf16 %v145_v0, %v142_v61  ;;  %347 = vmatprep.subr.bf16.mxu1 %v164_v63 }
 0x104   :  { %348 = vmatpush3.bf16.msra.mxu1 %v164_v63 }
 0x105   :  { %349 = vmatprep.subr.bf16.mxu1 %v163_v1 }
 0x108   :  { %350 = vmatpush3.bf16.msra.mxu1 %v163_v1 }
 0x109   :  { %351 = vmatprep.subr.bf16.mxu1 %v162_v2 }
 0x10c   :  { %352 = vmatpush3.bf16.msra.mxu1 %v162_v2 }
 0x10d   :  { %353 = vmatprep.subr.bf16.mxu1 %v161_v3 }
 0x110   :  { %354 = vmatpush3.bf16.msra.mxu1 %v161_v3 }
 0x111   :  { %355 = vmatprep.subr.bf16.mxu1 %v160_v4 }
 0x114   :  { %356 = vmatpush3.bf16.msra.mxu1 %v160_v4 }
 0x115   :  { %357 = vmatprep.subr.bf16.mxu1 %v159_v5 }
 0x118   :  { %358 = vmatpush3.bf16.msra.mxu1 %v159_v5 }
 0x119   :  { %359 = vmatprep.subr.bf16.mxu1 %v158_v6 }
 0x11c   :  { %360 = vmatpush3.bf16.msra.mxu1 %v158_v6 }
 0x11d   :  { %361 = vmatprep.subr.bf16.mxu1 %v157_v7 }
 0x120   :  { %362 = vmatpush3.bf16.msra.mxu1 %v157_v7 }
 0x123   :  { %364 = vmatmul.mubr.bf16.vlgmr.msra.gmra.mxu1 %v460_v31 }
 0x124   :  { %367 = vmatprep.mubr.bf16.mxu1 %v462_v32 }
 0x12b   :  { %368 = vmatmul.mubr.bf16.gmra.mxu1 %v31_v37 }
 0x12c   :  { %371 = vmatprep.mubr.bf16.mxu1 %v32_v38 }
 0x133   :  { %372 = vmatmul.mubr.bf16.gmra.mxu1 %v33_v43 }
 0x134   :  { %375 = vmatprep.mubr.bf16.mxu1 %v34_v44 }
 0x13b   :  { %376 = vmatmul.mubr.bf16.gmra.mxu1 %v35_v47 }
 0x1e3   :  { %v365_v8 = vpop.f32.mrf.mxu1 }
 0x1e4   :  { %265 = vst.msk [vmem:[%s564_s2 + $0x10] sm:$0xff] %vm262_vm0, %v365_v8 }
 0x1e5   :  { %v199_v9 = vpop.f32.mrf.mxu1 }
 0x1e6   :  { %263 = vst.msk [vmem:[%s564_s2] sm:$0xff] %vm262_vm0, %v199_v9 }
 0x1e7   :  { %v366_v10 = vpop.f32.mrf.mxu1 }
 0x1e8   :  { %266 = vst.msk [vmem:[%s564_s2 + $0x18] sm:$0xff] %vm262_vm0, %v366_v10 }
 0x1e9   :  { %v202_v11 = vpop.f32.mrf.mxu1 }
 0x1ea   :  { %264 = vst.msk [vmem:[%s564_s2 + $0x8] sm:$0xff] %vm262_vm0, %v202_v11 }
 0x1eb   :  { %v369_v12 = vpop.f32.mrf.mxu1 }
 0x1ec   :  { %269 = vst.msk [vmem:[%s564_s2 + $0x30] sm:$0xff] %vm262_vm0, %v369_v12 }
 0x1ed   :  { %v215_v13 = vpop.f32.mrf.mxu1 }
 0x1ee   :  { %267 = vst.msk [vmem:[%s564_s2 + $0x20] sm:$0xff] %vm262_vm0, %v215_v13 }
 0x1ef   :  { %v370_v14 = vpop.f32.mrf.mxu1 }
 0x1f0   :  { %270 = vst.msk [vmem:[%s564_s2 + $0x38] sm:$0xff] %vm262_vm0, %v370_v14 }
 0x1f1   :  { %v218_v15 = vpop.f32.mrf.mxu1 }
 0x1f2   :  { %268 = vst.msk [vmem:[%s564_s2 + $0x28] sm:$0xff] %vm262_vm0, %v218_v15 }
 0x1f3   :  { %v373_v16 = vpop.f32.mrf.mxu1 }
 0x1f4   :  { %273 = vst.msk [vmem:[%s564_s2 + $0x50] sm:$0xff] %vm262_vm0, %v373_v16 }
 0x1f5   :  { %v231_v17 = vpop.f32.mrf.mxu1 }
 0x1f6   :  { %271 = vst.msk [vmem:[%s564_s2 + $0x40] sm:$0xff] %vm262_vm0, %v231_v17 }
 0x1f7   :  { %v374_v18 = vpop.f32.mrf.mxu1 }
 0x1f8   :  { %274 = vst.msk [vmem:[%s564_s2 + $0x58] sm:$0xff] %vm262_vm0, %v374_v18 }
 0x1f9   :  { %v234_v19 = vpop.f32.mrf.mxu1 }
 0x1fa   :  { %272 = vst.msk [vmem:[%s564_s2 + $0x48] sm:$0xff] %vm262_vm0, %v234_v19 }
 0x1fb   :  { %v377_v20 = vpop.f32.mrf.mxu1 }
 0x1fc   :  { %277 = vst.msk [vmem:[%s564_s2 + $0x70] sm:$0xff] %vm262_vm0, %v377_v20 }
 0x1fd   :  { %v247_v21 = vpop.f32.mrf.mxu1 }
 0x1fe   :  { %275 = vst.msk [vmem:[%s564_s2 + $0x60] sm:$0xff] %vm262_vm0, %v247_v21 }
 0x1ff   :  { %v378_v22 = vpop.f32.mrf.mxu1 }
 0x200   :  { %278 = vst.msk [vmem:[%s564_s2 + $0x78] sm:$0xff] %vm262_vm0, %v378_v22 }
 0x201   :  { %v250_v23 = vpop.f32.mrf.mxu1 }
 0x202   :  { %276 = vst.msk [vmem:[%s564_s2 + $0x68] sm:$0xff] %vm262_vm0, %v250_v23 }

// kernel: deformable_gcn_forward.6
= control target key start
LH: loop header
LB: loop body
LE: loop exit
PB: predicated region body
PF: predicated region fallthrough
CT: control target
= control target key end

     0   :  { %vm87_vm0 = vcmask 523264   ;;  %s523_s1 = inlined_call_operand.vmem [shape: f32[64,128], index: 1, kind: input, shape index: {}]   ;;  %s524_s0 = inlined_call_operand.vmem [shape: f32[128,64], index: 0, kind: input, shape index: {}]   ;;  %s525_s2 = inlined_call_operand.vmem [shape: f32[1,128], index: 2, kind: input, shape index: {}]   ;;  %s526_s3 = inlined_call_operand.vmem [shape: f32[128,128], index: 3, kind: output, shape index: {}]  }
   0x1   :  { %v81_v0 = vld [vmem:[%s523_s1 + $0x30] sm:$0xff]  ;;  %v82_v1 = vld [vmem:[%s523_s1 + $0x38] sm:$0xff]  ;;  %v79_v2 = vld [vmem:[%s523_s1 + $0x20] sm:$0xff] }
   0x2   :  { %v86_v3 = vpack.c.bf16 %v82_v1, %v81_v0  ;;  %v80_v4 = vld [vmem:[%s523_s1 + $0x28] sm:$0xff]  ;;  %v77_v6 = vld [vmem:[%s523_s1 + $0x10] sm:$0xff]  ;;  %v78_v7 = vld [vmem:[%s523_s1 + $0x18] sm:$0xff] }
   0x3   :  { %v85_v5 = vpack.c.bf16 %v80_v4, %v79_v2  ;;  %v51_v8 = vld [vmem:[%s524_s0] sm:$0xff]  ;;  %v52_v9 = vld [vmem:[%s524_s0 + $0x8] sm:$0xff]  ;;  %v84_v14 = vpack.c.bf16 %v78_v7, %v77_v6  ;;  %v53_v18 = vld [vmem:[%s524_s0 + $0x10] sm:$0xff] }
   0x4   :  { %340 = vmatprep.subr.bf16.mxu0 %v86_v3  ;;  %364 = vmatprep.subr.bf16.mxu1 %v86_v3  ;;  %v59_v10 = vld [vmem:[%s524_s0 + $0x40] sm:$0xff]  ;;  %v60_v11 = vld [vmem:[%s524_s0 + $0x48] sm:$0xff]  ;;  %v67_v12 = vpack.c.bf16 %v52_v9, %v51_v8  ;;  %v54_v19 = vld [vmem:[%s524_s0 + $0x18] sm:$0xff] }
   0x5   :  { %341 = vmatpush3.bf16.msra.mxu0 %v86_v3  ;;  %368 = vmatpush3.bf16.msra.mxu1 %v86_v3  ;;  %v71_v13 = vpack.c.bf16 %v60_v11, %v59_v10  ;;  %v75_v15 = vld [vmem:[%s523_s1] sm:$0xff]  ;;  %v76_v16 = vld [vmem:[%s523_s1 + $0x8] sm:$0xff]  ;;  %v61_v20 = vld [vmem:[%s524_s0 + $0x50] sm:$0xff]  ;;  %v68_v26 = vpack.c.bf16 %v54_v19, %v53_v18 }
   0x6   :  { %342 = vmatprep.subr.bf16.mxu0 %v85_v5  ;;  %365 = vmatprep.subr.bf16.mxu1 %v85_v5  ;;  %v83_v17 = vpack.c.bf16 %v76_v16, %v75_v15  ;;  %v62_v21 = vld [vmem:[%s524_s0 + $0x58] sm:$0xff]  ;;  %v55_v22 = vld [vmem:[%s524_s0 + $0x20] sm:$0xff]  ;;  %v56_v23 = vld [vmem:[%s524_s0 + $0x28] sm:$0xff] }
   0x7   :  { %348 = vmatprep.mubr.msk.bf16.mxu0 %vm87_vm0, %v67_v12  ;;  %356 = vmatprep.mubr.msk.bf16.mxu1 %vm87_vm0, %v71_v13  ;;  %v63_v24 = vld [vmem:[%s524_s0 + $0x60] sm:$0xff]  ;;  %v64_v25 = vld [vmem:[%s524_s0 + $0x68] sm:$0xff]  ;;  %v72_v27 = vpack.c.bf16 %v62_v21, %v61_v20  ;;  %v69_v28 = vpack.c.bf16 %v56_v23, %v55_v22  ;;  %v57_v30 = vld [vmem:[%s524_s0 + $0x30] sm:$0xff] }
   0x8   :  { %v73_v29 = vpack.c.bf16 %v64_v25, %v63_v24  ;;  %v58_v31 = vld [vmem:[%s524_s0 + $0x38] sm:$0xff]  ;;  %v65_v32 = vld [vmem:[%s524_s0 + $0x70] sm:$0xff]  ;;  %v327_v36 = vld [vmem:[%s525_s2] ss:$0 sm:$0xff] }
   0x9   :  { %343 = vmatpush3.bf16.msra.mxu0 %v85_v5  ;;  %369 = vmatpush3.bf16.msra.mxu1 %v85_v5  ;;  %v66_v33 = vld [vmem:[%s524_s0 + $0x78] sm:$0xff]  ;;  %v70_v34 = vpack.c.bf16 %v58_v31, %v57_v30 }
   0xa   :  { %344 = vmatprep.subr.bf16.mxu0 %v84_v14  ;;  %366 = vmatprep.subr.bf16.mxu1 %v84_v14  ;;  %v74_v35 = vpack.c.bf16 %v66_v33, %v65_v32 }
   0xd   :  { %345 = vmatpush3.bf16.msra.mxu0 %v84_v14  ;;  %370 = vmatpush3.bf16.msra.mxu1 %v84_v14 }
   0xe   :  { %346 = vmatprep.subr.bf16.mxu0 %v83_v17  ;;  %367 = vmatprep.subr.bf16.mxu1 %v83_v17 }
  0x11   :  { %347 = vmatpush3.bf16.msra.mxu0 %v83_v17  ;;  %371 = vmatpush3.bf16.msra.mxu1 %v83_v17 }
  0x14   :  { %349 = vmatmul.mubr.msk.bf16.vlgmr.msra.gmra.mxu0 %vm87_vm0, %v68_v26  ;;  %357 = vmatmul.mubr.msk.bf16.vlgmr.msra.gmra.mxu1 %vm87_vm0, %v72_v27 }
  0x15   :  { %352 = vmatprep.mubr.msk.bf16.mxu0 %vm87_vm0, %v69_v28  ;;  %360 = vmatprep.mubr.msk.bf16.mxu1 %vm87_vm0, %v73_v29 }
  0x1c   :  { %353 = vmatmul.mubr.msk.bf16.gmra.mxu0 %vm87_vm0, %v70_v34  ;;  %361 = vmatmul.mubr.msk.bf16.gmra.mxu1 %vm87_vm0, %v74_v35 }
  0xd4   :  { %v350_v37 = vpop.f32.mrf.mxu0  ;;  %v358_v38 = vpop.f32.mrf.mxu1 }
  0xd5   :  { %v269_v39 = vadd.f32 %v350_v37, %v327_v36  ;;  %v277_v40 = vadd.f32 %v358_v38, %v327_v36 }
  0xd6   :  { %v146_v41 = vpop.f32.mrf.mxu0  ;;  %v178_v42 = vpop.f32.mrf.mxu1 }
  0xd7   :  { %v285_v43 = vmax.f32 %v269_v39, 0.0  ;;  %v293_v44 = vmax.f32 %v277_v40, 0.0  ;;  %v267_v45 = vadd.f32 %v327_v36, %v146_v41  ;;  %v275_v46 = vadd.f32 %v327_v36, %v178_v42 }
  0xd8   :  { %v351_v47 = vpop.f32.mrf.mxu0  ;;  %v359_v48 = vpop.f32.mrf.mxu1 }
  0xd9   :  { %301 = vst [vmem:[%s526_s3 + $0x10] sm:$0xff] %v285_v43  ;;  %309 = vst [vmem:[%s526_s3 + $0x50] sm:$0xff] %v293_v44  ;;  %v283_v49 = vmax.f32 %v267_v45, 0.0  ;;  %v291_v50 = vmax.f32 %v275_v46, 0.0  ;;  %v270_v51 = vadd.f32 %v351_v47, %v327_v36  ;;  %v278_v52 = vadd.f32 %v359_v48, %v327_v36 }
  0xda   :  { %v149_v53 = vpop.f32.mrf.mxu0  ;;  %v181_v54 = vpop.f32.mrf.mxu1 }
  0xdb   :  { %299 = vst [vmem:[%s526_s3] sm:$0xff] %v283_v49  ;;  %307 = vst [vmem:[%s526_s3 + $0x40] sm:$0xff] %v291_v50  ;;  %v286_v55 = vmax.f32 %v270_v51, 0.0  ;;  %v294_v56 = vmax.f32 %v278_v52, 0.0  ;;  %v268_v57 = vadd.f32 %v327_v36, %v149_v53  ;;  %v276_v58 = vadd.f32 %v327_v36, %v181_v54 }
  0xdc   :  { %v354_v59 = vpop.f32.mrf.mxu0  ;;  %v362_v60 = vpop.f32.mrf.mxu1 }
  0xdd   :  { %302 = vst [vmem:[%s526_s3 + $0x18] sm:$0xff] %v286_v55  ;;  %310 = vst [vmem:[%s526_s3 + $0x58] sm:$0xff] %v294_v56  ;;  %v284_v61 = vmax.f32 %v268_v57, 0.0  ;;  %v292_v62 = vmax.f32 %v276_v58, 0.0  ;;  %v273_v63 = vadd.f32 %v354_v59, %v327_v36  ;;  %v281_v0 = vadd.f32 %v362_v60, %v327_v36 }
  0xde   :  { %v162_v1 = vpop.f32.mrf.mxu0  ;;  %v194_v2 = vpop.f32.mrf.mxu1 }
  0xdf   :  { %300 = vst [vmem:[%s526_s3 + $0x8] sm:$0xff] %v284_v61  ;;  %308 = vst [vmem:[%s526_s3 + $0x48] sm:$0xff] %v292_v62  ;;  %v289_v3 = vmax.f32 %v273_v63, 0.0  ;;  %v297_v4 = vmax.f32 %v281_v0, 0.0  ;;  %v271_v5 = vadd.f32 %v327_v36, %v162_v1  ;;  %v279_v6 = vadd.f32 %v327_v36, %v194_v2 }
  0xe0   :  { %v355_v7 = vpop.f32.mrf.mxu0  ;;  %v363_v8 = vpop.f32.mrf.mxu1 }
  0xe1   :  { %305 = vst [vmem:[%s526_s3 + $0x30] sm:$0xff] %v289_v3  ;;  %313 = vst [vmem:[%s526_s3 + $0x70] sm:$0xff] %v297_v4  ;;  %v287_v9 = vmax.f32 %v271_v5, 0.0  ;;  %v295_v10 = vmax.f32 %v279_v6, 0.0  ;;  %v274_v11 = vadd.f32 %v355_v7, %v327_v36  ;;  %v282_v12 = vadd.f32 %v363_v8, %v327_v36 }
  0xe2   :  { %v165_v13 = vpop.f32.mrf.mxu0  ;;  %v197_v14 = vpop.f32.mrf.mxu1 }
  0xe3   :  { %303 = vst [vmem:[%s526_s3 + $0x20] sm:$0xff] %v287_v9  ;;  %311 = vst [vmem:[%s526_s3 + $0x60] sm:$0xff] %v295_v10  ;;  %v290_v15 = vmax.f32 %v274_v11, 0.0  ;;  %v298_v16 = vmax.f32 %v282_v12, 0.0  ;;  %v272_v17 = vadd.f32 %v327_v36, %v165_v13  ;;  %v280_v18 = vadd.f32 %v327_v36, %v197_v14 }
  0xe5   :  { %306 = vst [vmem:[%s526_s3 + $0x38] sm:$0xff] %v290_v15  ;;  %314 = vst [vmem:[%s526_s3 + $0x78] sm:$0xff] %v298_v16  ;;  %v288_v19 = vmax.f32 %v272_v17, 0.0  ;;  %v296_v20 = vmax.f32 %v280_v18, 0.0 }
  0xe7   :  { %304 = vst [vmem:[%s526_s3 + $0x28] sm:$0xff] %v288_v19  ;;  %312 = vst [vmem:[%s526_s3 + $0x68] sm:$0xff] %v296_v20 }

// kernel: deformable_gcn_forward.9
= control target key start
LH: loop header
LB: loop body
LE: loop exit
PB: predicated region body
PF: predicated region fallthrough
CT: control target
= control target key end

     0   :  { %vm24_vm0 = vcmask 64512   ;;  %s543_s0 = inlined_call_operand.vmem [shape: f32[128,8], index: 0, kind: input, shape index: {}]   ;;  %s544_s1 = inlined_call_operand.vmem [shape: f32[128,8], index: 1, kind: output, shape index: {}]  }
   0x1   :  { %v8_v0 = vld [vmem:[%s543_s0] sm:$0xff]  ;;  %v10_v1 = vld [vmem:[%s543_s0 + $0x10] sm:$0xff]  ;;  %v9_v2 = vld [vmem:[%s543_s0 + $0x8] sm:$0xff] }
   0x2   :  { %v25_v3 = vsel %vm24_vm0, %v8_v0, -inf  ;;  %v31_v4 = vsel %vm24_vm0, %v10_v1, -inf  ;;  %v11_v5 = vld [vmem:[%s543_s0 + $0x18] sm:$0xff]  ;;  %v28_v6 = vsel %vm24_vm0, %v9_v2, -inf  ;;  %v12_v8 = vld [vmem:[%s543_s0 + $0x20] sm:$0xff]  ;;  %v13_v9 = vld [vmem:[%s543_s0 + $0x28] sm:$0xff] }
   0x3   :  { %26 = vmax.xlane.f32.xlu0 %v25_v3  ;;  %32 = vmax.xlane.f32.xlu1 %v31_v4  ;;  %v34_v7 = vsel %vm24_vm0, %v11_v5, -inf  ;;  %v37_v10 = vsel %vm24_vm0, %v12_v8, -inf  ;;  %v40_v11 = vsel %vm24_vm0, %v13_v9, -inf  ;;  %v14_v12 = vld [vmem:[%s543_s0 + $0x30] sm:$0xff]  ;;  %v15_v13 = vld [vmem:[%s543_s0 + $0x38] sm:$0xff]  ;;  %v16_v16 = vld [vmem:[%s543_s0 + $0x40] sm:$0xff] }
   0x4   :  { %v43_v14 = vsel %vm24_vm0, %v14_v12, -inf  ;;  %v46_v15 = vsel %vm24_vm0, %v15_v13, -inf  ;;  %v17_v17 = vld [vmem:[%s543_s0 + $0x48] sm:$0xff]  ;;  %v49_v18 = vsel %vm24_vm0, %v16_v16, -inf  ;;  %v354_v20 = vld [vmem:[%s543_s0 + $0x50] sm:$0xff]  ;;  %v359_v21 = vld [vmem:[%s543_s0 + $0x58] sm:$0xff] }
   0x5   :  { %v52_v19 = vsel %vm24_vm0, %v17_v17, -inf  ;;  %v55_v22 = vsel %vm24_vm0, %v354_v20, -inf  ;;  %v58_v23 = vsel %vm24_vm0, %v359_v21, -inf  ;;  %v368_v24 = vld [vmem:[%s543_s0 + $0x60] sm:$0xff]  ;;  %v373_v25 = vld [vmem:[%s543_s0 + $0x68] sm:$0xff]  ;;  %v382_v28 = vld [vmem:[%s543_s0 + $0x70] sm:$0xff] }
   0x6   :  { %v61_v26 = vsel %vm24_vm0, %v368_v24, -inf  ;;  %v64_v27 = vsel %vm24_vm0, %v373_v25, -inf  ;;  %v387_v29 = vld [vmem:[%s543_s0 + $0x78] sm:$0xff]  ;;  %v67_v30 = vsel %vm24_vm0, %v382_v28, -inf }
   0x7   :  { %29 = vmax.xlane.f32.xlu0 %v28_v6  ;;  %35 = vmax.xlane.f32.xlu1 %v34_v7  ;;  %v70_v31 = vsel %vm24_vm0, %v387_v29, -inf }
   0xb   :  { %38 = vmax.xlane.f32.xlu0 %v37_v10  ;;  %41 = vmax.xlane.f32.xlu1 %v40_v11 }
   0xf   :  { %44 = vmax.xlane.f32.xlu0 %v43_v14  ;;  %47 = vmax.xlane.f32.xlu1 %v46_v15 }
  0x13   :  { %50 = vmax.xlane.f32.xlu0 %v49_v18  ;;  %53 = vmax.xlane.f32.xlu1 %v52_v19 }
  0x17   :  { %56 = vmax.xlane.f32.xlu0 %v55_v22  ;;  %59 = vmax.xlane.f32.xlu1 %v58_v23 }
  0x1b   :  { %62 = vmax.xlane.f32.xlu0 %v61_v26  ;;  %65 = vmax.xlane.f32.xlu1 %v64_v27 }
  0x1f   :  { %68 = vmax.xlane.f32.xlu0 %v67_v30  ;;  %71 = vmax.xlane.f32.xlu1 %v70_v31 }
  0x8c   :  { %v27_v32 = vpop.xlane.xlu0 %26  ;;  %v33_v33 = vpop.xlane.xlu1 %32 }
  0x8d   :  { %v393_v34 = vsub.f32 %v8_v0, %v27_v32  ;;  %v395_v35 = vsub.f32 %v10_v1, %v33_v33 }
  0x8f   :  { %v89_v36 = vmul.f32 1.442695, %v393_v34  ;;  %v93_v37 = vmul.f32 1.442695, %v395_v35 }
  0x90   :  { %v30_v38 = vpop.xlane.xlu0 %29  ;;  %v36_v39 = vpop.xlane.xlu1 %35 }
  0x91   :  { %237 = vpow2.f32 %v89_v36  ;;  %v399_v40 = vsub.f32 %v9_v2, %v30_v38  ;;  %v401_v41 = vsub.f32 %v11_v5, %v36_v39 }
  0x92   :  { %239 = vpow2.f32 %v93_v37 }
  0x93   :  { %v91_v42 = vmul.f32 1.442695, %v399_v40  ;;  %v95_v43 = vmul.f32 1.442695, %v401_v41 }
  0x94   :  { %v39_v44 = vpop.xlane.xlu0 %38  ;;  %v42_v45 = vpop.xlane.xlu1 %41 }
  0x95   :  { %241 = vpow2.f32 %v91_v42  ;;  %v405_v46 = vsub.f32 %v12_v8, %v39_v44  ;;  %v407_v47 = vsub.f32 %v13_v9, %v42_v45 }
  0x96   :  { %243 = vpow2.f32 %v95_v43 }
  0x97   :  { %v97_v48 = vmul.f32 1.442695, %v405_v46  ;;  %v99_v49 = vmul.f32 1.442695, %v407_v47 }
  0x98   :  { %v45_v50 = vpop.xlane.xlu0 %44  ;;  %v48_v51 = vpop.xlane.xlu1 %47 }
  0x99   :  { %245 = vpow2.f32 %v97_v48  ;;  %v411_v52 = vsub.f32 %v14_v12, %v45_v50  ;;  %v413_v53 = vsub.f32 %v15_v13, %v48_v51 }
  0x9a   :  { %247 = vpow2.f32 %v99_v49 }
  0x9b   :  { %v101_v54 = vmul.f32 1.442695, %v411_v52  ;;  %v103_v55 = vmul.f32 1.442695, %v413_v53 }
  0x9c   :  { %v51_v56 = vpop.xlane.xlu0 %50  ;;  %v54_v57 = vpop.xlane.xlu1 %53 }
  0x9d   :  { %249 = vpow2.f32 %v101_v54  ;;  %v417_v58 = vsub.f32 %v16_v16, %v51_v56  ;;  %v419_v59 = vsub.f32 %v17_v17, %v54_v57 }
  0x9e   :  { %v238_v60 = vpop.eup %237  ;;  %251 = vpow2.f32 %v103_v55 }
  0x9f   :  { %v240_v61 = vpop.eup %239  ;;  %v105_v62 = vmul.f32 1.442695, %v417_v58  ;;  %v107_v63 = vmul.f32 1.442695, %v419_v59  ;;  %v121_v0 = vsel %vm24_vm0, %v238_v60, 0.0 }
  0xa0   :  { %122 = vadd.xlane.f32.xlu0 %v121_v0  ;;  %v57_v1 = vpop.xlane.xlu0 %56  ;;  %v60_v2 = vpop.xlane.xlu1 %59  ;;  %v127_v5 = vsel %vm24_vm0, %v240_v61, 0.0 }
  0xa1   :  { %253 = vpow2.f32 %v105_v62  ;;  %v425_v3 = vsub.f32 %v354_v20, %v57_v1  ;;  %v428_v4 = vsub.f32 %v359_v21, %v60_v2 }
  0xa2   :  { %v242_v6 = vpop.eup %241  ;;  %255 = vpow2.f32 %v107_v63 }
  0xa3   :  { %v244_v7 = vpop.eup %243  ;;  %v109_v8 = vmul.f32 1.442695, %v425_v3  ;;  %v111_v9 = vmul.f32 1.442695, %v428_v4  ;;  %v124_v10 = vsel %vm24_vm0, %v242_v6, 0.0 }
  0xa4   :  { %128 = vadd.xlane.f32.xlu0 %v127_v5  ;;  %125 = vadd.xlane.f32.xlu1 %v124_v10  ;;  %v63_v11 = vpop.xlane.xlu0 %62  ;;  %v66_v12 = vpop.xlane.xlu1 %65  ;;  %v130_v15 = vsel %vm24_vm0, %v244_v7, 0.0 }
  0xa5   :  { %257 = vpow2.f32 %v109_v8  ;;  %v435_v13 = vsub.f32 %v368_v24, %v63_v11  ;;  %v438_v14 = vsub.f32 %v373_v25, %v66_v12 }
  0xa6   :  { %v246_v16 = vpop.eup %245  ;;  %259 = vpow2.f32 %v111_v9 }
  0xa7   :  { %v248_v17 = vpop.eup %247  ;;  %v113_v18 = vmul.f32 1.442695, %v435_v13  ;;  %v115_v19 = vmul.f32 1.442695, %v438_v14  ;;  %v133_v20 = vsel %vm24_vm0, %v246_v16, 0.0 }
  0xa8   :  { %131 = vadd.xlane.f32.xlu1 %v130_v15  ;;  %134 = vadd.xlane.f32.xlu0 %v133_v20  ;;  %v69_v21 = vpop.xlane.xlu0 %68  ;;  %v72_v22 = vpop.xlane.xlu1 %71  ;;  %v136_v25 = vsel %vm24_vm0, %v248_v17, 0.0 }
  0xa9   :  { %261 = vpow2.f32 %v113_v18  ;;  %v445_v23 = vsub.f32 %v382_v28, %v69_v21  ;;  %v448_v24 = vsub.f32 %v387_v29, %v72_v22 }
  0xaa   :  { %v250_v26 = vpop.eup %249  ;;  %263 = vpow2.f32 %v115_v19 }
  0xab   :  { %v252_v27 = vpop.eup %251  ;;  %v117_v30 = vmul.f32 1.442695, %v445_v23  ;;  %v119_v31 = vmul.f32 1.442695, %v448_v24  ;;  %v139_v32 = vsel %vm24_vm0, %v250_v26, 0.0 }
  0xac   :  { %137 = vadd.xlane.f32.xlu1 %v136_v25  ;;  %140 = vadd.xlane.f32.xlu0 %v139_v32  ;;  %v142_v28 = vsel %vm24_vm0, %v252_v27, 0.0 }
  0xad   :  { %265 = vpow2.f32 %v117_v30 }
  0xae   :  { %v254_v33 = vpop.eup %253  ;;  %267 = vpow2.f32 %v119_v31 }
  0xaf   :  { %v256_v29 = vpop.eup %255  ;;  %v145_v36 = vsel %vm24_vm0, %v254_v33, 0.0 }
  0xb0   :  { %143 = vadd.xlane.f32.xlu1 %v142_v28  ;;  %146 = vadd.xlane.f32.xlu0 %v145_v36  ;;  %v148_v37 = vsel %vm24_vm0, %v256_v29, 0.0 }
  0xb2   :  { %v258_v38 = vpop.eup %257 }
  0xb3   :  { %v260_v39 = vpop.eup %259  ;;  %v151_v42 = vsel %vm24_vm0, %v258_v38, 0.0 }
  0xb4   :  { %149 = vadd.xlane.f32.xlu1 %v148_v37  ;;  %152 = vadd.xlane.f32.xlu0 %v151_v42  ;;  %v154_v43 = vsel %vm24_vm0, %v260_v39, 0.0 }
  0xb6   :  { %v262_v44 = vpop.eup %261 }
  0xb7   :  { %v264_v45 = vpop.eup %263  ;;  %v157_v48 = vsel %vm24_vm0, %v262_v44, 0.0 }
  0xb8   :  { %155 = vadd.xlane.f32.xlu1 %v154_v43  ;;  %158 = vadd.xlane.f32.xlu0 %v157_v48  ;;  %v160_v49 = vsel %vm24_vm0, %v264_v45, 0.0 }
  0xba   :  { %v266_v50 = vpop.eup %265 }
  0xbb   :  { %v268_v51 = vpop.eup %267  ;;  %v163_v54 = vsel %vm24_vm0, %v266_v50, 0.0 }
  0xbc   :  { %161 = vadd.xlane.f32.xlu1 %v160_v49  ;;  %164 = vadd.xlane.f32.xlu0 %v163_v54  ;;  %v166_v55 = vsel %vm24_vm0, %v268_v51, 0.0 }
  0xc0   :  { %167 = vadd.xlane.f32.xlu1 %v166_v55 }
 0x129   :  { %v123_v56 = vpop.xlane.xlu0 %122 }
 0x12a   :  { %269 = vlog2.f32 %v123_v56 }
 0x12d   :  { %v126_v57 = vpop.xlane.xlu1 %125  ;;  %v129_v60 = vpop.xlane.xlu0 %128 }
 0x12e   :  { %271 = vlog2.f32 %v126_v57 }
 0x12f   :  { %273 = vlog2.f32 %v129_v60 }
 0x131   :  { %v132_v61 = vpop.xlane.xlu1 %131  ;;  %v135_v62 = vpop.xlane.xlu0 %134 }
 0x132   :  { %275 = vlog2.f32 %v132_v61 }
 0x133   :  { %277 = vlog2.f32 %v135_v62 }
 0x135   :  { %v138_v63 = vpop.xlane.xlu1 %137  ;;  %v141_v0 = vpop.xlane.xlu0 %140 }
 0x136   :  { %279 = vlog2.f32 %v138_v63 }
 0x137   :  { %v270_v1 = vpop.eup %269  ;;  %281 = vlog2.f32 %v141_v0 }
 0x138   :  { %v170_v2 = vmul.f32 0.6931472, %v270_v1 }
 0x139   :  { %v144_v5 = vpop.xlane.xlu1 %143  ;;  %v147_v6 = vpop.xlane.xlu0 %146 }
 0x13a   :  { %v201_v7 = vsub.f32 %v393_v34, %v170_v2  ;;  %283 = vlog2.f32 %v144_v5 }
 0x13b   :  { %v272_v8 = vpop.eup %271  ;;  %285 = vlog2.f32 %v147_v6 }
 0x13c   :  { %v274_v9 = vpop.eup %273  ;;  %217 = vst.msk [vmem:[%s544_s1] sm:$0xff] %vm24_vm0, %v201_v7  ;;  %v172_v10 = vmul.f32 0.6931472, %v272_v8 }
 0x13d   :  { %v174_v11 = vmul.f32 0.6931472, %v274_v9  ;;  %v150_v12 = vpop.xlane.xlu1 %149  ;;  %v153_v15 = vpop.xlane.xlu0 %152 }
 0x13e   :  { %v202_v16 = vsub.f32 %v399_v40, %v172_v10  ;;  %287 = vlog2.f32 %v150_v12 }
 0x13f   :  { %v276_v17 = vpop.eup %275  ;;  %v203_v18 = vsub.f32 %v395_v35, %v174_v11  ;;  %289 = vlog2.f32 %v153_v15 }
 0x140   :  { %v278_v34 = vpop.eup %277  ;;  %218 = vst.msk [vmem:[%s544_s1 + $0x8] sm:$0xff] %vm24_vm0, %v202_v16  ;;  %v176_v19 = vmul.f32 0.6931472, %v276_v17 }
 0x141   :  { %219 = vst.msk [vmem:[%s544_s1 + $0x10] sm:$0xff] %vm24_vm0, %v203_v18  ;;  %v178_v20 = vmul.f32 0.6931472, %v278_v34  ;;  %v156_v21 = vpop.xlane.xlu1 %155  ;;  %v159_v40 = vpop.xlane.xlu0 %158 }
 0x142   :  { %v204_v22 = vsub.f32 %v401_v41, %v176_v19  ;;  %291 = vlog2.f32 %v156_v21 }
 0x143   :  { %v280_v35 = vpop.eup %279  ;;  %v205_v25 = vsub.f32 %v405_v46, %v178_v20  ;;  %293 = vlog2.f32 %v159_v40 }
 0x144   :  { %v282_v26 = vpop.eup %281  ;;  %220 = vst.msk [vmem:[%s544_s1 + $0x18] sm:$0xff] %vm24_vm0, %v204_v22  ;;  %v180_v27 = vmul.f32 0.6931472, %v280_v35 }
 0x145   :  { %221 = vst.msk [vmem:[%s544_s1 + $0x20] sm:$0xff] %vm24_vm0, %v205_v25  ;;  %v182_v30 = vmul.f32 0.6931472, %v282_v26  ;;  %v162_v31 = vpop.xlane.xlu1 %161  ;;  %v165_v41 = vpop.xlane.xlu0 %164 }
 0x146   :  { %v206_v32 = vsub.f32 %v407_v47, %v180_v27  ;;  %295 = vlog2.f32 %v162_v31 }
 0x147   :  { %v284_v46 = vpop.eup %283  ;;  %v207_v28 = vsub.f32 %v411_v52, %v182_v30  ;;  %297 = vlog2.f32 %v165_v41 }
 0x148   :  { %v286_v33 = vpop.eup %285  ;;  %222 = vst.msk [vmem:[%s544_s1 + $0x28] sm:$0xff] %vm24_vm0, %v206_v32  ;;  %v184_v29 = vmul.f32 0.6931472, %v284_v46 }
 0x149   :  { %223 = vst.msk [vmem:[%s544_s1 + $0x30] sm:$0xff] %vm24_vm0, %v207_v28  ;;  %v186_v36 = vmul.f32 0.6931472, %v286_v33  ;;  %v168_v37 = vpop.xlane.xlu1 %167 }
 0x14a   :  { %v208_v47 = vsub.f32 %v413_v53, %v184_v29  ;;  %299 = vlog2.f32 %v168_v37 }
 0x14b   :  { %v288_v38 = vpop.eup %287  ;;  %v209_v52 = vsub.f32 %v417_v58, %v186_v36 }
 0x14c   :  { %v290_v39 = vpop.eup %289  ;;  %224 = vst.msk [vmem:[%s544_s1 + $0x38] sm:$0xff] %vm24_vm0, %v208_v47  ;;  %v188_v42 = vmul.f32 0.6931472, %v288_v38 }
 0x14d   :  { %225 = vst.msk [vmem:[%s544_s1 + $0x40] sm:$0xff] %vm24_vm0, %v209_v52  ;;  %v190_v43 = vmul.f32 0.6931472, %v290_v39 }
 0x14e   :  { %v210_v44 = vsub.f32 %v419_v59, %v188_v42 }
 0x14f   :  { %v292_v53 = vpop.eup %291  ;;  %v211_v45 = vsub.f32 %v425_v3, %v190_v43 }
 0x150   :  { %v294_v48 = vpop.eup %293  ;;  %226 = vst.msk [vmem:[%s544_s1 + $0x48] sm:$0xff] %vm24_vm0, %v210_v44  ;;  %v192_v58 = vmul.f32 0.6931472, %v292_v53 }
 0x151   :  { %227 = vst.msk [vmem:[%s544_s1 + $0x50] sm:$0xff] %vm24_vm0, %v211_v45  ;;  %v194_v49 = vmul.f32 0.6931472, %v294_v48 }
 0x152   :  { %v212_v50 = vsub.f32 %v428_v4, %v192_v58 }
 0x153   :  { %v296_v51 = vpop.eup %295  ;;  %v213_v59 = vsub.f32 %v435_v13, %v194_v49 }
 0x154   :  { %v298_v54 = vpop.eup %297  ;;  %228 = vst.msk [vmem:[%s544_s1 + $0x58] sm:$0xff] %vm24_vm0, %v212_v50  ;;  %v196_v3 = vmul.f32 0.6931472, %v296_v51 }
 0x155   :  { %229 = vst.msk [vmem:[%s544_s1 + $0x60] sm:$0xff] %vm24_vm0, %v213_v59  ;;  %v198_v55 = vmul.f32 0.6931472, %v298_v54 }
 0x156   :  { %v214_v56 = vsub.f32 %v438_v14, %v196_v3 }
 0x157   :  { %v300_v57 = vpop.eup %299  ;;  %v215_v4 = vsub.f32 %v445_v23, %v198_v55 }
 0x158   :  { %230 = vst.msk [vmem:[%s544_s1 + $0x68] sm:$0xff] %vm24_vm0, %v214_v56  ;;  %v200_v13 = vmul.f32 0.6931472, %v300_v57 }
 0x159   :  { %231 = vst.msk [vmem:[%s544_s1 + $0x70] sm:$0xff] %vm24_vm0, %v215_v4 }
 0x15a   :  { %v216_v60 = vsub.f32 %v448_v24, %v200_v13 }
 0x15c   :  { %232 = vst.msk [vmem:[%s544_s1 + $0x78] sm:$0xff] %vm24_vm0, %v216_v60 }

// kernel: deformable_gcn_forward.7
= control target key start
LH: loop header
LB: loop body
LE: loop exit
PB: predicated region body
PF: predicated region fallthrough
CT: control target
= control target key end

     0   :  { %15 = vsyncpa [#allocation7], 0  ;;  %s2529_s30 = smov 0   ;;  %s3365_s0 = inlined_call_operand.vmem [shape: f32[128,64], index: 0, kind: input, shape index: {}]   ;;  %s3366_s1 = inlined_call_operand.vmem [shape: f32[64,16], index: 1, kind: input, shape index: {}]   ;;  %s3367_s2 = inlined_call_operand.vmem [shape: f32[1,16], index: 2, kind: input, shape index: {}]   ;;  %s3368_s3 = inlined_call_operand.vmem [shape: f32[4,1,16], index: 3, kind: input, shape index: {}]   ;;  %s3369_s4 = inlined_call_operand.vmem [shape: f32[128,128], index: 4, kind: input, shape index: {}]   ;;  %s3370_s5 = inlined_call_operand.vmem [shape: f32[128,128], index: 5, kind: input, shape index: {}]   ;;  %s3371_s6 = inlined_call_operand.vmem [shape: f32[4,128,128], index: 6, kind: input, shape index: {}]   ;;  %s3372_s7 = inlined_call_operand.vmem [shape: f32[1,128], index: 7, kind: input, shape index: {}]   ;;  %s3373_s8 = inlined_call_operand.vmem [shape: f32[128,128], index: 8, kind: output, shape index: {0}]   ;;  %s3374_s9 = inlined_call_operand.hbm [shape: f32[1,1], index: 9, kind: output, shape index: {1}]  }
   0x1 LB: > { %s2535_s10 = sadd.s32 4294967295, %s2474_s30   ;;  %p2081_p0 = scmp.ge.s32.totalorder %s2474_s30, 1  ;;  %s2474_s30 = sphi %s2529_s30, %s21_s30  }
   0x2   : > { %p289_p1 = scmp.lt.s32.totalorder %s2474_s30, 5 }
   0x4   : > { %p290_p2 = pnand %p2081_p0, %p289_p1 }
   0x5   : > { %p323_p3 = scmp.lt.s32.totalorder (!%p290_p2), %s2535_s10, 3  ;;  %p2084_p4 = scmp.ne.s32.totalorder (!%p290_p2), %s2535_s10, 0 }
   0x6   : > { %293 = sbr.rel (%p290_p2) target bundleno = 1659 (0x67b), region = 52 }
   0xb   : > { %s2541_s11 = scalar_select %p323_p3, %s2535_s10, 3 }
   0xc   : > { %335 = sbr.rel (%p2084_p4) target bundleno = 541 (0x21d), region = 56 }
   0xd   : > { %s325_s14 = scalar_lea.vmem %s3368_s3, %s2541_s11  ;;  %s2110_s15 = sshll.u32 %s2541_s11, 7 }
   0xe   : > { %s2551_s18 = scalar_lea.vmem %s3371_s6, %s2110_s15 }
  0x11   : > { %v366_v0 = vld [vmem:[%s3366_s1 + $0x30] sm:$0xff]  ;;  %v367_v1 = vld [vmem:[%s3366_s1 + $0x38] sm:$0xff]  ;;  %v364_v2 = vld [vmem:[%s3366_s1 + $0x20] sm:$0xff]  ;;  %vm379_vm0 = vcmask 523264   ;;  %vm501_vm1 = vcmask 130048   ;;  %vm754_vm2 = vcmask 130112  }
  0x12   : > { %v371_v3 = vpack.c.bf16 %v367_v1, %v366_v0  ;;  %v365_v4 = vld [vmem:[%s3366_s1 + $0x28] sm:$0xff]  ;;  %v362_v6 = vld [vmem:[%s3366_s1 + $0x10] sm:$0xff]  ;;  %v363_v7 = vld [vmem:[%s3366_s1 + $0x18] sm:$0xff]  ;;  %vm761_vm3 = vcmask 195712   ;;  %vm768_vm4 = vcmask 261312   ;;  %vm775_vm5 = vcmask 326912  }
  0x13   : > { %v370_v5 = vpack.c.bf16 %v365_v4, %v364_v2  ;;  %v336_v8 = vld [vmem:[%s3365_s0] sm:$0xff]  ;;  %v337_v9 = vld [vmem:[%s3365_s0 + $0x8] sm:$0xff]  ;;  %v369_v11 = vpack.c.bf16 %v363_v7, %v362_v6  ;;  %v338_v15 = vld [vmem:[%s3365_s0 + $0x10] sm:$0xff]  ;;  %vm782_vm6 = vcmask 392512   ;;  %vm789_vm7 = vcmask 458112  }
  0x14   : > { %2171 = vmatprep.subr.bf16.mxu0 %v371_v3  ;;  %v352_v10 = vpack.c.bf16 %v337_v9, %v336_v8  ;;  %v360_v12 = vld [vmem:[%s3366_s1] sm:$0xff]  ;;  %v361_v13 = vld [vmem:[%s3366_s1 + $0x8] sm:$0xff]  ;;  %v339_v16 = vld [vmem:[%s3365_s0 + $0x18] sm:$0xff]  ;;  %vm796_vm8 = vcmask 523712   ;;  %vm803_vm9 = vcmask 589312   ;;  %vm810_vm10 = vcmask 654912  }
  0x15   : > { %2172 = vmatpush3.bf16.msra.mxu0 %v371_v3  ;;  %v368_v14 = vpack.c.bf16 %v361_v13, %v360_v12  ;;  %v340_v17 = vld [vmem:[%s3365_s0 + $0x20] sm:$0xff]  ;;  %v341_v18 = vld [vmem:[%s3365_s0 + $0x28] sm:$0xff]  ;;  %v353_v19 = vpack.c.bf16 %v339_v16, %v338_v15  ;;  %v342_v21 = vld [vmem:[%s3365_s0 + $0x30] sm:$0xff]  ;;  %vm817_vm11 = vcmask 720512   ;;  %vm824_vm12 = vcmask 786112  }
  0x16   : > { %2173 = vmatprep.subr.bf16.mxu0 %v370_v5  ;;  %2179 = vmatprep.mubr.msk.bf16.mxu0 %vm379_vm0, %v352_v10  ;;  %v354_v20 = vpack.c.bf16 %v341_v18, %v340_v17  ;;  %v343_v22 = vld [vmem:[%s3365_s0 + $0x38] sm:$0xff]  ;;  %v344_v23 = vld [vmem:[%s3365_s0 + $0x40] sm:$0xff]  ;;  %v345_v24 = vld [vmem:[%s3365_s0 + $0x48] sm:$0xff]  ;;  %vm831_vm13 = vcmask 851712   ;;  %vm838_vm14 = vcmask 917312   ;;  %vm845_vm15 = vcmask 982912  }
  0x17   : > { %v355_v25 = vpack.c.bf16 %v343_v22, %v342_v21  ;;  %v356_v26 = vpack.c.bf16 %v345_v24, %v344_v23  ;;  %v346_v27 = vld [vmem:[%s3365_s0 + $0x50] sm:$0xff]  ;;  %v347_v28 = vld [vmem:[%s3365_s0 + $0x58] sm:$0xff]  ;;  %v348_v29 = vld [vmem:[%s3365_s0 + $0x60] sm:$0xff] }
  0x18   : > { %v349_v30 = vld [vmem:[%s3365_s0 + $0x68] sm:$0xff]  ;;  %v357_v31 = vpack.c.bf16 %v347_v28, %v346_v27  ;;  %v350_v33 = vld [vmem:[%s3365_s0 + $0x70] sm:$0xff]  ;;  %v351_v34 = vld [vmem:[%s3365_s0 + $0x78] sm:$0xff] }
  0x19   : > { %2174 = vmatpush3.bf16.msra.mxu0 %v370_v5  ;;  %v358_v32 = vpack.c.bf16 %v349_v30, %v348_v29  ;;  %v359_v35 = vpack.c.bf16 %v351_v34, %v350_v33  ;;  %v2637_v36 = vld [vmem:[%s3367_s2] ss:$0 sm:$0xff] }
  0x1a   : > { %2175 = vmatprep.subr.bf16.mxu0 %v369_v11 }
  0x1d   : > { %2176 = vmatpush3.bf16.msra.mxu0 %v369_v11 }
  0x1e   : > { %2177 = vmatprep.subr.bf16.mxu0 %v368_v14 }
  0x21   : > { %2178 = vmatpush3.bf16.msra.mxu0 %v368_v14 }
  0x24   : > { %2180 = vmatmul.mubr.msk.bf16.vlgmr.msra.gmra.mxu0 %vm379_vm0, %v353_v19 }
  0x25   : > { %2183 = vmatprep.mubr.msk.bf16.mxu0 %vm379_vm0, %v354_v20 }
  0x2c   : > { %2184 = vmatmul.mubr.msk.bf16.gmra.mxu0 %vm379_vm0, %v355_v25 }
  0x2d   : > { %2187 = vmatprep.mubr.msk.bf16.mxu0 %vm379_vm0, %v356_v26 }
  0x34   : > { %2188 = vmatmul.mubr.msk.bf16.gmra.mxu0 %vm379_vm0, %v357_v31 }
  0x35   : > { %2191 = vmatprep.mubr.msk.bf16.mxu0 %vm379_vm0, %v358_v32 }
  0x3c   : > { %2192 = vmatmul.mubr.msk.bf16.gmra.mxu0 %vm379_vm0, %v359_v35  ;;  %vm852_vm0 = vcmask 1048512  }
  0xe4   : > { %v2181_v37 = vpop.f32.mrf.mxu0 }
  0xe5   : > { %v447_v38 = vadd.f32 %v2181_v37, %v2637_v36 }
  0xe6   : > { %v438_v39 = vpop.f32.mrf.mxu0 }
  0xe7   : > { %504 = vst.msk [vmem:[#allocation2 + $0x10] sm:$0xff] %vm501_vm1, %v447_v38  ;;  %v439_v40 = vadd.f32 %v2637_v36, %v438_v39  ;;  %v665_v41 = vmul.f32 %v447_v38, %v447_v38 }
  0xe8   : > { %v2182_v42 = vpop.f32.mrf.mxu0 }
  0xe9   : > { %502 = vst.msk [vmem:[#allocation2] sm:$0xff] %vm501_vm1, %v439_v40  ;;  %v450_v43 = vadd.f32 %v2182_v42, %v2637_v36  ;;  %v685_v44 = vsel %vm501_vm1, %v665_v41, 0.0  ;;  %v663_v45 = vmul.f32 %v439_v40, %v439_v40 }
  0xea   : > { %686 = vadd.xlane.f32.xlu1 %v685_v44  ;;  %v441_v46 = vpop.f32.mrf.mxu0 }
  0xeb   : > { %505 = vst.msk [vmem:[#allocation2 + $0x18] sm:$0xff] %vm501_vm1, %v450_v43  ;;  %v2646_v47 = vpack.c.bf16 %v450_v43, %v447_v38  ;;  %v442_v48 = vadd.f32 %v2637_v36, %v441_v46  ;;  %v679_v49 = vsel %vm501_vm1, %v663_v45, 0.0  ;;  %v666_v50 = vmul.f32 %v450_v43, %v450_v43 }
  0xec   : > { %v2185_v51 = vpop.f32.mrf.mxu0  ;;  %680 = vadd.xlane.f32.xlu0 %v679_v49 }
  0xed   : > { %503 = vst.msk [vmem:[#allocation2 + $0x8] sm:$0xff] %vm501_vm1, %v442_v48  ;;  %v2651_v52 = vpack.c.bf16 %v442_v48, %v439_v40  ;;  %v2654_v53 = vadd.f32 %v2185_v51, %v2637_v36  ;;  %v688_v54 = vsel %vm501_vm1, %v666_v50, 0.0  ;;  %v664_v55 = vmul.f32 %v442_v48, %v442_v48 }
  0xee   : > { %689 = vadd.xlane.f32.xlu1 %v688_v54  ;;  %v454_v56 = vpop.f32.mrf.mxu0 }
  0xef   : > { %508 = vst.msk [vmem:[#allocation2 + $0x30] sm:$0xff] %vm501_vm1, %v2654_v53  ;;  %v455_v57 = vadd.f32 %v2637_v36, %v454_v56  ;;  %2211 = vmatprep.mubr.msk.bf16.mxu0 %vm501_vm1, %v2651_v52  ;;  %v682_v58 = vsel %vm501_vm1, %v664_v55, 0.0  ;;  %v669_v59 = vmul.f32 %v2654_v53, %v2654_v53  ;;  %v527_v54 = vsel %vm501_vm1, %v2651_v52, 0 }
  0xf0   : > { %v2186_v60 = vpop.f32.mrf.mxu0  ;;  %683 = vadd.xlane.f32.xlu0 %v682_v58  ;;  %v743_v55 = vlaneseq }
  0xf1   : > { %506 = vst.msk [vmem:[#allocation2 + $0x20] sm:$0xff] %vm501_vm1, %v455_v57  ;;  %v2667_v61 = vadd.f32 %v2186_v60, %v2637_v36  ;;  %v697_v0 = vsel %vm501_vm1, %v669_v59, 0.0  ;;  %v667_v2 = vmul.f32 %v455_v57, %v455_v57 }
  0xf2   : > { %v457_v62 = vpop.f32.mrf.mxu0  ;;  %v2767_v56 = vand.u32 127, %v743_v55 }
  0xf3   : > { %509 = vst.msk [vmem:[#allocation2 + $0x38] sm:$0xff] %vm501_vm1, %v2667_v61  ;;  %v458_v63 = vadd.f32 %v2637_v36, %v457_v62  ;;  %v670_v1 = vmul.f32 %v2667_v61, %v2667_v61  ;;  %v691_v10 = vsel %vm501_vm1, %v667_v2, 0.0  ;;  %v521_v48 = vpack.c.bf16 %v2667_v61, %v2654_v53 }
  0xf4   : > { %v2189_v3 = vpop.f32.mrf.mxu0  ;;  %698 = vadd.xlane.f32.xlu0 %v697_v0  ;;  %v530_v53 = vsel %vm501_vm1, %v2646_v47, 0  ;;  %v756_v59 = vadd.s32 4294967280, %v2767_v56  ;;  %v763_v62 = vadd.s32 4294967272, %v2767_v56  ;;  %v770_v2 = vadd.s32 4294967264, %v2767_v56 }
  0xf5   : > { %507 = vst.msk [vmem:[#allocation2 + $0x28] sm:$0xff] %vm501_vm1, %v458_v63  ;;  %v2676_v4 = vpack.c.bf16 %v458_v63, %v455_v57  ;;  %v2679_v5 = vadd.f32 %v2189_v3, %v2637_v36  ;;  %v700_v6 = vsel %vm501_vm1, %v670_v1, 0.0  ;;  %v668_v7 = vmul.f32 %v458_v63, %v458_v63 }
  0xf6   : > { %701 = vadd.xlane.f32.xlu1 %v700_v6  ;;  %v470_v8 = vpop.f32.mrf.mxu0  ;;  %v536_v50 = vsel %vm501_vm1, %v521_v48, 0  ;;  %v2770_v57 = vshrl.u32 %v743_v55, 7 }
  0xf7   : > { %512 = vst.msk [vmem:[#allocation2 + $0x50] sm:$0xff] %vm501_vm1, %v2679_v5  ;;  %v2685_v9 = vadd.f32 %v2637_v36, %v470_v8  ;;  %2215 = vmatprep.mubr.msk.bf16.mxu1 %vm501_vm1, %v2676_v4  ;;  %v673_v11 = vmul.f32 %v2679_v5, %v2679_v5  ;;  %v694_v14 = vsel %vm501_vm1, %v668_v7, 0.0  ;;  %v533_v51 = vsel %vm501_vm1, %v2676_v4, 0 }
  0xf8   : > { %v2190_v12 = vpop.f32.mrf.mxu0  ;;  %692 = vadd.xlane.f32.xlu0 %v691_v10  ;;  %v747_v61 = vsub.s32 %v2767_v56, %v2770_v57  ;;  %v759_v0 = vsub.s32 %v756_v59, %v2770_v57  ;;  %v766_v6 = vsub.s32 %v763_v62, %v2770_v57  ;;  %v784_v10 = vadd.s32 4294967248, %v2767_v56 }
  0xf9   : > { %510 = vst.msk [vmem:[#allocation2 + $0x40] sm:$0xff] %vm501_vm1, %v2685_v9  ;;  %v482_v13 = vadd.f32 %v2190_v12, %v2637_v36  ;;  %v709_v17 = vsel %vm501_vm1, %v673_v11, 0.0  ;;  %v671_v19 = vmul.f32 %v2685_v9, %v2685_v9  ;;  %v773_v11 = vsub.s32 %v770_v2, %v2770_v57 }
  0xfa   : > { %v473_v15 = vpop.f32.mrf.mxu0  ;;  %695 = vadd.xlane.f32.xlu1 %v694_v14 }
  0xfb   : > { %513 = vst.msk [vmem:[#allocation2 + $0x58] sm:$0xff] %vm501_vm1, %v482_v13  ;;  %v474_v16 = vadd.f32 %v2637_v36, %v473_v15  ;;  %v674_v18 = vmul.f32 %v482_v13, %v482_v13  ;;  %v703_v26 = vsel %vm501_vm1, %v671_v19, 0.0  ;;  %v523_v43 = vpack.c.bf16 %v482_v13, %v2679_v5 }
  0xfc   : > { %v2193_v20 = vpop.f32.mrf.mxu0  ;;  %710 = vadd.xlane.f32.xlu0 %v709_v17  ;;  %v777_v5 = vadd.s32 4294967256, %v2767_v56 }
  0xfd   : > { %511 = vst.msk [vmem:[#allocation2 + $0x48] sm:$0xff] %vm501_vm1, %v474_v16  ;;  %v495_v21 = vadd.f32 %v2193_v20, %v2637_v36  ;;  %v712_v22 = vsel %vm501_vm1, %v674_v18, 0.0  ;;  %v672_v23 = vmul.f32 %v474_v16, %v474_v16  ;;  %v522_v45 = vpack.c.bf16 %v474_v16, %v2685_v9 }
  0xfe   : > { %v486_v24 = vpop.f32.mrf.mxu0  ;;  %713 = vadd.xlane.f32.xlu1 %v712_v22  ;;  %v542_v46 = vsel %vm501_vm1, %v523_v43, 0  ;;  %v780_v14 = vsub.s32 %v777_v5, %v2770_v57  ;;  %v791_v16 = vadd.s32 4294967240, %v2767_v56  ;;  %v787_v18 = vsub.s32 %v784_v10, %v2770_v57 }
  0xff   : > { %516 = vst.msk [vmem:[#allocation2 + $0x70] sm:$0xff] %vm501_vm1, %v495_v21  ;;  %v487_v25 = vadd.f32 %v2637_v36, %v486_v24  ;;  %v706_v29 = vsel %vm501_vm1, %v672_v23, 0.0  ;;  %v677_v35 = vmul.f32 %v495_v21, %v495_v21  ;;  %v539_v49 = vsel %vm501_vm1, %v522_v45, 0 }
 0x100   : > { %v2194_v27 = vpop.f32.mrf.mxu0  ;;  %704 = vadd.xlane.f32.xlu0 %v703_v26  ;;  %v798_v20 = vadd.s32 4294967232, %v2767_v56  ;;  %v794_v26 = vsub.s32 %v791_v16, %v2770_v57 }
 0x101   : > { %514 = vst.msk [vmem:[#allocation2 + $0x60] sm:$0xff] %vm501_vm1, %v487_v25  ;;  %v498_v28 = vadd.f32 %v2194_v27, %v2637_v36  ;;  %v675_v30 = vmul.f32 %v487_v25, %v487_v25  ;;  %v721_v40 = vsel %vm501_vm1, %v677_v35, 0.0  ;;  %v812_v27 = vadd.s32 4294967216, %v2767_v56 }
 0x102   : > { %v489_v31 = vpop.f32.mrf.mxu0  ;;  %707 = vadd.xlane.f32.xlu1 %v706_v29 }
 0x103   : > { %517 = vst.msk [vmem:[#allocation2 + $0x78] sm:$0xff] %vm501_vm1, %v498_v28  ;;  %v2711_v32 = vpack.c.bf16 %v498_v28, %v495_v21  ;;  %v490_v33 = vadd.f32 %v2637_v36, %v489_v31  ;;  %v715_v34 = vsel %vm501_vm1, %v675_v30, 0.0  ;;  %v678_v41 = vmul.f32 %v498_v28, %v498_v28 }
 0x104   : > { %716 = vadd.xlane.f32.xlu0 %v715_v34  ;;  %v819_v31 = vadd.s32 4294967208, %v2767_v56  ;;  %v826_v34 = vadd.s32 4294967200, %v2767_v56 }
 0x105   : > { %515 = vst.msk [vmem:[#allocation2 + $0x68] sm:$0xff] %vm501_vm1, %v490_v33  ;;  %v524_v37 = vpack.c.bf16 %v490_v33, %v487_v25  ;;  %2307 = vmatprep.subr.msk.bf16.mxu0 %vm501_vm1, %v2711_v32  ;;  %2308 = vmatprep.subr.msk.bf16.mxu1 %vm501_vm1, %v2711_v32  ;;  %v548_v38 = vsel %vm501_vm1, %v2711_v32, 0  ;;  %v676_v39 = vmul.f32 %v490_v33, %v490_v33  ;;  %v724_v42 = vsel %vm501_vm1, %v678_v41, 0.0 }
 0x106   : > { %2196 = vmatpush3.bf16.xpose.msra.mxu0 %v548_v38  ;;  %2299 = vmatpush3.bf16.xpose.msra.mxu1 %v548_v38  ;;  %v805_v25 = vadd.s32 4294967224, %v2767_v56 }
 0x107   : > { %2309 = vmatprep.subr.msk.bf16.mxu0 %vm501_vm1, %v524_v37  ;;  %2310 = vmatprep.subr.msk.bf16.mxu1 %vm501_vm1, %v524_v37  ;;  %v718_v36 = vsel %vm501_vm1, %v676_v39, 0.0  ;;  %v545_v44 = vsel %vm501_vm1, %v524_v37, 0  ;;  %v815_v39 = vsub.s32 %v812_v27, %v2770_v57 }
 0x108   : > { %719 = vadd.xlane.f32.xlu1 %v718_v36  ;;  %722 = vadd.xlane.f32.xlu0 %v721_v40  ;;  %v822_v40 = vsub.s32 %v819_v31, %v2770_v57 }
 0x10c   : > { %725 = vadd.xlane.f32.xlu1 %v724_v42  ;;  %v833_v42 = vadd.s32 4294967192, %v2767_v56 }
 0x10e   : > { %2198 = vmatpush3.bf16.xpose.msra.mxu0 %v545_v44  ;;  %2300 = vmatpush3.bf16.xpose.msra.mxu1 %v545_v44  ;;  %v836_v55 = vsub.s32 %v833_v42, %v2770_v57 }
 0x10f   : > { %2311 = vmatprep.subr.msk.bf16.mxu0 %vm501_vm1, %v523_v43  ;;  %2312 = vmatprep.subr.msk.bf16.mxu1 %vm501_vm1, %v523_v43 }
 0x116   : > { %2200 = vmatpush3.bf16.xpose.msra.mxu0 %v542_v46  ;;  %2301 = vmatpush3.bf16.xpose.msra.mxu1 %v542_v46  ;;  %v840_v46 = vadd.s32 4294967184, %v2767_v56 }
 0x117   : > { %2313 = vmatprep.subr.msk.bf16.mxu0 %vm501_vm1, %v522_v45  ;;  %2314 = vmatprep.subr.msk.bf16.mxu1 %vm501_vm1, %v522_v45 }
 0x118   : > { %v843_v59 = vsub.s32 %v840_v46, %v2770_v57 }
 0x11e   : > { %2202 = vmatpush3.bf16.xpose.msra.mxu0 %v539_v49  ;;  %2302 = vmatpush3.bf16.xpose.msra.mxu1 %v539_v49 }
 0x11f   : > { %2315 = vmatprep.subr.msk.bf16.mxu0 %vm501_vm1, %v521_v48  ;;  %2316 = vmatprep.subr.msk.bf16.mxu1 %vm501_vm1, %v521_v48 }
 0x126   : > { %2204 = vmatpush3.bf16.xpose.msra.mxu0 %v536_v50  ;;  %2303 = vmatpush3.bf16.xpose.msra.mxu1 %v536_v50 }
 0x127   : > { %2317 = vmatprep.subr.msk.bf16.mxu0 %vm501_vm1, %v2676_v4  ;;  %2318 = vmatprep.subr.msk.bf16.mxu1 %vm501_vm1, %v2676_v4 }
 0x12e   : > { %2206 = vmatpush3.bf16.xpose.msra.mxu0 %v533_v51  ;;  %2304 = vmatpush3.bf16.xpose.msra.mxu1 %v533_v51 }
 0x12f   : > { %2319 = vmatprep.subr.msk.bf16.mxu0 %vm501_vm1, %v2646_v47  ;;  %2320 = vmatprep.subr.msk.bf16.mxu1 %vm501_vm1, %v2646_v47 }
 0x136   : > { %2208 = vmatpush3.bf16.xpose.msra.mxu0 %v530_v53  ;;  %2305 = vmatpush3.bf16.xpose.msra.mxu1 %v530_v53 }
 0x137   : > { %2321 = vmatprep.subr.msk.bf16.mxu0 %vm501_vm1, %v2651_v52  ;;  %2322 = vmatprep.subr.msk.bf16.mxu1 %vm501_vm1, %v2651_v52  ;;  %v749_v52 = vadd.s32 4294967288, %v2767_v56 }
 0x139   : > { %v752_v60 = vsub.s32 %v749_v52, %v2770_v57  ;;  %v847_v52 = vadd.s32 4294967176, %v2767_v56 }
 0x13e   : > { %2210 = vmatpush3.bf16.xpose.msra.mxu0 %v527_v54  ;;  %2306 = vmatpush3.bf16.xpose.msra.mxu1 %v527_v54 }
 0x145   : > { %2212 = vmatmul.mubr.msk.bf16.vlgmr.msra.gmra.mxu0 %vm501_vm1, %v2646_v47  ;;  %2216 = vmatmul.mubr.msk.bf16.vlgmr.msra.gmra.mxu1 %vm501_vm1, %v521_v48 }
 0x146   : > { %2219 = vmatprep.mubr.msk.bf16.mxu1 %vm501_vm1, %v522_v45  ;;  %v829_v45 = vsub.s32 %v826_v34, %v2770_v57 }
 0x14d   : > { %2220 = vmatmul.mubr.msk.bf16.gmra.mxu1 %vm501_vm1, %v523_v43 }
 0x14e   : > { %2223 = vmatprep.mubr.msk.bf16.mxu1 %vm501_vm1, %v524_v37  ;;  %v808_v37 = vsub.s32 %v805_v25, %v2770_v57 }
 0x155   : > { %2224 = vmatmul.mubr.msk.bf16.gmra.mxu1 %vm501_vm1, %v2711_v32  ;;  %v801_v32 = vsub.s32 %v798_v20, %v2770_v57  ;;  %vm872_vm1 = vcmask 0  }
 0x173   : > { %v687_v58 = vpop.xlane.xlu1 %686 }
 0x174   : > { %v760_v9 = vrot.slane %v687_v58, %v759_v0  ;;  %v850_v0 = vsub.s32 %v847_v52, %v2770_v57 }
 0x175   : > { %v681_v47 = vpop.xlane.xlu0 %680 }
 0x176   : > { %v748_v3 = vrot.slane %v681_v47, %v747_v61 }
 0x177   : > { %v690_v4 = vpop.xlane.xlu1 %689 }
 0x178   : > { %v767_v15 = vrot.slane %v690_v4, %v766_v6 }
 0x179   : > { %v684_v63 = vpop.xlane.xlu0 %683 }
 0x17a   : > { %v753_v1 = vrot.slane %v684_v63, %v752_v60 }
 0x17c   : > { %v755_v7 = vsel %vm754_vm2, %v753_v1, %v748_v3 }
 0x17d   : > { %v699_v8 = vpop.xlane.xlu0 %698  ;;  %v762_v13 = vsel %vm761_vm3, %v760_v9, %v755_v7  ;;  %v2476_v7 = vmov 0.0  }
 0x17e   : > { %v769_v21 = vsel %vm768_vm4, %v767_v15, %v762_v13  ;;  %v788_v29 = vrot.slane %v699_v8, %v787_v18  ;;  %856 = vst [vmem:[#allocation5 + $0x28] sm:$0xff] %v2476_v7  ;;  %857 = vst [vmem:[#allocation5 + $0x68] sm:$0xff] %v2476_v7 }
 0x17f   : > { %v702_v12 = vpop.xlane.xlu1 %701  ;;  %858 = vst [vmem:[#allocation5 + $0x10] sm:$0xff] %v2476_v7  ;;  %859 = vst [vmem:[#allocation5 + $0x40] sm:$0xff] %v2476_v7 }
 0x180   : > { %v795_v38 = vrot.slane %v702_v12, %v794_v26  ;;  %860 = vst [vmem:[#allocation5 + $0x48] sm:$0xff] %v2476_v7  ;;  %861 = vst [vmem:[#allocation5 + $0x30] sm:$0xff] %v2476_v7 }
 0x181   : > { %v693_v17 = vpop.xlane.xlu0 %692  ;;  %862 = vst [vmem:[#allocation5 + $0x70] sm:$0xff] %v2476_v7  ;;  %863 = vst [vmem:[#allocation5 + $0x38] sm:$0xff] %v2476_v7 }
 0x182   : > { %v774_v19 = vrot.slane %v693_v17, %v773_v11  ;;  %864 = vst [vmem:[#allocation5 + $0x20] sm:$0xff] %v2476_v7  ;;  %865 = vst [vmem:[#allocation5 + $0x78] sm:$0xff] %v2476_v7 }
 0x183   : > { %v696_v22 = vpop.xlane.xlu1 %695  ;;  %866 = vst [vmem:[#allocation5 + $0x18] sm:$0xff] %v2476_v7  ;;  %867 = vst [vmem:[#allocation5 + $0x58] sm:$0xff] %v2476_v7 }
 0x184   : > { %v776_v23 = vsel %vm775_vm5, %v774_v19, %v769_v21  ;;  %v781_v24 = vrot.slane %v696_v22, %v780_v14  ;;  %868 = vst [vmem:[#allocation5] sm:$0xff] %v2476_v7  ;;  %869 = vst [vmem:[#allocation5 + $0x8] sm:$0xff] %v2476_v7 }
 0x185   : > { %v711_v28 = vpop.xlane.xlu0 %710  ;;  %870 = vst [vmem:[#allocation5 + $0x60] sm:$0xff] %v2476_v7  ;;  %871 = vst [vmem:[#allocation5 + $0x50] sm:$0xff] %v2476_v7 }
 0x186   : > { %v783_v30 = vsel %vm782_vm6, %v781_v24, %v776_v23  ;;  %v816_v50 = vrot.slane %v711_v28, %v815_v39  ;;  %873 = vst.msk [vmem:[#allocation6] sm:$0x1] %vm872_vm1, %v2476_v7 }
 0x187   : > { %v714_v33 = vpop.xlane.xlu1 %713  ;;  %v790_v35 = vsel %vm789_vm7, %v788_v29, %v783_v30 }
 0x188   : > { %v797_v43 = vsel %vm796_vm8, %v795_v38, %v790_v35  ;;  %v823_v53 = vrot.slane %v714_v33, %v822_v40 }
 0x189   : > { %v705_v36 = vpop.xlane.xlu0 %704 }
 0x18a   : > { %v802_v41 = vrot.slane %v705_v36, %v801_v32 }
 0x18b   : > { %v708_v44 = vpop.xlane.xlu1 %707 }
 0x18c   : > { %v804_v48 = vsel %vm803_vm9, %v802_v41, %v797_v43  ;;  %v809_v49 = vrot.slane %v708_v44, %v808_v37 }
 0x18d   : > { %v717_v51 = vpop.xlane.xlu0 %716 }
 0x18e   : > { %v811_v54 = vsel %vm810_vm10, %v809_v49, %v804_v48  ;;  %v830_v47 = vrot.slane %v717_v51, %v829_v45 }
 0x18f   : > { %v818_v58 = vsel %vm817_vm11, %v816_v50, %v811_v54 }
 0x190   : > { %v825_v60 = vsel %vm824_vm12, %v823_v53, %v818_v58 }
 0x191   : > { %v720_v61 = vpop.xlane.xlu1 %719  ;;  %v723_v62 = vpop.xlane.xlu0 %722  ;;  %v832_v1 = vsel %vm831_vm13, %v830_v47, %v825_v60 }
 0x192   : > { %v837_v63 = vrot.slane %v720_v61, %v836_v55  ;;  %v844_v2 = vrot.slane %v723_v62, %v843_v59 }
 0x194   : > { %v839_v3 = vsel %vm838_vm14, %v837_v63, %v832_v1 }
 0x195   : > { %v726_v4 = vpop.xlane.xlu1 %725  ;;  %v846_v56 = vsel %vm845_vm15, %v844_v2, %v839_v3 }
 0x196   : > { %v851_v5 = vrot.slane %v726_v4, %v850_v0 }
 0x198   : > { %v853_v6 = vsel %vm852_vm0, %v851_v5, %v846_v56 }
 0x199   : > { %855 = vst [vmem:[#allocation4] sm:$0x1] %v853_v6 }
 0x205   : > { %v2213_v57 = vpop.f32.mrf.mxu0  ;;  %v2217_v8 = vpop.f32.mrf.mxu1 }
 0x206   : > { %649 = vst [vmem:[#allocation3 + $0x58] sm:$0xff] %v2213_v57  ;;  %653 = vst [vmem:[#allocation3 + $0x8] sm:$0xff] %v2217_v8 }
 0x207   : > { %v584_v9 = vpop.f32.mrf.mxu0  ;;  %v600_v10 = vpop.f32.mrf.mxu1 }
 0x208   : > { %647 = vst [vmem:[#allocation3 + $0x30] sm:$0xff] %v584_v9  ;;  %651 = vst [vmem:[#allocation3 + $0x50] sm:$0xff] %v600_v10 }
 0x209   : > { %v2214_v11 = vpop.f32.mrf.mxu0  ;;  %v2218_v12 = vpop.f32.mrf.mxu1 }
 0x20a   : > { %650 = vst [vmem:[#allocation3 + $0x18] sm:$0xff] %v2214_v11  ;;  %654 = vst [vmem:[#allocation3 + $0x48] sm:$0xff] %v2218_v12 }
 0x20b   : > { %v587_v13 = vpop.f32.mrf.mxu0  ;;  %v603_v14 = vpop.f32.mrf.mxu1 }
 0x20c   : > { %648 = vst [vmem:[#allocation3] sm:$0xff] %v587_v13  ;;  %652 = vst [vmem:[#allocation3 + $0x68] sm:$0xff] %v603_v14 }
 0x20d   : > { %v2221_v15 = vpop.f32.mrf.mxu1 }
 0x20e   : > { %657 = vst [vmem:[#allocation3 + $0x10] sm:$0xff] %v2221_v15 }
 0x20f   : > { %v616_v16 = vpop.f32.mrf.mxu1 }
 0x210   : > { %655 = vst [vmem:[#allocation3 + $0x40] sm:$0xff] %v616_v16 }
 0x211   : > { %v2222_v17 = vpop.f32.mrf.mxu1 }
 0x212   : > { %658 = vst [vmem:[#allocation3 + $0x38] sm:$0xff] %v2222_v17 }
 0x213   : > { %v619_v18 = vpop.f32.mrf.mxu1 }
 0x214   : > { %656 = vst [vmem:[#allocation3 + $0x20] sm:$0xff] %v619_v18 }
 0x215   : > { %v2225_v19 = vpop.f32.mrf.mxu1 }
 0x216   : > { %661 = vst [vmem:[#allocation3 + $0x78] sm:$0xff] %v2225_v19 }
 0x217   : > { %v632_v20 = vpop.f32.mrf.mxu1 }
 0x218   : > { %659 = vst [vmem:[#allocation3 + $0x60] sm:$0xff] %v632_v20 }
 0x219   : > { %v2226_v21 = vpop.f32.mrf.mxu1 }
 0x21a   : > { %662 = vst [vmem:[#allocation3 + $0x28] sm:$0xff] %v2226_v21 }
 0x21b   : > { %v635_v22 = vpop.f32.mrf.mxu1 }
 0x21c   : > { %660 = vst [vmem:[#allocation3 + $0x70] sm:$0xff] %v635_v22 }
 0x21d PF: > { %v876_v23 = vld [vmem:[#allocation2 + $0x10] sm:$0xff]  ;;  %v2102_v24 = vld [vmem:[%s325_s14] ss:$0 sm:$0xff]  ;;  %vm929_vm2 = vcmask 130048   ;;  %v877_v28 = vld [vmem:[#allocation2 + $0x18] sm:$0xff]  ;;  %v2477_v9 = vmov 0  }
 0x21e   : > { %v874_v25 = vld [vmem:[#allocation2] sm:$0xff]  ;;  %v915_v26 = vmul.f32 %v2102_v24, %v876_v23  ;;  %v875_v29 = vld [vmem:[#allocation2 + $0x8] sm:$0xff]  ;;  %v916_v30 = vmul.f32 %v2102_v24, %v877_v28  ;;  %v881_v40 = vld [vmem:[#allocation2 + $0x38] sm:$0xff]  ;;  %2343 = vset.pattern.permute.xlu1 %v2477_v9  ;;  %2342 = vset.pattern.permute.xlu0 %v2477_v9  ;;  %vm1202_vm3 = vcmask 130112   ;;  %vm1209_vm4 = vcmask 195712   ;;  %p2104_p5 = scmp.ne.s32.totalorder %s2535_s10, 3 }
 0x21f   : > { %v913_v27 = vmul.f32 %v2102_v24, %v874_v25  ;;  %v914_v31 = vmul.f32 %v2102_v24, %v875_v29  ;;  %v879_v32 = vld [vmem:[#allocation2 + $0x28] sm:$0xff]  ;;  %v878_v33 = vld [vmem:[#allocation2 + $0x20] sm:$0xff]  ;;  %v880_v41 = vld [vmem:[#allocation2 + $0x30] sm:$0xff]  ;;  %v920_v44 = vmul.f32 %v2102_v24, %v881_v40  ;;  %vm1216_vm5 = vcmask 261312  }
 0x220   : > { %v936_v34 = vsel %vm929_vm2, %v915_v26, 0.0  ;;  %v939_v37 = vsel %vm929_vm2, %v916_v30, 0.0  ;;  %v918_v39 = vmul.f32 %v2102_v24, %v879_v32  ;;  %v917_v36 = vmul.f32 %v2102_v24, %v878_v33  ;;  %v883_v46 = vld [vmem:[#allocation2 + $0x48] sm:$0xff]  ;;  %v882_v48 = vld [vmem:[#allocation2 + $0x40] sm:$0xff]  ;;  %v885_v54 = vld [vmem:[#allocation2 + $0x58] sm:$0xff] }
 0x221   : > { %v930_v35 = vsel %vm929_vm2, %v913_v27, 0.0  ;;  %937 = vadd.xlane.f32.xlu1 %v936_v34  ;;  %v933_v38 = vsel %vm929_vm2, %v914_v31, 0.0  ;;  %v919_v45 = vmul.f32 %v2102_v24, %v880_v41  ;;  %v951_v49 = vsel %vm929_vm2, %v920_v44, 0.0  ;;  %v884_v55 = vld [vmem:[#allocation2 + $0x50] sm:$0xff]  ;;  %v887_v60 = vld [vmem:[#allocation2 + $0x68] sm:$0xff]  ;;  %v886_v61 = vld [vmem:[#allocation2 + $0x60] sm:$0xff] }
 0x222   : > { %931 = vadd.xlane.f32.xlu0 %v930_v35  ;;  %v945_v42 = vsel %vm929_vm2, %v918_v39, 0.0  ;;  %v942_v43 = vsel %vm929_vm2, %v917_v36, 0.0  ;;  %v922_v51 = vmul.f32 %v2102_v24, %v883_v46  ;;  %v921_v53 = vmul.f32 %v2102_v24, %v882_v48  ;;  %v889_v2 = vld [vmem:[#allocation2 + $0x78] sm:$0xff]  ;;  %v888_v3 = vld [vmem:[#allocation2 + $0x70] sm:$0xff]  ;;  %v2103_v8 = vld [vmem:[#allocation4] ss:$0 sm:$0xff] }
 0x223   : > { %v948_v50 = vsel %vm929_vm2, %v919_v45, 0.0  ;;  %v924_v47 = vmul.f32 %v2102_v24, %v885_v54  ;;  %v923_v59 = vmul.f32 %v2102_v24, %v884_v55  ;;  %v926_v0 = vmul.f32 %v2102_v24, %v887_v60 }
 0x224   : > { %v957_v52 = vsel %vm929_vm2, %v922_v51, 0.0  ;;  %v954_v58 = vsel %vm929_vm2, %v921_v53, 0.0  ;;  %v925_v1 = vmul.f32 %v2102_v24, %v886_v61  ;;  %v928_v56 = vmul.f32 %v2102_v24, %v889_v2 }
 0x225   : > { %940 = vadd.xlane.f32.xlu1 %v939_v37  ;;  %v963_v62 = vsel %vm929_vm2, %v924_v47, 0.0  ;;  %v960_v63 = vsel %vm929_vm2, %v923_v59, 0.0  ;;  %v969_v4 = vsel %vm929_vm2, %v926_v0, 0.0  ;;  %v927_v6 = vmul.f32 %v2102_v24, %v888_v3 }
 0x226   : > { %934 = vadd.xlane.f32.xlu0 %v933_v38  ;;  %v966_v5 = vsel %vm929_vm2, %v925_v1, 0.0  ;;  %v975_v7 = vsel %vm929_vm2, %v928_v56, 0.0  ;;  %vm1223_vm6 = vcmask 326912   ;;  %vm1230_vm7 = vcmask 392512  }
 0x227   : > { %v972_v57 = vsel %vm929_vm2, %v927_v6, 0.0  ;;  %vm1237_vm8 = vcmask 458112   ;;  %vm1244_vm9 = vcmask 523712   ;;  %vm1251_vm10 = vcmask 589312  }
 0x228   : > { %vm1258_vm11 = vcmask 654912   ;;  %vm1265_vm12 = vcmask 720512   ;;  %vm1272_vm13 = vcmask 786112   ;;  %vm1279_vm14 = vcmask 851712  }
 0x229   : > { %946 = vadd.xlane.f32.xlu1 %v945_v42  ;;  %vm1286_vm15 = vcmask 917312   ;;  %vm1293_vm0 = vcmask 982912   ;;  %vm1300_vm1 = vcmask 1048512  }
 0x22a   : > { %943 = vadd.xlane.f32.xlu0 %v942_v43 }
 0x22d   : > { %952 = vadd.xlane.f32.xlu1 %v951_v49 }
 0x22e   : > { %949 = vadd.xlane.f32.xlu0 %v948_v50 }
 0x231   : > { %958 = vadd.xlane.f32.xlu1 %v957_v52 }
 0x232   : > { %955 = vadd.xlane.f32.xlu0 %v954_v58 }
 0x235   : > { %964 = vadd.xlane.f32.xlu1 %v963_v62 }
 0x236   : > { %961 = vadd.xlane.f32.xlu0 %v960_v63 }
 0x239   : > { %970 = vadd.xlane.f32.xlu1 %v969_v4 }
 0x23a   : > { %967 = vadd.xlane.f32.xlu0 %v966_v5 }
 0x23d   : > { %976 = vadd.xlane.f32.xlu1 %v975_v7 }
 0x23e   : > { %973 = vadd.xlane.f32.xlu0 %v972_v57 }
 0x24e   : > { %1037 = vbcast.lane.b32.xlu1 %v2103_v8, 264 }
 0x252   : > { %1041 = vbcast.lane.b32.xlu1 %v2103_v8, 272 }
 0x254   : > { %1033 = vbcast.lane.b32.xlu0 %v2103_v8, 256 }
 0x256   : > { %1045 = vbcast.lane.b32.xlu1 %v2103_v8, 280 }
 0x258   : > { %1049 = vbcast.lane.b32.xlu0 %v2103_v8, 288 }
 0x25a   : > { %1053 = vbcast.lane.b32.xlu1 %v2103_v8, 296 }
 0x25c   : > { %1057 = vbcast.lane.b32.xlu0 %v2103_v8, 304 }
 0x25e   : > { %1061 = vbcast.lane.b32.xlu1 %v2103_v8, 312 }
 0x260   : > { %1065 = vbcast.lane.b32.xlu0 %v2103_v8, 320 }
 0x262   : > { %1069 = vbcast.lane.b32.xlu1 %v2103_v8, 328 }
 0x264   : > { %1073 = vbcast.lane.b32.xlu0 %v2103_v8, 336 }
 0x266   : > { %1077 = vbcast.lane.b32.xlu1 %v2103_v8, 344 }
 0x268   : > { %1081 = vbcast.lane.b32.xlu0 %v2103_v8, 352 }
 0x26a   : > { %1085 = vbcast.lane.b32.xlu1 %v2103_v8, 360 }
 0x26c   : > { %1089 = vbcast.lane.b32.xlu0 %v2103_v8, 368 }
 0x26e   : > { %1093 = vbcast.lane.b32.xlu1 %v2103_v8, 376 }
 0x2aa   : > { %v938_v10 = vpop.xlane.xlu1 %937 }
 0x2ab   : > { %v932_v11 = vpop.xlane.xlu0 %931  ;;  %v1012_v32 = vmul.f32 2.0, %v938_v10  ;;  %v1191_v10 = vlaneseq }
 0x2ac   : > { %v1010_v26 = vmul.f32 2.0, %v932_v11 }
 0x2ad   : > { %v2825_v11 = vand.u32 127, %v1191_v10 }
 0x2ae   : > { %v941_v12 = vpop.xlane.xlu1 %940 }
 0x2af   : > { %v935_v13 = vpop.xlane.xlu0 %934  ;;  %v1013_v37 = vmul.f32 2.0, %v941_v12  ;;  %v2827_v12 = vshrl.u32 %v1191_v10, 7 }
 0x2b0   : > { %v1011_v27 = vmul.f32 2.0, %v935_v13  ;;  %v1197_v13 = vadd.s32 4294967288, %v2825_v11 }
 0x2b2   : > { %v947_v14 = vpop.xlane.xlu1 %946 }
 0x2b3   : > { %v944_v15 = vpop.xlane.xlu0 %943  ;;  %v1015_v42 = vmul.f32 2.0, %v947_v14  ;;  %v1204_v14 = vadd.s32 4294967280, %v2825_v11 }
 0x2b4   : > { %v1014_v38 = vmul.f32 2.0, %v944_v15 }
 0x2b6   : > { %v953_v16 = vpop.xlane.xlu1 %952 }
 0x2b7   : > { %v950_v17 = vpop.xlane.xlu0 %949  ;;  %v1017_v49 = vmul.f32 2.0, %v953_v16  ;;  %v1200_v16 = vsub.s32 %v1197_v13, %v2827_v12  ;;  %v1295_v13 = vadd.s32 4294967176, %v2825_v11 }
 0x2b8   : > { %v1016_v43 = vmul.f32 2.0, %v950_v17  ;;  %v1195_v17 = vsub.s32 %v2825_v11, %v2827_v12 }
 0x2ba   : > { %v959_v18 = vpop.xlane.xlu1 %958 }
 0x2bb   : > { %v956_v19 = vpop.xlane.xlu0 %955  ;;  %v1019_v52 = vmul.f32 2.0, %v959_v18  ;;  %v1211_v18 = vadd.s32 4294967272, %v2825_v11 }
 0x2bc   : > { %v1018_v50 = vmul.f32 2.0, %v956_v19 }
 0x2be   : > { %v965_v20 = vpop.xlane.xlu1 %964 }
 0x2bf   : > { %v962_v21 = vpop.xlane.xlu0 %961  ;;  %v1021_v62 = vmul.f32 2.0, %v965_v20  ;;  %v1207_v20 = vsub.s32 %v1204_v14, %v2827_v12 }
 0x2c0   : > { %v1020_v58 = vmul.f32 2.0, %v962_v21  ;;  %v1218_v21 = vadd.s32 4294967264, %v2825_v11 }
 0x2c2   : > { %v971_v22 = vpop.xlane.xlu1 %970 }
 0x2c3   : > { %v968_v23 = vpop.xlane.xlu0 %967  ;;  %v1023_v4 = vmul.f32 2.0, %v971_v22 }
 0x2c4   : > { %v1022_v63 = vmul.f32 2.0, %v968_v23 }
 0x2c6   : > { %v977_v24 = vpop.xlane.xlu1 %976 }
 0x2c7   : > { %v974_v25 = vpop.xlane.xlu0 %973  ;;  %v1025_v57 = vmul.f32 2.0, %v977_v24 }
 0x2c8   : > { %v1024_v5 = vmul.f32 2.0, %v974_v25  ;;  %v1214_v25 = vsub.s32 %v1211_v18, %v2827_v12 }
 0x2ca   : > { %v1038_v28 = vpop.permute.xlu1 %1037 }
 0x2cb   : > { %v1034_v29 = vpop.permute.xlu0 %1033  ;;  %v1112_v30 = vsub.f32 %v1011_v27, %v1038_v28  ;;  %v1221_v28 = vsub.s32 %v1218_v21, %v2827_v12  ;;  %v1298_v21 = vsub.s32 %v1295_v13, %v2827_v12 }
 0x2cc   : > { %v1111_v31 = vsub.f32 %v1010_v26, %v1034_v29  ;;  %v1225_v26 = vadd.s32 4294967256, %v2825_v11  ;;  %v1232_v29 = vadd.s32 4294967248, %v2825_v11 }
 0x2cd   : > { %1147 = vperm.xlu1 %2343, %v1112_v30  }
 0x2ce   : > { %1144 = vperm.xlu0 %2342, %v1111_v31   ;;  %v1042_v33 = vpop.permute.xlu1 %1041 }
 0x2cf   : > { %v1050_v34 = vpop.permute.xlu0 %1049  ;;  %v1113_v35 = vsub.f32 %v1012_v32, %v1042_v33 }
 0x2d0   : > { %v1115_v40 = vsub.f32 %v1014_v38, %v1050_v34  ;;  %v1228_v34 = vsub.s32 %v1225_v26, %v2827_v12 }
 0x2d1   : > { %1150 = vperm.xlu1 %2343, %v1113_v35   ;;  %v1239_v35 = vadd.s32 4294967240, %v2825_v11 }
 0x2d2   : > { %v1046_v39 = vpop.permute.xlu1 %1045 }
 0x2d3   : > { %v1058_v36 = vpop.permute.xlu0 %1057  ;;  %v1114_v41 = vsub.f32 %v1013_v37, %v1046_v39  ;;  %v1235_v39 = vsub.s32 %v1232_v29, %v2827_v12  ;;  %v2864_v29 = vld [vmem:[%s3369_s4 + $0x8] sm:$0xff] }
 0x2d4   : > { %v1117_v46 = vsub.f32 %v1016_v43, %v1058_v36  ;;  %v1246_v36 = vadd.s32 4294967232, %v2825_v11  ;;  %vm1332_vm2 = vcmp.gt.f32.partialorder %v2864_v29, 0.0 }
 0x2d5   : > { %1153 = vperm.xlu0 %2342, %v1114_v41   ;;  %1156 = vperm.xlu1 %2343, %v1115_v40  }
 0x2d6   : > { %v1054_v44 = vpop.permute.xlu1 %1053 }
 0x2d7   : > { %v1066_v45 = vpop.permute.xlu0 %1065  ;;  %v1116_v48 = vsub.f32 %v1015_v42, %v1054_v44  ;;  %v1242_v44 = vsub.s32 %v1239_v35, %v2827_v12 }
 0x2d8   : > { %v1119_v54 = vsub.f32 %v1018_v50, %v1066_v45  ;;  %v1253_v45 = vadd.s32 4294967224, %v2825_v11  ;;  %v1260_v50 = vadd.s32 4294967216, %v2825_v11 }
 0x2d9   : > { %1159 = vperm.xlu0 %2342, %v1116_v48   ;;  %1162 = vperm.xlu1 %2343, %v1117_v46  }
 0x2da   : > { %v1062_v51 = vpop.permute.xlu1 %1061 }
 0x2db   : > { %v1074_v53 = vpop.permute.xlu0 %1073  ;;  %v1118_v55 = vsub.f32 %v1017_v49, %v1062_v51  ;;  %v1249_v49 = vsub.s32 %v1246_v36, %v2827_v12 }
 0x2dc   : > { %v1121_v60 = vsub.f32 %v1020_v58, %v1074_v53  ;;  %v1267_v58 = vadd.s32 4294967208, %v2825_v11 }
 0x2dd   : > { %1165 = vperm.xlu0 %2342, %v1118_v55   ;;  %1168 = vperm.xlu1 %2343, %v1119_v54  }
 0x2de   : > { %v1070_v47 = vpop.permute.xlu1 %1069 }
 0x2df   : > { %v1082_v59 = vpop.permute.xlu0 %1081  ;;  %v1120_v61 = vsub.f32 %v1019_v52, %v1070_v47  ;;  %v1256_v52 = vsub.s32 %v1253_v45, %v2827_v12 }
 0x2e0   : > { %v1123_v1 = vsub.f32 %v1022_v63, %v1082_v59 }
 0x2e1   : > { %1171 = vperm.xlu0 %2342, %v1120_v61   ;;  %1174 = vperm.xlu1 %2343, %v1121_v60   ;;  %v1263_v60 = vsub.s32 %v1260_v50, %v2827_v12  ;;  %v1274_v61 = vadd.s32 4294967200, %v2825_v11  ;;  %v983_v50 = vld [vmem:[#allocation3 + $0x68] sm:$0xff] }
 0x2e2   : > { %v1078_v0 = vpop.permute.xlu1 %1077 }
 0x2e3   : > { %v1122_v2 = vsub.f32 %v1021_v62, %v1078_v0  ;;  %v1090_v3 = vpop.permute.xlu0 %1089 }
 0x2e4   : > { %v1125_v6 = vsub.f32 %v1024_v5, %v1090_v3  ;;  %v1281_v3 = vadd.s32 4294967192, %v2825_v11 }
 0x2e5   : > { %1177 = vperm.xlu0 %2342, %v1122_v2   ;;  %1180 = vperm.xlu1 %2343, %v1123_v1   ;;  %v1270_v2 = vsub.s32 %v1267_v58, %v2827_v12 }
 0x2e6   : > { %v1086_v56 = vpop.permute.xlu1 %1085  ;;  %v1284_v10 = vsub.s32 %v1281_v3, %v2827_v12 }
 0x2e7   : > { %v1124_v7 = vsub.f32 %v1023_v4, %v1086_v56  ;;  %v1277_v56 = vsub.s32 %v1274_v61, %v2827_v12  ;;  %v985_v61 = vld [vmem:[#allocation3 + $0x48] sm:$0xff] }
 0x2e9   : > { %1183 = vperm.xlu0 %2342, %v1124_v7   ;;  %1186 = vperm.xlu1 %2343, %v1125_v6   ;;  %v1288_v6 = vadd.s32 4294967184, %v2825_v11  ;;  %v982_v11 = vld [vmem:[#allocation3 + $0x50] sm:$0xff] }
 0x2ea   : > { %v1094_v8 = vpop.permute.xlu1 %1093  ;;  %v998_v35 = vmul.f32 2.0, %v982_v11  ;;  %v3000_v11 = vld [vmem:[%s3369_s4 + $0x58] sm:$0xff] }
 0x2eb   : > { %v1126_v9 = vsub.f32 %v1025_v57, %v1094_v8 }
 0x2ed   : > { %1189 = vperm.xlu0 %2342, %v1126_v9  }
 0x348   : > { %v1148_v15 = vpop.permute.xlu1 %1147 }
 0x349   : > { %v1145_v19 = vpop.permute.xlu0 %1144  ;;  %v1201_v23 = vrot.slane %v1148_v15, %v1200_v16  ;;  %v1291_v16 = vsub.s32 %v1288_v6, %v2827_v12  ;;  %v2869_v12 = vld [vmem:[%s3369_s4] sm:$0xff] }
 0x34a   : > { %v1196_v24 = vrot.slane %v1145_v19, %v1195_v17  ;;  %v987_v6 = vld [vmem:[#allocation3 + $0x20] sm:$0xff] }
 0x34c   : > { %v1151_v22 = vpop.permute.xlu1 %1150  ;;  %v1203_v32 = vsel %vm1202_vm3, %v1201_v23, %v1196_v24  ;;  %v978_v23 = vld [vmem:[#allocation3 + $0x30] sm:$0xff]  ;;  %vm1331_vm3 = vcmp.gt.f32.partialorder %v2869_v12, 0.0 }
 0x34d   : > { %v1208_v27 = vrot.slane %v1151_v22, %v1207_v20  ;;  %v979_v22 = vld [vmem:[#allocation3] sm:$0xff] }
 0x34f   : > { %v1210_v37 = vsel %vm1209_vm4, %v1208_v27, %v1203_v32  ;;  %v980_v27 = vld [vmem:[#allocation3 + $0x58] sm:$0xff] }
 0x350   : > { %v1157_v30 = vpop.permute.xlu1 %1156  ;;  %v1154_v31 = vpop.permute.xlu0 %1153 }
 0x351   : > { %v1215_v33 = vrot.slane %v1154_v31, %v1214_v25  ;;  %v1222_v38 = vrot.slane %v1157_v30, %v1221_v28  ;;  %v995_v30 = vmul.f32 2.0, %v979_v22  ;;  %v994_v31 = vmul.f32 2.0, %v978_v23 }
 0x353   : > { %v1217_v40 = vsel %vm1216_vm5, %v1215_v33, %v1210_v37  ;;  %v981_v37 = vld [vmem:[#allocation3 + $0x18] sm:$0xff] }
 0x354   : > { %v1163_v41 = vpop.permute.xlu1 %1162  ;;  %v1160_v42 = vpop.permute.xlu0 %1159  ;;  %v1224_v48 = vsel %vm1223_vm6, %v1222_v38, %v1217_v40  ;;  %v984_v38 = vld [vmem:[#allocation3 + $0x8] sm:$0xff] }
 0x355   : > { %v1229_v43 = vrot.slane %v1160_v42, %v1228_v34  ;;  %v1236_v46 = vrot.slane %v1163_v41, %v1235_v39  ;;  %v996_v34 = vmul.f32 2.0, %v980_v27  ;;  %v2880_v41 = vld [vmem:[%s3369_s4 + $0x10] sm:$0xff]  ;;  %v2885_v42 = vld [vmem:[%s3369_s4 + $0x20] sm:$0xff] }
 0x356   : > { %vm1333_vm4 = vcmp.gt.f32.partialorder %v2880_v41, 0.0  ;;  %vm1335_vm5 = vcmp.gt.f32.partialorder %v2885_v42, 0.0  ;;  %v991_v27 = vld [vmem:[#allocation3 + $0x70] sm:$0xff] }
 0x357   : > { %v1231_v51 = vsel %vm1230_vm7, %v1229_v43, %v1224_v48  ;;  %v997_v43 = vmul.f32 2.0, %v981_v37  ;;  %v3024_v37 = vld [vmem:[%s3369_s4 + $0x68] sm:$0xff] }
 0x358   : > { %v1169_v53 = vpop.permute.xlu1 %1168  ;;  %v1166_v54 = vpop.permute.xlu0 %1165  ;;  %v1238_v59 = vsel %vm1237_vm8, %v1236_v46, %v1231_v51  ;;  %v986_v51 = vld [vmem:[#allocation3 + $0x40] sm:$0xff] }
 0x359   : > { %v1243_v55 = vrot.slane %v1166_v54, %v1242_v44  ;;  %v1250_v47 = vrot.slane %v1169_v53, %v1249_v49  ;;  %v1000_v44 = vmul.f32 2.0, %v984_v38  ;;  %v2904_v53 = vld [vmem:[%s3369_s4 + $0x18] sm:$0xff]  ;;  %v2909_v54 = vld [vmem:[%s3369_s4 + $0x30] sm:$0xff] }
 0x35a   : > { %vm1334_vm6 = vcmp.gt.f32.partialorder %v2904_v53, 0.0  ;;  %vm1337_vm7 = vcmp.gt.f32.partialorder %v2909_v54, 0.0 }
 0x35b   : > { %v1245_v62 = vsel %vm1244_vm9, %v1243_v55, %v1238_v59  ;;  %v999_v55 = vmul.f32 2.0, %v983_v50 }
 0x35c   : > { %v1175_v63 = vpop.permute.xlu1 %1174  ;;  %v1172_v0 = vpop.permute.xlu0 %1171  ;;  %v1252_v5 = vsel %vm1251_vm10, %v1250_v47, %v1245_v62  ;;  %v988_v62 = vld [vmem:[#allocation3 + $0x10] sm:$0xff] }
 0x35d   : > { %v1257_v1 = vrot.slane %v1172_v0, %v1256_v52  ;;  %v1264_v4 = vrot.slane %v1175_v63, %v1263_v60  ;;  %v1002_v52 = vmul.f32 2.0, %v986_v51  ;;  %v2928_v63 = vld [vmem:[%s3369_s4 + $0x28] sm:$0xff]  ;;  %v2933_v0 = vld [vmem:[%s3369_s4 + $0x40] sm:$0xff]  ;;  %v1561_v51 = vld [vmem:[%s3370_s5 + $0x70] sm:$0xff] }
 0x35e   : > { %vm1336_vm8 = vcmp.gt.f32.partialorder %v2928_v63, 0.0  ;;  %vm1339_vm9 = vcmp.gt.f32.partialorder %v2933_v0, 0.0  ;;  %v1559_v63 = vld [vmem:[%s3370_s5 + $0x60] sm:$0xff] }
 0x35f   : > { %v1259_v7 = vsel %vm1258_vm11, %v1257_v1, %v1252_v5  ;;  %v1001_v1 = vmul.f32 2.0, %v985_v61 }
 0x360   : > { %v1181_v57 = vpop.permute.xlu1 %1180  ;;  %v1178_v8 = vpop.permute.xlu0 %1177  ;;  %v1266_v15 = vsel %vm1265_vm12, %v1264_v4, %v1259_v7  ;;  %v990_v7 = vld [vmem:[#allocation3 + $0x60] sm:$0xff] }
 0x361   : > { %v1271_v9 = vrot.slane %v1178_v8, %v1270_v2  ;;  %v1278_v14 = vrot.slane %v1181_v57, %v1277_v56  ;;  %v1004_v2 = vmul.f32 2.0, %v988_v62  ;;  %v2952_v57 = vld [vmem:[%s3369_s4 + $0x38] sm:$0xff]  ;;  %v2957_v8 = vld [vmem:[%s3369_s4 + $0x50] sm:$0xff] }
 0x362   : > { %vm1338_vm10 = vcmp.gt.f32.partialorder %v2952_v57, 0.0  ;;  %vm1341_vm11 = vcmp.gt.f32.partialorder %v2957_v8, 0.0  ;;  %v1558_v57 = vld [vmem:[%s3370_s5 + $0x58] sm:$0xff] }
 0x363   : > { %v1273_v17 = vsel %vm1272_vm13, %v1271_v9, %v1266_v15  ;;  %v1003_v9 = vmul.f32 2.0, %v987_v6 }
 0x364   : > { %v1187_v18 = vpop.permute.xlu1 %1186  ;;  %v1184_v19 = vpop.permute.xlu0 %1183  ;;  %v1280_v25 = vsel %vm1279_vm14, %v1278_v14, %v1273_v17  ;;  %v989_v17 = vld [vmem:[#allocation3 + $0x38] sm:$0xff]  ;;  %vm1342_vm14 = vcmp.gt.f32.partialorder %v3000_v11, 0.0 }
 0x365   : > { %v1285_v20 = vrot.slane %v1184_v19, %v1284_v10  ;;  %v1292_v24 = vrot.slane %v1187_v18, %v1291_v16  ;;  %v1006_v10 = vmul.f32 2.0, %v990_v7  ;;  %v992_v18 = vld [vmem:[#allocation3 + $0x78] sm:$0xff]  ;;  %v2976_v19 = vld [vmem:[%s3369_s4 + $0x48] sm:$0xff] }
 0x366   : > { %v1008_v22 = vmul.f32 2.0, %v992_v18  ;;  %vm1340_vm12 = vcmp.gt.f32.partialorder %v2976_v19, 0.0  ;;  %v1556_v19 = vld [vmem:[%s3370_s5 + $0x48] sm:$0xff]  ;;  %v1554_v11 = vld [vmem:[%s3370_s5 + $0x38] sm:$0xff] }
 0x367   : > { %v1287_v26 = vsel %vm1286_vm15, %v1285_v20, %v1280_v25  ;;  %v2981_v20 = vld [vmem:[%s3369_s4 + $0x60] sm:$0xff] }
 0x368   : > { %v1190_v28 = vpop.permute.xlu0 %1189  ;;  %v1294_v33 = vsel %vm1293_vm0, %v1292_v24, %v1287_v26  ;;  %vm1343_vm13 = vcmp.gt.f32.partialorder %v2981_v20, 0.0  ;;  %vm1344_vm0 = vcmp.gt.f32.partialorder %v3024_v37, 0.0  ;;  %v1552_v37 = vld [vmem:[%s3370_s5 + $0x28] sm:$0xff] }
 0x369   : > { %v1299_v32 = vrot.slane %v1190_v28, %v1298_v21  ;;  %v1005_v21 = vmul.f32 2.0, %v989_v17  ;;  %v3005_v28 = vld [vmem:[%s3369_s4 + $0x70] sm:$0xff] }
 0x36a   : > { %vm1345_vm15 = vcmp.gt.f32.partialorder %v3005_v28, 0.0 }
 0x36b   : > { %v2871_v39 = vsel %vm1300_vm1, %v1299_v32, %v1294_v33 }
 0x36c   : > { %v1316_v36 = vadd.f32 %v2871_v39, %v995_v30  ;;  %v1315_v40 = vadd.f32 %v2871_v39, %v994_v31  ;;  %v1317_v48 = vadd.f32 %v2871_v39, %v996_v34  ;;  %v1319_v49 = vadd.f32 %v2871_v39, %v998_v35  ;;  %v993_v35 = vld [vmem:[#allocation3 + $0x28] sm:$0xff] }
 0x36d   : > { %v1318_v59 = vadd.f32 %v2871_v39, %v997_v43  ;;  %v1321_v60 = vadd.f32 %v2871_v39, %v1000_v44  ;;  %v1320_v5 = vadd.f32 %v2871_v39, %v999_v55  ;;  %v1323_v56 = vadd.f32 %v2871_v39, %v1002_v52  ;;  %v3041_v44 = vld [vmem:[%s3369_s4 + $0x78] sm:$0xff] }
 0x36e   : > { %v2889_v45 = vsel %vm1332_vm2, %v1316_v36, -1e+30  ;;  %v2893_v46 = vsel %vm1331_vm3, %v1315_v40, -1e+30  ;;  %v2913_v58 = vsel %vm1333_vm4, %v1317_v48, -1e+30  ;;  %v1322_v15 = vadd.f32 %v2871_v39, %v1001_v1 }
 0x36f   : > { %1365 = vmax.xlane.f32.xlu0 %v2889_v45  ;;  %1363 = vmax.xlane.f32.xlu1 %v2893_v46  ;;  %v2917_v47 = vsel %vm1335_vm5, %v1319_v49, -1e+30  ;;  %v2937_v3 = vsel %vm1334_vm6, %v1318_v59, -1e+30  ;;  %v2941_v4 = vsel %vm1337_vm7, %v1321_v60, -1e+30  ;;  %v1325_v16 = vadd.f32 %v2871_v39, %v1004_v2 }
 0x370   : > { %v2961_v13 = vsel %vm1336_vm8, %v1320_v5, -1e+30  ;;  %v2965_v14 = vsel %vm1339_vm9, %v1323_v56, -1e+30  ;;  %v2985_v23 = vsel %vm1338_vm10, %v1322_v15, -1e+30  ;;  %v1324_v25 = vadd.f32 %v2871_v39, %v1003_v9 }
 0x371   : > { %v2989_v24 = vsel %vm1341_vm11, %v1325_v16, -1e+30  ;;  %v1327_v26 = vadd.f32 %v2871_v39, %v1006_v10  ;;  %v1007_v30 = vmul.f32 2.0, %v991_v27  ;;  %v1326_v33 = vadd.f32 %v2871_v39, %v1005_v21  ;;  %v1562_v55 = vld [vmem:[%s3370_s5 + $0x78] sm:$0xff] }
 0x372   : > { %v3009_v31 = vsel %vm1340_vm12, %v1324_v25, -1e+30  ;;  %v1329_v34 = vadd.f32 %v2871_v39, %v1008_v22  ;;  %v1009_v43 = vmul.f32 2.0, %v993_v35  ;;  %vm1346_vm1 = vcmp.gt.f32.partialorder %v3041_v44, 0.0 }
 0x373   : > { %1367 = vmax.xlane.f32.xlu0 %v2913_v58  ;;  %1371 = vmax.xlane.f32.xlu1 %v2917_v47  ;;  %v3013_v32 = vsel %vm1343_vm13, %v1327_v26, -1e+30  ;;  %v3028_v38 = vsel %vm1342_vm14, %v1326_v33, -1e+30  ;;  %v1328_v40 = vadd.f32 %v2871_v39, %v1007_v30  ;;  %v1570_v52 = vpack.c.bf16 %v1562_v55, %v1561_v51 }
 0x374   : > { %v3032_v36 = vsel %vm1345_vm15, %v1329_v34, -1e+30  ;;  %v1330_v49 = vadd.f32 %v2871_v39, %v1009_v43 }
 0x375   : > { %v3045_v48 = vsel %vm1344_vm0, %v1328_v40, -1e+30  ;;  %2227 = vmatprep.subr.bf16.mxu0 %v1570_v52 }
 0x376   : > { %v3052_v50 = vsel %vm1346_vm1, %v1330_v49, -1e+30  ;;  %2228 = vmatpush3.bf16.msra.mxu0 %v1570_v52 }
 0x377   : > { %1369 = vmax.xlane.f32.xlu0 %v2937_v3  ;;  %1375 = vmax.xlane.f32.xlu1 %v2941_v4 }
 0x37b   : > { %1373 = vmax.xlane.f32.xlu0 %v2961_v13  ;;  %1379 = vmax.xlane.f32.xlu1 %v2965_v14 }
 0x37f   : > { %1377 = vmax.xlane.f32.xlu0 %v2985_v23  ;;  %1383 = vmax.xlane.f32.xlu1 %v2989_v24 }
 0x383   : > { %1381 = vmax.xlane.f32.xlu0 %v3009_v31  ;;  %1387 = vmax.xlane.f32.xlu1 %v3013_v32 }
 0x387   : > { %1385 = vmax.xlane.f32.xlu0 %v3028_v38  ;;  %1391 = vmax.xlane.f32.xlu1 %v3032_v36 }
 0x38b   : > { %1389 = vmax.xlane.f32.xlu0 %v3045_v48 }
 0x38f   : > { %1393 = vmax.xlane.f32.xlu0 %v3052_v50 }
 0x3f8   : > { %v1366_v39 = vpop.xlane.xlu0 %1365  ;;  %v1364_v59 = vpop.xlane.xlu1 %1363 }
 0x3f9   : > { %v1396_v60 = vsub.f32 %v2889_v45, %v1366_v39  ;;  %v1395_v61 = vsub.f32 %v2893_v46, %v1364_v59 }
 0x3fb   : > { %v1413_v62 = vmul.f32 1.442695, %v1396_v60  ;;  %v1411_v1 = vmul.f32 1.442695, %v1395_v61 }
 0x3fc   : > { %v1368_v2 = vpop.xlane.xlu0 %1367  ;;  %v1372_v5 = vpop.xlane.xlu1 %1371 }
 0x3fd   : > { %2344 = vpow2.f32 %v1413_v62  ;;  %v1397_v56 = vsub.f32 %v2913_v58, %v1368_v2  ;;  %v1399_v6 = vsub.f32 %v2917_v47, %v1372_v5 }
 0x3fe   : > { %2346 = vpow2.f32 %v1411_v1 }
 0x3ff   : > { %v1415_v7 = vmul.f32 1.442695, %v1397_v56  ;;  %v1419_v9 = vmul.f32 1.442695, %v1399_v6 }
 0x400   : > { %v1370_v10 = vpop.xlane.xlu0 %1369  ;;  %v1376_v15 = vpop.xlane.xlu1 %1375 }
 0x401   : > { %2348 = vpow2.f32 %v1415_v7  ;;  %v1398_v16 = vsub.f32 %v2937_v3, %v1370_v10  ;;  %v1401_v45 = vsub.f32 %v2941_v4, %v1376_v15  ;;  %v1560_v7 = vld [vmem:[%s3370_s5 + $0x68] sm:$0xff] }
 0x402   : > { %2350 = vpow2.f32 %v1419_v9  ;;  %v1569_v10 = vpack.c.bf16 %v1560_v7, %v1559_v63 }
 0x403   : > { %v1417_v46 = vmul.f32 1.442695, %v1398_v16  ;;  %v1423_v17 = vmul.f32 1.442695, %v1401_v45  ;;  %v1557_v45 = vld [vmem:[%s3370_s5 + $0x50] sm:$0xff] }
 0x404   : > { %v1374_v18 = vpop.xlane.xlu0 %1373  ;;  %v1380_v21 = vpop.xlane.xlu1 %1379  ;;  %2229 = vmatprep.subr.bf16.mxu0 %v1569_v10 }
 0x405   : > { %2352 = vpow2.f32 %v1417_v46  ;;  %v1400_v58 = vsub.f32 %v2961_v13, %v1374_v18  ;;  %v1403_v47 = vsub.f32 %v2965_v14, %v1380_v21  ;;  %2230 = vmatpush3.bf16.msra.mxu0 %v1569_v10 }
 0x406   : > { %2354 = vpow2.f32 %v1423_v17  ;;  %v1568_v17 = vpack.c.bf16 %v1558_v57, %v1557_v45 }
 0x407   : > { %v1421_v22 = vmul.f32 1.442695, %v1400_v58  ;;  %v1427_v25 = vmul.f32 1.442695, %v1403_v47  ;;  %v1555_v58 = vld [vmem:[%s3370_s5 + $0x40] sm:$0xff] }
 0x408   : > { %v1378_v26 = vpop.xlane.xlu0 %1377  ;;  %v1384_v27 = vpop.xlane.xlu1 %1383  ;;  %2231 = vmatprep.subr.bf16.mxu0 %v1568_v17 }
 0x409   : > { %2356 = vpow2.f32 %v1421_v22  ;;  %v1402_v3 = vsub.f32 %v2985_v23, %v1378_v26  ;;  %v1405_v4 = vsub.f32 %v2989_v24, %v1384_v27  ;;  %2232 = vmatpush3.bf16.msra.mxu0 %v1568_v17  ;;  %v1567_v22 = vpack.c.bf16 %v1556_v19, %v1555_v58  ;;  %v1553_v27 = vld [vmem:[%s3370_s5 + $0x30] sm:$0xff] }
 0x40a   : > { %v2345_v30 = vpop.eup %2344  ;;  %2358 = vpow2.f32 %v1427_v25 }
 0x40b   : > { %v2347_v33 = vpop.eup %2346  ;;  %v1425_v34 = vmul.f32 1.442695, %v1402_v3  ;;  %v3073_v35 = vsel %vm1332_vm2, %v2345_v30, 0.0  ;;  %v1431_v13 = vmul.f32 1.442695, %v1405_v4  ;;  %2233 = vmatprep.subr.bf16.mxu0 %v1567_v22  ;;  %v1566_v4 = vpack.c.bf16 %v1554_v11, %v1553_v27 }
 0x40c   : > { %1461 = vadd.xlane.f32.xlu0 %v3073_v35  ;;  %v1382_v14 = vpop.xlane.xlu0 %1381  ;;  %v3078_v40 = vsel %vm1331_vm3, %v2347_v33, 0.0  ;;  %v1388_v43 = vpop.xlane.xlu1 %1387  ;;  %v1551_v33 = vld [vmem:[%s3370_s5 + $0x20] sm:$0xff]  ;;  %vm1937_vm2 = vcmask 0  }
 0x40d   : > { %2360 = vpow2.f32 %v1425_v34  ;;  %v1404_v23 = vsub.f32 %v3009_v31, %v1382_v14  ;;  %1459 = vadd.xlane.f32.xlu1 %v3078_v40  ;;  %v1407_v24 = vsub.f32 %v3013_v32, %v1388_v43  ;;  %2234 = vmatpush3.bf16.msra.mxu0 %v1567_v22  ;;  %v1549_v14 = vld [vmem:[%s3370_s5 + $0x10] sm:$0xff]  ;;  %v1550_v43 = vld [vmem:[%s3370_s5 + $0x18] sm:$0xff] }
 0x40e   : > { %v2349_v29 = vpop.eup %2348  ;;  %2362 = vpow2.f32 %v1431_v13  ;;  %2235 = vmatprep.subr.bf16.mxu0 %v1566_v4  ;;  %v1565_v13 = vpack.c.bf16 %v1552_v37, %v1551_v33  ;;  %v1564_v44 = vpack.c.bf16 %v1550_v43, %v1549_v14 }
 0x40f   : > { %v1429_v49 = vmul.f32 1.442695, %v1404_v23  ;;  %v3085_v51 = vsel %vm1333_vm4, %v2349_v29, 0.0  ;;  %v1435_v55 = vmul.f32 1.442695, %v1407_v24  ;;  %v2351_v39 = vpop.eup %2350  ;;  %v1547_v23 = vld [vmem:[%s3370_s5] sm:$0xff] }
 0x410   : > { %v1386_v52 = vpop.xlane.xlu0 %1385  ;;  %v1392_v12 = vpop.xlane.xlu1 %1391  ;;  %v3097_v1 = vsel %vm1335_vm5, %v2351_v39, 0.0  ;;  %v1548_v24 = vld [vmem:[%s3370_s5 + $0x8] sm:$0xff] }
 0x411   : > { %2364 = vpow2.f32 %v1429_v49  ;;  %v1406_v59 = vsub.f32 %v3028_v38, %v1386_v52  ;;  %1463 = vadd.xlane.f32.xlu1 %v3085_v51  ;;  %v1409_v31 = vsub.f32 %v3032_v36, %v1392_v12  ;;  %2236 = vmatpush3.bf16.msra.mxu0 %v1566_v4  ;;  %v1563_v29 = vpack.c.bf16 %v1548_v24, %v1547_v23  ;;  %v1706_v49 = vld [vmem:[%s2551_s18 + $0x70] sm:$0xff]  ;;  %v1704_v52 = vld [vmem:[%s2551_s18 + $0x60] sm:$0xff]  ;;  %v1705_v39 = vld [vmem:[%s2551_s18 + $0x68] sm:$0xff] }
 0x412   : > { %v2353_v60 = vpop.eup %2352  ;;  %2366 = vpow2.f32 %v1435_v55  ;;  %2237 = vmatprep.subr.bf16.mxu0 %v1565_v13  ;;  %v1707_v55 = vld [vmem:[%s2551_s18 + $0x78] sm:$0xff] }
 0x413   : > { %v1433_v32 = vmul.f32 1.442695, %v1406_v59  ;;  %v3092_v61 = vsel %vm1334_vm6, %v2353_v60, 0.0  ;;  %v1439_v41 = vmul.f32 1.442695, %v1409_v31  ;;  %v2355_v38 = vpop.eup %2354  ;;  %v1715_v12 = vpack.c.bf16 %v1707_v55, %v1706_v49  ;;  %v1702_v31 = vld [vmem:[%s2551_s18 + $0x50] sm:$0xff] }
 0x414   : > { %1465 = vadd.xlane.f32.xlu0 %v3092_v61  ;;  %v1390_v62 = vpop.xlane.xlu0 %1389  ;;  %v3108_v42 = vsel %vm1337_vm7, %v2355_v38, 0.0  ;;  %v1714_v59 = vpack.c.bf16 %v1705_v39, %v1704_v52  ;;  %v1703_v60 = vld [vmem:[%s2551_s18 + $0x58] sm:$0xff] }
 0x415   : > { %2368 = vpow2.f32 %v1433_v32  ;;  %v1408_v2 = vsub.f32 %v3045_v48, %v1390_v62  ;;  %1467 = vadd.xlane.f32.xlu1 %v3097_v1  ;;  %2238 = vmatpush3.bf16.msra.mxu0 %v1565_v13  ;;  %v1713_v32 = vpack.c.bf16 %v1703_v60, %v1702_v31 }
 0x416   : > { %v2357_v36 = vpop.eup %2356  ;;  %2370 = vpow2.f32 %v1439_v41  ;;  %2239 = vmatprep.subr.bf16.mxu0 %v1564_v44  ;;  %2259 = vmatprep.subr.bf16.mxu1 %v1715_v12 }
 0x417   : > { %v1437_v5 = vmul.f32 1.442695, %v1408_v2  ;;  %v3103_v53 = vsel %vm1336_vm8, %v2357_v36, 0.0  ;;  %v2359_v6 = vpop.eup %2358  ;;  %2260 = vmatpush3.bf16.msra.mxu1 %v1715_v12 }
 0x418   : > { %1469 = vadd.xlane.f32.xlu0 %v3103_v53  ;;  %v1394_v56 = vpop.xlane.xlu0 %1393  ;;  %2261 = vmatprep.subr.bf16.mxu1 %v1714_v59 }
 0x419   : > { %2372 = vpow2.f32 %v1437_v5  ;;  %v1410_v48 = vsub.f32 %v3052_v50, %v1394_v56  ;;  %1471 = vadd.xlane.f32.xlu1 %v3108_v42  ;;  %v3125_v50 = vsel %vm1339_vm9, %v2359_v6, 0.0  ;;  %2240 = vmatpush3.bf16.msra.mxu0 %v1564_v44 }
 0x41a   : > { %v2361_v9 = vpop.eup %2360  ;;  %2241 = vmatprep.subr.bf16.mxu0 %v1563_v29 }
 0x41b   : > { %v1441_v15 = vmul.f32 1.442695, %v1410_v48  ;;  %v3120_v54 = vsel %vm1338_vm10, %v2361_v9, 0.0  ;;  %v2363_v16 = vpop.eup %2362  ;;  %2262 = vmatpush3.bf16.msra.mxu1 %v1714_v59 }
 0x41c   : > { %1473 = vadd.xlane.f32.xlu0 %v3120_v54  ;;  %v3141_v18 = vsel %vm1341_vm11, %v2363_v16, 0.0  ;;  %2263 = vmatprep.subr.bf16.mxu1 %v1713_v32 }
 0x41d   : > { %2374 = vpow2.f32 %v1441_v15  ;;  %1475 = vadd.xlane.f32.xlu1 %v3125_v50  ;;  %2242 = vmatpush3.bf16.msra.mxu0 %v1563_v29 }
 0x41e   : > { %v2365_v46 = vpop.eup %2364 }
 0x41f   : > { %v3136_v0 = vsel %vm1340_vm12, %v2365_v46, 0.0  ;;  %v2367_v21 = vpop.eup %2366  ;;  %2264 = vmatpush3.bf16.msra.mxu1 %v1713_v32 }
 0x420   : > { %1477 = vadd.xlane.f32.xlu0 %v3136_v0  ;;  %v3157_v25 = vsel %vm1343_vm13, %v2367_v21, 0.0 }
 0x421   : > { %1479 = vadd.xlane.f32.xlu1 %v3141_v18 }
 0x422   : > { %v2369_v47 = vpop.eup %2368 }
 0x423   : > { %v3152_v8 = vsel %vm1342_vm14, %v2369_v47, 0.0  ;;  %v2371_v26 = vpop.eup %2370 }
 0x424   : > { %1481 = vadd.xlane.f32.xlu0 %v3152_v8  ;;  %v3173_v30 = vsel %vm1345_vm15, %v2371_v26, 0.0 }
 0x425   : > { %1483 = vadd.xlane.f32.xlu1 %v3157_v25 }
 0x426   : > { %v2373_v3 = vpop.eup %2372 }
 0x427   : > { %v3168_v20 = vsel %vm1344_vm0, %v2373_v3, 0.0 }
 0x428   : > { %1485 = vadd.xlane.f32.xlu0 %v3168_v20 }
 0x429   : > { %1487 = vadd.xlane.f32.xlu1 %v3173_v30 }
 0x42a   : > { %v2375_v34 = vpop.eup %2374 }
 0x42b   : > { %v3184_v28 = vsel %vm1346_vm1, %v2375_v34, 0.0 }
 0x42c   : > { %1489 = vadd.xlane.f32.xlu0 %v3184_v28 }
 0x495   : > { %v1462_v41 = vpop.xlane.xlu0 %1461 }
 0x496   : > { %v1492_v62 = vadd.f32 1e-12, %v1462_v41  ;;  %v1460_v38 = vpop.xlane.xlu1 %1459 }
 0x497   : > { %v1491_v2 = vadd.f32 1e-12, %v1460_v38 }
 0x498   : > { %2376 = vrcp.f32 %v1492_v62 }
 0x499   : > { %2378 = vrcp.f32 %v1491_v2 }
 0x49a   : > { %v1464_v36 = vpop.xlane.xlu1 %1463 }
 0x49b   : > { %v1493_v5 = vadd.f32 1e-12, %v1464_v36 }
 0x49d   : > { %2380 = vrcp.f32 %v1493_v5  ;;  %v1466_v56 = vpop.xlane.xlu0 %1465 }
 0x49e   : > { %v1494_v6 = vadd.f32 1e-12, %v1466_v56  ;;  %v1468_v48 = vpop.xlane.xlu1 %1467 }
 0x49f   : > { %v1495_v63 = vadd.f32 1e-12, %v1468_v48 }
 0x4a0   : > { %2382 = vrcp.f32 %v1494_v6 }
 0x4a1   : > { %2384 = vrcp.f32 %v1495_v63  ;;  %v1470_v7 = vpop.xlane.xlu0 %1469 }
 0x4a2   : > { %v1496_v9 = vadd.f32 1e-12, %v1470_v7  ;;  %v1472_v10 = vpop.xlane.xlu1 %1471 }
 0x4a3   : > { %v1497_v15 = vadd.f32 1e-12, %v1472_v10 }
 0x4a4   : > { %2386 = vrcp.f32 %v1496_v9 }
 0x4a5   : > { %v2377_v16 = vpop.eup %2376  ;;  %2388 = vrcp.f32 %v1497_v15  ;;  %v1474_v45 = vpop.xlane.xlu0 %1473 }
 0x4a6   : > { %v2379_v57 = vpop.eup %2378  ;;  %v1498_v46 = vadd.f32 1e-12, %v1474_v45  ;;  %v1476_v17 = vpop.xlane.xlu1 %1475  ;;  %v3206_v21 = vmul.f32 %v2377_v16, %v3073_v35 }
 0x4a7   : > { %v1499_v58 = vadd.f32 1e-12, %v1476_v17  ;;  %v3209_v19 = vmul.f32 %v2379_v57, %v3078_v40 }
 0x4a8   : > { %2390 = vrcp.f32 %v1498_v46  ;;  %v1847_v47 = vadd.f32 1e-12, %v3206_v21 }
 0x4a9   : > { %2392 = vrcp.f32 %v1499_v58  ;;  %v1478_v22 = vpop.xlane.xlu0 %1477  ;;  %v1539_v26 = vpack.c.bf16 %v3206_v21, %v3209_v19  ;;  %v1846_v27 = vadd.f32 1e-12, %v3209_v19 }
 0x4aa   : > { %v2381_v11 = vpop.eup %2380  ;;  %v1500_v3 = vadd.f32 1e-12, %v1478_v22  ;;  %v1480_v4 = vpop.xlane.xlu1 %1479  ;;  %2394 = vlog2.f32 %v1847_v47 }
 0x4ab   : > { %v1501_v35 = vadd.f32 1e-12, %v1480_v4  ;;  %2243 = vmatprep.mubr.bf16.mxu0 %v1539_v26  ;;  %2396 = vlog2.f32 %v1846_v27  ;;  %v3216_v40 = vmul.f32 %v2381_v11, %v3085_v51 }
 0x4ac   : > { %2398 = vrcp.f32 %v1500_v3 }
 0x4ad   : > { %v2383_v33 = vpop.eup %2382  ;;  %2400 = vrcp.f32 %v1501_v35  ;;  %v1482_v37 = vpop.xlane.xlu0 %1481  ;;  %v1848_v34 = vadd.f32 1e-12, %v3216_v40 }
 0x4ae   : > { %v2385_v13 = vpop.eup %2384  ;;  %v1502_v14 = vadd.f32 1e-12, %v1482_v37  ;;  %v1484_v43 = vpop.xlane.xlu1 %1483  ;;  %v3220_v44 = vmul.f32 %v2383_v33, %v3092_v61 }
 0x4af   : > { %v1503_v23 = vadd.f32 1e-12, %v1484_v43  ;;  %2402 = vlog2.f32 %v1848_v34  ;;  %v3223_v24 = vmul.f32 %v2385_v13, %v3097_v1 }
 0x4b0   : > { %2404 = vrcp.f32 %v1502_v14  ;;  %v1540_v51 = vpack.c.bf16 %v3220_v44, %v3216_v40  ;;  %v1849_v29 = vadd.f32 1e-12, %v3220_v44 }
 0x4b1   : > { %v2387_v49 = vpop.eup %2386  ;;  %2406 = vrcp.f32 %v1503_v23  ;;  %v1486_v55 = vpop.xlane.xlu0 %1485  ;;  %v1850_v52 = vadd.f32 1e-12, %v3223_v24 }
 0x4b2   : > { %v2389_v12 = vpop.eup %2388  ;;  %v1504_v39 = vadd.f32 1e-12, %v1486_v55  ;;  %v1488_v61 = vpop.xlane.xlu1 %1487  ;;  %2244 = vmatmul.mubr.bf16.vlgmr.msra.gmra.mxu0 %v1540_v51  ;;  %2408 = vlog2.f32 %v1849_v29  ;;  %v3230_v59 = vmul.f32 %v2387_v49, %v3103_v53 }
 0x4b3   : > { %v1505_v1 = vadd.f32 1e-12, %v1488_v61  ;;  %2410 = vlog2.f32 %v1850_v52  ;;  %v3233_v31 = vmul.f32 %v2389_v12, %v3108_v42 }
 0x4b4   : > { %2412 = vrcp.f32 %v1504_v39  ;;  %v1541_v60 = vpack.c.bf16 %v3230_v59, %v3223_v24  ;;  %v1851_v32 = vadd.f32 1e-12, %v3230_v59 }
 0x4b5   : > { %v2391_v41 = vpop.eup %2390  ;;  %2414 = vrcp.f32 %v1505_v1  ;;  %v1490_v62 = vpop.xlane.xlu0 %1489  ;;  %v1852_v38 = vadd.f32 1e-12, %v3233_v31 }
 0x4b6   : > { %v2393_v2 = vpop.eup %2392  ;;  %v1506_v36 = vadd.f32 1e-12, %v1490_v62  ;;  %2247 = vmatprep.mubr.bf16.mxu0 %v1541_v60  ;;  %2416 = vlog2.f32 %v1851_v32  ;;  %v3240_v53 = vmul.f32 %v2391_v41, %v3120_v54 }
 0x4b7   : > { %v2395_v42 = vpop.eup %2394  ;;  %2418 = vlog2.f32 %v1852_v38  ;;  %v3243_v5 = vmul.f32 %v2393_v2, %v3125_v50 }
 0x4b8   : > { %v2397_v56 = vpop.eup %2396  ;;  %v1865_v6 = vmul.f32 0.6931472, %v2395_v42  ;;  %2420 = vrcp.f32 %v1506_v36  ;;  %v1542_v48 = vpack.c.bf16 %v3240_v53, %v3233_v31  ;;  %v1853_v63 = vadd.f32 1e-12, %v3240_v53 }
 0x4b9   : > { %v2399_v7 = vpop.eup %2398  ;;  %v1863_v9 = vmul.f32 0.6931472, %v2397_v56  ;;  %v1854_v10 = vadd.f32 1e-12, %v3243_v5 }
 0x4ba   : > { %v2401_v15 = vpop.eup %2400  ;;  %2248 = vmatmul.mubr.bf16.gmra.mxu0 %v1542_v48  ;;  %2422 = vlog2.f32 %v1853_v63  ;;  %v3250_v54 = vmul.f32 %v2399_v7, %v3136_v0  ;;  %v1895_v57 = vmul.f32 %v1865_v6, %v3206_v21 }
 0x4bb   : > { %2424 = vlog2.f32 %v1854_v10  ;;  %v3253_v50 = vmul.f32 %v2401_v15, %v3141_v18  ;;  %v1894_v45 = vmul.f32 %v1863_v9, %v3209_v19 }
 0x4bc   : > { %v2403_v16 = vpop.eup %2402  ;;  %v1543_v46 = vpack.c.bf16 %v3250_v54, %v3243_v5  ;;  %v1855_v17 = vadd.f32 1e-12, %v3250_v54 }
 0x4bd   : > { %v2405_v58 = vpop.eup %2404  ;;  %v1867_v47 = vmul.f32 0.6931472, %v2403_v16  ;;  %v1856_v22 = vadd.f32 1e-12, %v3253_v50  ;;  %v1910_v11 = vadd.f32 %v1895_v57, %v1894_v45 }
 0x4be   : > { %v2407_v0 = vpop.eup %2406  ;;  %2251 = vmatprep.mubr.bf16.mxu0 %v1543_v46  ;;  %2426 = vlog2.f32 %v1855_v17  ;;  %v3262_v18 = vmul.f32 %v2405_v58, %v3152_v8 }
 0x4bf   : > { %v2409_v26 = vpop.eup %2408  ;;  %v1896_v19 = vmul.f32 %v1867_v47, %v3216_v40  ;;  %2428 = vlog2.f32 %v1856_v22  ;;  %v3266_v21 = vmul.f32 %v2407_v0, %v3157_v25 }
 0x4c0   : > { %v2411_v27 = vpop.eup %2410  ;;  %v1869_v3 = vmul.f32 0.6931472, %v2409_v26  ;;  %v1544_v4 = vpack.c.bf16 %v3262_v18, %v3253_v50  ;;  %v1857_v35 = vadd.f32 1e-12, %v3262_v18 }
 0x4c1   : > { %v2413_v33 = vpop.eup %2412  ;;  %v1871_v37 = vmul.f32 0.6931472, %v2411_v27  ;;  %v1858_v8 = vadd.f32 1e-12, %v3266_v21  ;;  %v1911_v40 = vadd.f32 %v1910_v11, %v1896_v19 }
 0x4c2   : > { %v2415_v34 = vpop.eup %2414  ;;  %v1897_v13 = vmul.f32 %v1869_v3, %v3220_v44  ;;  %2252 = vmatmul.mubr.bf16.gmra.mxu0 %v1544_v4  ;;  %2430 = vlog2.f32 %v1857_v35  ;;  %v1536_v25 = vmul.f32 %v2413_v33, %v3168_v20  ;;  %v1700_v35 = vld [vmem:[%s2551_s18 + $0x40] sm:$0xff] }
 0x4c3   : > { %v2417_v14 = vpop.eup %2416  ;;  %v1898_v43 = vmul.f32 %v1871_v37, %v3223_v24  ;;  %2432 = vlog2.f32 %v1858_v8  ;;  %v1537_v23 = vmul.f32 %v2415_v34, %v3173_v30  ;;  %v1698_v37 = vld [vmem:[%s2551_s18 + $0x30] sm:$0xff]  ;;  %v1699_v8 = vld [vmem:[%s2551_s18 + $0x38] sm:$0xff] }
 0x4c4   : > { %v2419_v51 = vpop.eup %2418  ;;  %v1912_v29 = vadd.f32 %v1911_v40, %v1897_v13  ;;  %v1873_v49 = vmul.f32 0.6931472, %v2417_v14  ;;  %v1545_v55 = vpack.c.bf16 %v1536_v25, %v3266_v21  ;;  %v1859_v52 = vadd.f32 1e-12, %v1536_v25  ;;  %v1696_v13 = vld [vmem:[%s2551_s18 + $0x20] sm:$0xff]  ;;  %v1697_v40 = vld [vmem:[%s2551_s18 + $0x28] sm:$0xff] }
 0x4c5   : > { %v2421_v12 = vpop.eup %2420  ;;  %v1875_v39 = vmul.f32 0.6931472, %v2419_v51  ;;  %v1860_v44 = vadd.f32 1e-12, %v1537_v23  ;;  %v1711_v34 = vpack.c.bf16 %v1699_v8, %v1698_v37  ;;  %v1694_v14 = vld [vmem:[%s2551_s18 + $0x10] sm:$0xff]  ;;  %v1692_v51 = vld [vmem:[%s2551_s18] sm:$0xff] }
 0x4c6   : > { %v1899_v61 = vmul.f32 %v1873_v49, %v3230_v59  ;;  %v1913_v1 = vadd.f32 %v1912_v29, %v1898_v43  ;;  %2255 = vmatprep.mubr.bf16.mxu0 %v1545_v55  ;;  %v1538_v20 = vmul.f32 %v2421_v12, %v3184_v28  ;;  %2434 = vlog2.f32 %v1859_v52  ;;  %v1695_v43 = vld [vmem:[%s2551_s18 + $0x18] sm:$0xff]  ;;  %v1693_v29 = vld [vmem:[%s2551_s18 + $0x8] sm:$0xff] }
 0x4c7   : > { %v2423_v24 = vpop.eup %2422  ;;  %v1900_v60 = vmul.f32 %v1875_v39, %v3233_v31  ;;  %2436 = vlog2.f32 %v1860_v44  ;;  %v1708_v49 = vpack.c.bf16 %v1693_v29, %v1692_v51 }
 0x4c8   : > { %v2425_v30 = vpop.eup %2424  ;;  %v1914_v32 = vadd.f32 %v1913_v1, %v1899_v61  ;;  %v1877_v41 = vmul.f32 0.6931472, %v2423_v24  ;;  %v1546_v62 = vpack.c.bf16 %v1538_v20, %v1537_v23  ;;  %v1861_v38 = vadd.f32 1e-12, %v1538_v20 }
 0x4c9   : > { %v1879_v2 = vmul.f32 0.6931472, %v2425_v30 }
 0x4ca   : > { %v1901_v36 = vmul.f32 %v1877_v41, %v3240_v53  ;;  %v1915_v42 = vadd.f32 %v1914_v32, %v1900_v60  ;;  %2256 = vmatmul.mubr.bf16.gmra.mxu0 %v1546_v62  ;;  %2438 = vlog2.f32 %v1861_v38 }
 0x4cb   : > { %v2427_v59 = vpop.eup %2426  ;;  %v1902_v48 = vmul.f32 %v1879_v2, %v3243_v5 }
 0x4cc   : > { %v2429_v56 = vpop.eup %2428  ;;  %v1916_v6 = vadd.f32 %v1915_v42, %v1901_v36  ;;  %v1881_v28 = vmul.f32 0.6931472, %v2427_v59 }
 0x4cd   : > { %v1883_v63 = vmul.f32 0.6931472, %v2429_v56 }
 0x4ce   : > { %v1903_v31 = vmul.f32 %v1881_v28, %v3250_v54  ;;  %v1917_v7 = vadd.f32 %v1916_v6, %v1902_v48 }
 0x4cf   : > { %v2431_v9 = vpop.eup %2430  ;;  %v1904_v15 = vmul.f32 %v1883_v63, %v3253_v50 }
 0x4d0   : > { %v2433_v10 = vpop.eup %2432  ;;  %v1885_v16 = vmul.f32 0.6931472, %v2431_v9  ;;  %v1918_v45 = vadd.f32 %v1917_v7, %v1903_v31 }
 0x4d1   : > { %v1887_v53 = vmul.f32 0.6931472, %v2433_v10 }
 0x4d2   : > { %v1905_v57 = vmul.f32 %v1885_v16, %v3262_v18  ;;  %v1919_v46 = vadd.f32 %v1918_v45, %v1904_v15 }
 0x4d3   : > { %v2435_v17 = vpop.eup %2434  ;;  %v1906_v5 = vmul.f32 %v1887_v53, %v3266_v21  ;;  %v1701_v21 = vld [vmem:[%s2551_s18 + $0x48] sm:$0xff]  ;;  %v1845_v53 = vld [vmem:[#allocation6] sm:$0x1] }
 0x4d4   : > { %v2437_v58 = vpop.eup %2436  ;;  %v1889_v47 = vmul.f32 0.6931472, %v2435_v17  ;;  %v1920_v54 = vadd.f32 %v1919_v46, %v1905_v57  ;;  %v1712_v33 = vpack.c.bf16 %v1701_v21, %v1700_v35  ;;  %v1670_v17 = vld [vmem:[#allocation5 + $0x10] sm:$0xff] }
 0x4d5   : > { %v1891_v22 = vmul.f32 0.6931472, %v2437_v58 }
 0x4d6   : > { %v1907_v0 = vmul.f32 %v1889_v47, %v1536_v25  ;;  %v1921_v50 = vadd.f32 %v1920_v54, %v1906_v5  ;;  %2265 = vmatprep.subr.bf16.mxu1 %v1712_v33  ;;  %v1710_v25 = vpack.c.bf16 %v1697_v40, %v1696_v13  ;;  %v1668_v47 = vld [vmem:[#allocation5 + $0x28] sm:$0xff] }
 0x4d7   : > { %v2439_v26 = vpop.eup %2438  ;;  %v1908_v27 = vmul.f32 %v1891_v22, %v1537_v23  ;;  %2266 = vmatpush3.bf16.msra.mxu1 %v1712_v33  ;;  %v1709_v23 = vpack.c.bf16 %v1695_v43, %v1694_v14  ;;  %v1671_v22 = vld [vmem:[#allocation5 + $0x40] sm:$0xff]  ;;  %v1675_v33 = vld [vmem:[#allocation5 + $0x38] sm:$0xff] }
 0x4d8   : > { %v1893_v19 = vmul.f32 0.6931472, %v2439_v26  ;;  %v1922_v18 = vadd.f32 %v1921_v50, %v1907_v0  ;;  %2267 = vmatprep.subr.bf16.mxu1 %v1711_v34  ;;  %v1669_v26 = vld [vmem:[#allocation5 + $0x68] sm:$0xff] }
 0x4da   : > { %v1909_v11 = vmul.f32 %v1893_v19, %v1538_v20  ;;  %v1923_v3 = vadd.f32 %v1922_v18, %v1908_v27  ;;  %v1674_v18 = vld [vmem:[#allocation5 + $0x70] sm:$0xff] }
 0x4db   : > { %2268 = vmatpush3.bf16.msra.mxu1 %v1711_v34  ;;  %v1673_v34 = vld [vmem:[#allocation5 + $0x30] sm:$0xff] }
 0x4dc   : > { %v1924_v4 = vadd.f32 %v1923_v3, %v1909_v11  ;;  %2269 = vmatprep.subr.bf16.mxu1 %v1710_v25 }
 0x4de   : > { %1925 = vadd.xlane.f32.xlu1 %v1924_v4  ;;  %v1672_v4 = vld [vmem:[#allocation5 + $0x48] sm:$0xff] }
 0x4df   : > { %2270 = vmatpush3.bf16.msra.mxu1 %v1710_v25  ;;  %v1678_v25 = vld [vmem:[#allocation5 + $0x18] sm:$0xff] }
 0x4e0   : > { %2271 = vmatprep.subr.bf16.mxu1 %v1709_v23 }
 0x4e3   : > { %2272 = vmatpush3.bf16.msra.mxu1 %v1709_v23  ;;  %v1676_v23 = vld [vmem:[#allocation5 + $0x20] sm:$0xff] }
 0x4e4   : > { %2273 = vmatprep.subr.bf16.mxu1 %v1708_v49 }
 0x4e7   : > { %2274 = vmatpush3.bf16.msra.mxu1 %v1708_v49  ;;  %v1679_v49 = vld [vmem:[#allocation5 + $0x58] sm:$0xff] }
 0x567   : > { %v1926_v55 = vpop.xlane.xlu1 %1925 }
 0x568   : > { %v1927_v52 = vrot.slane %v1926_v55, 4 }
 0x56a   : > { %v1928_v12 = vadd.f32 %v1927_v52, %v1926_v55 }
 0x56c   : > { %v1929_v39 = vrot.slane %v1928_v12, 2 }
 0x56e   : > { %v1930_v44 = vadd.f32 %v1929_v39, %v1928_v12  ;;  %v1677_v12 = vld [vmem:[#allocation5 + $0x78] sm:$0xff] }
 0x570   : > { %v1931_v61 = vrot.slane %v1930_v44, 1 }
 0x572   : > { %v2245_v1 = vpop.f32.mrf.mxu0  ;;  %v1932_v20 = vadd.f32 %v1931_v61, %v1930_v44  ;;  %v1682_v61 = vld [vmem:[#allocation5 + $0x60] sm:$0xff] }
 0x574   : > { %v1605_v24 = vpop.f32.mrf.mxu0  ;;  %2323 = vpush %v1932_v20 }
 0x576   : > { %v2246_v60 = vpop.f32.mrf.mxu0 }
 0x577   : > { %v1685_v41 = vpack.c.bf16 %v2246_v60, %v2245_v1 }
 0x578   : > { %v1608_v30 = vpop.f32.mrf.mxu0 }
 0x579   : > { %v1684_v32 = vpack.c.bf16 %v1608_v30, %v1605_v24  ;;  %v1680_v24 = vld [vmem:[#allocation5] sm:$0xff] }
 0x57a   : > { %v2249_v62 = vpop.f32.mrf.mxu0 }
 0x57b   : > { %2275 = vmatprep.mubr.bf16.mxu1 %v1684_v32  ;;  %v1683_v32 = vld [vmem:[#allocation5 + $0x50] sm:$0xff] }
 0x57c   : > { %v1621_v38 = vpop.f32.mrf.mxu0  ;;  %2276 = vmatmul.mubr.bf16.vlgmr.msra.gmra.mxu1 %v1685_v41 }
 0x57e   : > { %v2250_v2 = vpop.f32.mrf.mxu0 }
 0x57f   : > { %v1687_v59 = vpack.c.bf16 %v2250_v2, %v2249_v62 }
 0x580   : > { %v1624_v36 = vpop.f32.mrf.mxu0 }
 0x581   : > { %v1686_v42 = vpack.c.bf16 %v1624_v36, %v1621_v38  ;;  %v1681_v38 = vld [vmem:[#allocation5 + $0x8] sm:$0xff] }
 0x582   : > { %v2253_v56 = vpop.f32.mrf.mxu0 }
 0x583   : > { %2279 = vmatprep.mubr.bf16.mxu1 %v1686_v42 }
 0x584   : > { %v1637_v6 = vpop.f32.mrf.mxu0  ;;  %2280 = vmatmul.mubr.bf16.gmra.mxu1 %v1687_v59 }
 0x586   : > { %v2254_v28 = vpop.f32.mrf.mxu0 }
 0x587   : > { %v1689_v31 = vpack.c.bf16 %v2254_v28, %v2253_v56 }
 0x588   : > { %v1640_v48 = vpop.f32.mrf.mxu0 }
 0x589   : > { %v1688_v63 = vpack.c.bf16 %v1640_v48, %v1637_v6 }
 0x58a   : > { %v2257_v7 = vpop.f32.mrf.mxu0 }
 0x58b   : > { %2283 = vmatprep.mubr.bf16.mxu1 %v1688_v63 }
 0x58c   : > { %v1653_v9 = vpop.f32.mrf.mxu0  ;;  %2284 = vmatmul.mubr.bf16.gmra.mxu1 %v1689_v31 }
 0x58e   : > { %v2258_v10 = vpop.f32.mrf.mxu0 }
 0x58f   : > { %v1691_v45 = vpack.c.bf16 %v2258_v10, %v2257_v7 }
 0x590   : > { %v1656_v15 = vpop.f32.mrf.mxu0 }
 0x591   : > { %v1690_v16 = vpack.c.bf16 %v1656_v15, %v1653_v9 }
 0x593   : > { %2287 = vmatprep.mubr.bf16.mxu1 %v1690_v16 }
 0x594   : > { %2288 = vmatmul.mubr.bf16.gmra.mxu1 %v1691_v45 }
 0x5a5   : > { %s2324_s18 = spop %2323 }
 0x5a6   : > { %s1934_s13 = ssub.f32 0.0, %s2324_s18 }
 0x5a8   : > { %v1935_v57 = vstv %s1934_s13 }
 0x5a9   : > { %v1936_v46 = vadd.f32 %v1935_v57, %v1845_v53 }
 0x5ab   : > { %1938 = vst.msk [vmem:[#allocation6] sm:$0x1] %vm1937_vm2, %v1936_v46 }
 0x63c   : > { %v2277_v58 = vpop.f32.mrf.mxu1 }
 0x63d   : > { %v1815_v5 = vadd.f32 %v2277_v58, %v1670_v17 }
 0x63e   : > { %v1750_v54 = vpop.f32.mrf.mxu1 }
 0x63f   : > { %1831 = vst [vmem:[#allocation5 + $0x10] sm:$0xff] %v1815_v5  ;;  %v1813_v0 = vadd.f32 %v1750_v54, %v1668_v47 }
 0x640   : > { %v2278_v50 = vpop.f32.mrf.mxu1 }
 0x641   : > { %1829 = vst [vmem:[#allocation5 + $0x28] sm:$0xff] %v1813_v0  ;;  %v1816_v19 = vadd.f32 %v2278_v50, %v1671_v22 }
 0x642   : > { %v1753_v27 = vpop.f32.mrf.mxu1 }
 0x643   : > { %1832 = vst [vmem:[#allocation5 + $0x40] sm:$0xff] %v1816_v19  ;;  %v1814_v11 = vadd.f32 %v1753_v27, %v1669_v26 }
 0x644   : > { %v2281_v3 = vpop.f32.mrf.mxu1 }
 0x645   : > { %1830 = vst [vmem:[#allocation5 + $0x68] sm:$0xff] %v1814_v11  ;;  %v1819_v35 = vadd.f32 %v2281_v3, %v1674_v18 }
 0x646   : > { %v1766_v21 = vpop.f32.mrf.mxu1 }
 0x647   : > { %1835 = vst [vmem:[#allocation5 + $0x70] sm:$0xff] %v1819_v35  ;;  %v1817_v37 = vadd.f32 %v1766_v21, %v1672_v4 }
 0x648   : > { %v2282_v8 = vpop.f32.mrf.mxu1 }
 0x649   : > { %1833 = vst [vmem:[#allocation5 + $0x48] sm:$0xff] %v1817_v37  ;;  %v1820_v13 = vadd.f32 %v2282_v8, %v1675_v33 }
 0x64a   : > { %v1769_v40 = vpop.f32.mrf.mxu1 }
 0x64b   : > { %1836 = vst [vmem:[#allocation5 + $0x38] sm:$0xff] %v1820_v13  ;;  %v1818_v14 = vadd.f32 %v1769_v40, %v1673_v34 }
 0x64c   : > { %v2285_v43 = vpop.f32.mrf.mxu1 }
 0x64d   : > { %1834 = vst [vmem:[#allocation5 + $0x30] sm:$0xff] %v1818_v14  ;;  %v1823_v51 = vadd.f32 %v2285_v43, %v1678_v25 }
 0x64e   : > { %v1782_v29 = vpop.f32.mrf.mxu1 }
 0x64f   : > { %1839 = vst [vmem:[#allocation5 + $0x18] sm:$0xff] %v1823_v51  ;;  %v1821_v55 = vadd.f32 %v1782_v29, %v1676_v23 }
 0x650   : > { %v2286_v52 = vpop.f32.mrf.mxu1 }
 0x651   : > { %1837 = vst [vmem:[#allocation5 + $0x20] sm:$0xff] %v1821_v55  ;;  %v1824_v39 = vadd.f32 %v2286_v52, %v1679_v49 }
 0x652   : > { %v1785_v44 = vpop.f32.mrf.mxu1 }
 0x653   : > { %1840 = vst [vmem:[#allocation5 + $0x58] sm:$0xff] %v1824_v39  ;;  %v1822_v1 = vadd.f32 %v1785_v44, %v1677_v12 }
 0x654   : > { %v2289_v20 = vpop.f32.mrf.mxu1 }
 0x655   : > { %1838 = vst [vmem:[#allocation5 + $0x78] sm:$0xff] %v1822_v1  ;;  %v1827_v60 = vadd.f32 %v2289_v20, %v1682_v61 }
 0x656   : > { %v1798_v30 = vpop.f32.mrf.mxu1 }
 0x657   : > { %1843 = vst [vmem:[#allocation5 + $0x60] sm:$0xff] %v1827_v60  ;;  %v1825_v41 = vadd.f32 %v1798_v30, %v1680_v24 }
 0x658   : > { %v2290_v62 = vpop.f32.mrf.mxu1 }
 0x659   : > { %1841 = vst [vmem:[#allocation5] sm:$0xff] %v1825_v41  ;;  %v1828_v2 = vadd.f32 %v2290_v62, %v1683_v32  ;;  %1942 = sbr.rel (%p2104_p5) target bundleno = 1644 (0x66c), region = 60 }
 0x65a   : > { %v1801_v36 = vpop.f32.mrf.mxu1 }
 0x65b   : > { %1844 = vst [vmem:[#allocation5 + $0x50] sm:$0xff] %v1828_v2  ;;  %v1826_v42 = vadd.f32 %v1801_v36, %v1681_v38 }
 0x65d   : > { %1842 = vst [vmem:[#allocation5 + $0x8] sm:$0xff] %v1826_v42 }
 0x65e   : > { %v1943_v59 = vld [vmem:[#allocation5 + $0x28] sm:$0xff]  ;;  %v2105_v56 = vld [vmem:[%s3372_s7] ss:$0 sm:$0xff]  ;;  %v1945_v63 = vld [vmem:[#allocation5 + $0x10] sm:$0xff] }
 0x65f   : > { %v1944_v6 = vld [vmem:[#allocation5 + $0x68] sm:$0xff]  ;;  %v1966_v28 = vadd.f32 %v2105_v56, %v1943_v59  ;;  %v1946_v31 = vld [vmem:[#allocation5 + $0x40] sm:$0xff]  ;;  %v1968_v9 = vadd.f32 %v2105_v56, %v1945_v63  ;;  %v1948_v16 = vld [vmem:[#allocation5 + $0x30] sm:$0xff] }
 0x660   : > { %v1967_v48 = vadd.f32 %v2105_v56, %v1944_v6  ;;  %v1947_v7 = vld [vmem:[#allocation5 + $0x48] sm:$0xff]  ;;  %v1969_v10 = vadd.f32 %v2105_v56, %v1946_v31  ;;  %v1949_v45 = vld [vmem:[#allocation5 + $0x70] sm:$0xff]  ;;  %v1950_v53 = vld [vmem:[#allocation5 + $0x38] sm:$0xff]  ;;  %v1971_v17 = vadd.f32 %v2105_v56, %v1948_v16 }
 0x661   : > { %v1970_v15 = vadd.f32 %v2105_v56, %v1947_v7  ;;  %v1982_v57 = vmax.f32 %v1966_v28, 0.0  ;;  %v1972_v58 = vadd.f32 %v2105_v56, %v1949_v45  ;;  %v1951_v47 = vld [vmem:[#allocation5 + $0x20] sm:$0xff]  ;;  %v1952_v5 = vld [vmem:[#allocation5 + $0x78] sm:$0xff]  ;;  %v1984_v22 = vmax.f32 %v1968_v9, 0.0 }
 0x662   : > { %v1983_v46 = vmax.f32 %v1967_v48, 0.0  ;;  %v1953_v54 = vld [vmem:[#allocation5 + $0x18] sm:$0xff]  ;;  %v1985_v0 = vmax.f32 %v1969_v10, 0.0  ;;  %v1973_v26 = vadd.f32 %v2105_v56, %v1950_v53  ;;  %v1955_v27 = vld [vmem:[#allocation5] sm:$0xff]  ;;  %v1987_v11 = vmax.f32 %v1971_v17, 0.0  ;;  %v1958_v33 = vld [vmem:[#allocation5 + $0x50] sm:$0xff] }
 0x663   : > { %v1986_v50 = vmax.f32 %v1970_v15, 0.0  ;;  %v1954_v19 = vld [vmem:[#allocation5 + $0x58] sm:$0xff]  ;;  %1998 = vst [vmem:[%s3373_s8] sm:$0xff] %v1982_v57  ;;  %v1988_v3 = vmax.f32 %v1972_v58, 0.0  ;;  %v1974_v4 = vadd.f32 %v2105_v56, %v1951_v47  ;;  %v1975_v35 = vadd.f32 %v2105_v56, %v1952_v5  ;;  %v1957_v21 = vld [vmem:[#allocation5 + $0x60] sm:$0xff]  ;;  %2000 = vst [vmem:[%s3373_s8 + $0x10] sm:$0xff] %v1984_v22 }
 0x664   : > { %v1956_v18 = vld [vmem:[#allocation5 + $0x8] sm:$0xff]  ;;  %1999 = vst [vmem:[%s3373_s8 + $0x8] sm:$0xff] %v1983_v46  ;;  %2001 = vst [vmem:[%s3373_s8 + $0x18] sm:$0xff] %v1985_v0  ;;  %v1989_v37 = vmax.f32 %v1973_v26, 0.0  ;;  %v1976_v8 = vadd.f32 %v2105_v56, %v1953_v54  ;;  %v1977_v34 = vadd.f32 %v2105_v56, %v1954_v19  ;;  %v1978_v13 = vadd.f32 %v2105_v56, %v1955_v27  ;;  %v2014_v40 = vld [vmem:[#allocation6] sm:$0x1] }
 0x665   : > { %2002 = vst [vmem:[%s3373_s8 + $0x20] sm:$0xff] %v1986_v50  ;;  %2003 = vst [vmem:[%s3373_s8 + $0x28] sm:$0xff] %v1987_v11  ;;  %v1990_v25 = vmax.f32 %v1974_v4, 0.0  ;;  %v1991_v14 = vmax.f32 %v1975_v35, 0.0  ;;  %v1979_v43 = vadd.f32 %v2105_v56, %v1956_v18  ;;  %v1980_v23 = vadd.f32 %v2105_v56, %v1957_v21 }
 0x666   : > { %2004 = vst [vmem:[%s3373_s8 + $0x30] sm:$0xff] %v1988_v3  ;;  %2005 = vst [vmem:[%s3373_s8 + $0x38] sm:$0xff] %v1989_v37  ;;  %v1992_v51 = vmax.f32 %v1976_v8, 0.0  ;;  %v1993_v29 = vmax.f32 %v1977_v34, 0.0  ;;  %v1994_v49 = vmax.f32 %v1978_v13, 0.0  ;;  %v1981_v55 = vadd.f32 %v2105_v56, %v1958_v33 }
 0x667   : > { %2006 = vst [vmem:[%s3373_s8 + $0x40] sm:$0xff] %v1990_v25  ;;  %2007 = vst [vmem:[%s3373_s8 + $0x48] sm:$0xff] %v1991_v14  ;;  %v1995_v52 = vmax.f32 %v1979_v43, 0.0  ;;  %v1996_v12 = vmax.f32 %v1980_v23, 0.0  ;;  %v2015_v39 = vmul.f32 0.001953125, %v2014_v40 }
 0x668   : > { %2008 = vst [vmem:[%s3373_s8 + $0x50] sm:$0xff] %v1992_v51  ;;  %2009 = vst [vmem:[%s3373_s8 + $0x58] sm:$0xff] %v1993_v29  ;;  %v1997_v44 = vmax.f32 %v1981_v55, 0.0 }
 0x669   : > { %2010 = vst [vmem:[%s3373_s8 + $0x60] sm:$0xff] %v1994_v49  ;;  %2011 = vst [vmem:[%s3373_s8 + $0x68] sm:$0xff] %v1995_v52 }
 0x66a   : > { %2012 = vst [vmem:[%s3373_s8 + $0x70] sm:$0xff] %v1996_v12  ;;  %2016 = vst.msk [vmem:[#allocation6] sm:$0x1] %vm1937_vm2, %v2015_v39 }
 0x66b   : > { %2013 = vst [vmem:[%s3373_s8 + $0x78] sm:$0xff] %v1997_v44 }
 0x66c PF: > { %p2329_p6 = scmp.eq.s32.totalorder %s2535_s10, 3  ;;  %s2478_s29 = smov [#allocation6]  }
 0x66d   : > { %s2027_s12 = sshll.u32 %s2478_s29, 4  ;;  %s2028_s12 = int_to_ptr.vmem [resolvable:$true] %s2027_s12 }
 0x66e   : > { %s2440_s18 = scalar_lea.vmem %s2028_s12, 16  ;;  %s2446_s13 = scalar_lea.vmem %s2028_s12, 32 }
 0x66f   : > { %p2441_p7 = scmp.ne.s32.totalorder %s2028_s12, %s2440_s18  ;;  %p2447_p10 = scmp.lt.s32.totalorder %s2028_s12, %s2028_s12 }
 0x670   : > { %p2448_p11 = scmp.lt.s32.totalorder %s2446_s13, %s2440_s18 }
 0x671   : > { %p2442_p8 = pnand %p2441_p7, %p2329_p6 }
 0x672   : > { %p2449_p12 = por %p2448_p11, %p2447_p10 }
 0x673   : > { %p2443_p9 = pneg %p2442_p8 }
 0x675   : > { %p2450_p13 = pnand %p2449_p12, %p2443_p9 }
 0x677   : > { %2453 = shalt.err (!%p2450_p13)
}
 0x678   : > { %2326 = dma.vmem_to_hbm [thread:$0]  (%p2329_p6), %s2028_s12, 16, %s3374_s9, [#allocation7]  }
 0x679   : > { %2469 = dma.done.wait (%p2329_p6), [#allocation7], 16  }
 0x67a   : > { %2471 = vsyncadd (%p2329_p6), [#allocation7], 4294967280 }
 0x67b PF: > { %s21_s30 = sadd.s32 1, %s2474_s30  }
 0x67c   : > { %p18_p0 = scmp.ge.s32.totalorder %s21_s30, 6  }
 0x67e   :  { %20 = sbr.rel (!%p18_p0) target bundleno = 1 (0x1), region = 98 }
 0x683   :  { %2043 = vsyncpa [#allocation7], 1 }
 0x684   :  { %2045 = vsyncpa [#allocation7 + $0x1], 1 }

// kernel: deformable_gcn_forward.8
= control target key start
LH: loop header
LB: loop body
LE: loop exit
PB: predicated region body
PF: predicated region fallthrough
CT: control target
= control target key end

     0   :  { %15 = vsyncpa [#allocation7], 0  ;;  %s2515_s30 = smov 0   ;;  %s3399_s0 = inlined_call_operand.vmem [shape: f32[128,64], index: 0, kind: input, shape index: {}]   ;;  %s3400_s1 = inlined_call_operand.vmem [shape: f32[64,16], index: 1, kind: input, shape index: {}]   ;;  %s3401_s2 = inlined_call_operand.vmem [shape: f32[1,16], index: 2, kind: input, shape index: {}]   ;;  %s3402_s3 = inlined_call_operand.vmem [shape: f32[4,1,16], index: 3, kind: input, shape index: {}]   ;;  %s3403_s4 = inlined_call_operand.vmem [shape: f32[128,128], index: 4, kind: input, shape index: {}]   ;;  %s3404_s5 = inlined_call_operand.vmem [shape: f32[128,128], index: 5, kind: input, shape index: {}]   ;;  %s3405_s6 = inlined_call_operand.vmem [shape: f32[4,128,8], index: 6, kind: input, shape index: {}]   ;;  %s3406_s7 = inlined_call_operand.vmem [shape: f32[1,8], index: 7, kind: input, shape index: {}]   ;;  %s3407_s8 = inlined_call_operand.vmem [shape: f32[128,8], index: 8, kind: output, shape index: {0}]   ;;  %s3408_s9 = inlined_call_operand.hbm [shape: f32[1,1], index: 9, kind: output, shape index: {1}]  }
   0x1 LB: > { %s2521_s10 = sadd.s32 4294967295, %s2460_s30   ;;  %p2067_p0 = scmp.ge.s32.totalorder %s2460_s30, 1  ;;  %s2460_s30 = sphi %s2515_s30, %s21_s30  }
   0x2   : > { %p289_p1 = scmp.lt.s32.totalorder %s2460_s30, 5 }
   0x4   : > { %p290_p2 = pnand %p2067_p0, %p289_p1 }
   0x5   : > { %p323_p3 = scmp.lt.s32.totalorder (!%p290_p2), %s2521_s10, 3  ;;  %p2070_p4 = scmp.ne.s32.totalorder (!%p290_p2), %s2521_s10, 0 }
   0x6   : > { %293 = sbr.rel (%p290_p2) target bundleno = 1657 (0x679), region = 52 }
   0xb   : > { %s2527_s11 = scalar_select %p323_p3, %s2521_s10, 3 }
   0xc   : > { %335 = sbr.rel (%p2070_p4) target bundleno = 541 (0x21d), region = 56 }
   0xd   : > { %s325_s14 = scalar_lea.vmem %s3402_s3, %s2527_s11  ;;  %s2096_s15 = sshll.u32 %s2527_s11, 7 }
   0xe   : > { %s2537_s18 = scalar_lea.vmem %s3405_s6, %s2096_s15 }
  0x11   : > { %v366_v0 = vld [vmem:[%s3400_s1 + $0x30] sm:$0xff]  ;;  %v367_v1 = vld [vmem:[%s3400_s1 + $0x38] sm:$0xff]  ;;  %v364_v2 = vld [vmem:[%s3400_s1 + $0x20] sm:$0xff]  ;;  %vm379_vm0 = vcmask 523264   ;;  %vm501_vm1 = vcmask 130048   ;;  %vm754_vm2 = vcmask 130112  }
  0x12   : > { %v371_v3 = vpack.c.bf16 %v367_v1, %v366_v0  ;;  %v365_v4 = vld [vmem:[%s3400_s1 + $0x28] sm:$0xff]  ;;  %v362_v6 = vld [vmem:[%s3400_s1 + $0x10] sm:$0xff]  ;;  %v363_v7 = vld [vmem:[%s3400_s1 + $0x18] sm:$0xff]  ;;  %vm761_vm3 = vcmask 195712   ;;  %vm768_vm4 = vcmask 261312   ;;  %vm775_vm5 = vcmask 326912  }
  0x13   : > { %v370_v5 = vpack.c.bf16 %v365_v4, %v364_v2  ;;  %v336_v8 = vld [vmem:[%s3399_s0] sm:$0xff]  ;;  %v337_v9 = vld [vmem:[%s3399_s0 + $0x8] sm:$0xff]  ;;  %v369_v11 = vpack.c.bf16 %v363_v7, %v362_v6  ;;  %v338_v15 = vld [vmem:[%s3399_s0 + $0x10] sm:$0xff]  ;;  %vm782_vm6 = vcmask 392512   ;;  %vm789_vm7 = vcmask 458112  }
  0x14   : > { %2157 = vmatprep.subr.bf16.mxu0 %v371_v3  ;;  %v352_v10 = vpack.c.bf16 %v337_v9, %v336_v8  ;;  %v360_v12 = vld [vmem:[%s3400_s1] sm:$0xff]  ;;  %v361_v13 = vld [vmem:[%s3400_s1 + $0x8] sm:$0xff]  ;;  %v339_v16 = vld [vmem:[%s3399_s0 + $0x18] sm:$0xff]  ;;  %vm796_vm8 = vcmask 523712   ;;  %vm803_vm9 = vcmask 589312   ;;  %vm810_vm10 = vcmask 654912  }
  0x15   : > { %2158 = vmatpush3.bf16.msra.mxu0 %v371_v3  ;;  %v368_v14 = vpack.c.bf16 %v361_v13, %v360_v12  ;;  %v340_v17 = vld [vmem:[%s3399_s0 + $0x20] sm:$0xff]  ;;  %v341_v18 = vld [vmem:[%s3399_s0 + $0x28] sm:$0xff]  ;;  %v353_v19 = vpack.c.bf16 %v339_v16, %v338_v15  ;;  %v342_v21 = vld [vmem:[%s3399_s0 + $0x30] sm:$0xff]  ;;  %vm817_vm11 = vcmask 720512   ;;  %vm824_vm12 = vcmask 786112  }
  0x16   : > { %2159 = vmatprep.subr.bf16.mxu0 %v370_v5  ;;  %2165 = vmatprep.mubr.msk.bf16.mxu0 %vm379_vm0, %v352_v10  ;;  %v354_v20 = vpack.c.bf16 %v341_v18, %v340_v17  ;;  %v343_v22 = vld [vmem:[%s3399_s0 + $0x38] sm:$0xff]  ;;  %v344_v23 = vld [vmem:[%s3399_s0 + $0x40] sm:$0xff]  ;;  %v345_v24 = vld [vmem:[%s3399_s0 + $0x48] sm:$0xff]  ;;  %vm831_vm13 = vcmask 851712   ;;  %vm838_vm14 = vcmask 917312   ;;  %vm845_vm15 = vcmask 982912  }
  0x17   : > { %v355_v25 = vpack.c.bf16 %v343_v22, %v342_v21  ;;  %v356_v26 = vpack.c.bf16 %v345_v24, %v344_v23  ;;  %v346_v27 = vld [vmem:[%s3399_s0 + $0x50] sm:$0xff]  ;;  %v347_v28 = vld [vmem:[%s3399_s0 + $0x58] sm:$0xff]  ;;  %v348_v29 = vld [vmem:[%s3399_s0 + $0x60] sm:$0xff] }
  0x18   : > { %v349_v30 = vld [vmem:[%s3399_s0 + $0x68] sm:$0xff]  ;;  %v357_v31 = vpack.c.bf16 %v347_v28, %v346_v27  ;;  %v350_v33 = vld [vmem:[%s3399_s0 + $0x70] sm:$0xff]  ;;  %v351_v34 = vld [vmem:[%s3399_s0 + $0x78] sm:$0xff] }
  0x19   : > { %2160 = vmatpush3.bf16.msra.mxu0 %v370_v5  ;;  %v358_v32 = vpack.c.bf16 %v349_v30, %v348_v29  ;;  %v359_v35 = vpack.c.bf16 %v351_v34, %v350_v33  ;;  %v2623_v36 = vld [vmem:[%s3401_s2] ss:$0 sm:$0xff] }
  0x1a   : > { %2161 = vmatprep.subr.bf16.mxu0 %v369_v11 }
  0x1d   : > { %2162 = vmatpush3.bf16.msra.mxu0 %v369_v11 }
  0x1e   : > { %2163 = vmatprep.subr.bf16.mxu0 %v368_v14 }
  0x21   : > { %2164 = vmatpush3.bf16.msra.mxu0 %v368_v14 }
  0x24   : > { %2166 = vmatmul.mubr.msk.bf16.vlgmr.msra.gmra.mxu0 %vm379_vm0, %v353_v19 }
  0x25   : > { %2169 = vmatprep.mubr.msk.bf16.mxu0 %vm379_vm0, %v354_v20 }
  0x2c   : > { %2170 = vmatmul.mubr.msk.bf16.gmra.mxu0 %vm379_vm0, %v355_v25 }
  0x2d   : > { %2173 = vmatprep.mubr.msk.bf16.mxu0 %vm379_vm0, %v356_v26 }
  0x34   : > { %2174 = vmatmul.mubr.msk.bf16.gmra.mxu0 %vm379_vm0, %v357_v31 }
  0x35   : > { %2177 = vmatprep.mubr.msk.bf16.mxu0 %vm379_vm0, %v358_v32 }
  0x3c   : > { %2178 = vmatmul.mubr.msk.bf16.gmra.mxu0 %vm379_vm0, %v359_v35  ;;  %vm852_vm0 = vcmask 1048512  }
  0xe4   : > { %v2167_v37 = vpop.f32.mrf.mxu0 }
  0xe5   : > { %v447_v38 = vadd.f32 %v2167_v37, %v2623_v36 }
  0xe6   : > { %v438_v39 = vpop.f32.mrf.mxu0 }
  0xe7   : > { %504 = vst.msk [vmem:[#allocation2 + $0x10] sm:$0xff] %vm501_vm1, %v447_v38  ;;  %v439_v40 = vadd.f32 %v2623_v36, %v438_v39  ;;  %v665_v41 = vmul.f32 %v447_v38, %v447_v38 }
  0xe8   : > { %v2168_v42 = vpop.f32.mrf.mxu0 }
  0xe9   : > { %502 = vst.msk [vmem:[#allocation2] sm:$0xff] %vm501_vm1, %v439_v40  ;;  %v450_v43 = vadd.f32 %v2168_v42, %v2623_v36  ;;  %v685_v44 = vsel %vm501_vm1, %v665_v41, 0.0  ;;  %v663_v45 = vmul.f32 %v439_v40, %v439_v40 }
  0xea   : > { %686 = vadd.xlane.f32.xlu1 %v685_v44  ;;  %v441_v46 = vpop.f32.mrf.mxu0 }
  0xeb   : > { %505 = vst.msk [vmem:[#allocation2 + $0x18] sm:$0xff] %vm501_vm1, %v450_v43  ;;  %v2632_v47 = vpack.c.bf16 %v450_v43, %v447_v38  ;;  %v442_v48 = vadd.f32 %v2623_v36, %v441_v46  ;;  %v679_v49 = vsel %vm501_vm1, %v663_v45, 0.0  ;;  %v666_v50 = vmul.f32 %v450_v43, %v450_v43 }
  0xec   : > { %v2171_v51 = vpop.f32.mrf.mxu0  ;;  %680 = vadd.xlane.f32.xlu0 %v679_v49 }
  0xed   : > { %503 = vst.msk [vmem:[#allocation2 + $0x8] sm:$0xff] %vm501_vm1, %v442_v48  ;;  %v2637_v52 = vpack.c.bf16 %v442_v48, %v439_v40  ;;  %v2640_v53 = vadd.f32 %v2171_v51, %v2623_v36  ;;  %v688_v54 = vsel %vm501_vm1, %v666_v50, 0.0  ;;  %v664_v55 = vmul.f32 %v442_v48, %v442_v48 }
  0xee   : > { %689 = vadd.xlane.f32.xlu1 %v688_v54  ;;  %v454_v56 = vpop.f32.mrf.mxu0 }
  0xef   : > { %508 = vst.msk [vmem:[#allocation2 + $0x30] sm:$0xff] %vm501_vm1, %v2640_v53  ;;  %v455_v57 = vadd.f32 %v2623_v36, %v454_v56  ;;  %2197 = vmatprep.mubr.msk.bf16.mxu0 %vm501_vm1, %v2637_v52  ;;  %v682_v58 = vsel %vm501_vm1, %v664_v55, 0.0  ;;  %v669_v59 = vmul.f32 %v2640_v53, %v2640_v53  ;;  %v527_v54 = vsel %vm501_vm1, %v2637_v52, 0 }
  0xf0   : > { %v2172_v60 = vpop.f32.mrf.mxu0  ;;  %683 = vadd.xlane.f32.xlu0 %v682_v58  ;;  %v743_v55 = vlaneseq }
  0xf1   : > { %506 = vst.msk [vmem:[#allocation2 + $0x20] sm:$0xff] %vm501_vm1, %v455_v57  ;;  %v2653_v61 = vadd.f32 %v2172_v60, %v2623_v36  ;;  %v697_v0 = vsel %vm501_vm1, %v669_v59, 0.0  ;;  %v667_v2 = vmul.f32 %v455_v57, %v455_v57 }
  0xf2   : > { %v457_v62 = vpop.f32.mrf.mxu0  ;;  %v2753_v56 = vand.u32 127, %v743_v55 }
  0xf3   : > { %509 = vst.msk [vmem:[#allocation2 + $0x38] sm:$0xff] %vm501_vm1, %v2653_v61  ;;  %v458_v63 = vadd.f32 %v2623_v36, %v457_v62  ;;  %v670_v1 = vmul.f32 %v2653_v61, %v2653_v61  ;;  %v691_v10 = vsel %vm501_vm1, %v667_v2, 0.0  ;;  %v521_v48 = vpack.c.bf16 %v2653_v61, %v2640_v53 }
  0xf4   : > { %v2175_v3 = vpop.f32.mrf.mxu0  ;;  %698 = vadd.xlane.f32.xlu0 %v697_v0  ;;  %v530_v53 = vsel %vm501_vm1, %v2632_v47, 0  ;;  %v756_v59 = vadd.s32 4294967280, %v2753_v56  ;;  %v763_v62 = vadd.s32 4294967272, %v2753_v56  ;;  %v770_v2 = vadd.s32 4294967264, %v2753_v56 }
  0xf5   : > { %507 = vst.msk [vmem:[#allocation2 + $0x28] sm:$0xff] %vm501_vm1, %v458_v63  ;;  %v2662_v4 = vpack.c.bf16 %v458_v63, %v455_v57  ;;  %v2665_v5 = vadd.f32 %v2175_v3, %v2623_v36  ;;  %v700_v6 = vsel %vm501_vm1, %v670_v1, 0.0  ;;  %v668_v7 = vmul.f32 %v458_v63, %v458_v63 }
  0xf6   : > { %701 = vadd.xlane.f32.xlu1 %v700_v6  ;;  %v470_v8 = vpop.f32.mrf.mxu0  ;;  %v536_v50 = vsel %vm501_vm1, %v521_v48, 0  ;;  %v2756_v57 = vshrl.u32 %v743_v55, 7 }
  0xf7   : > { %512 = vst.msk [vmem:[#allocation2 + $0x50] sm:$0xff] %vm501_vm1, %v2665_v5  ;;  %v2671_v9 = vadd.f32 %v2623_v36, %v470_v8  ;;  %2201 = vmatprep.mubr.msk.bf16.mxu1 %vm501_vm1, %v2662_v4  ;;  %v673_v11 = vmul.f32 %v2665_v5, %v2665_v5  ;;  %v694_v14 = vsel %vm501_vm1, %v668_v7, 0.0  ;;  %v533_v51 = vsel %vm501_vm1, %v2662_v4, 0 }
  0xf8   : > { %v2176_v12 = vpop.f32.mrf.mxu0  ;;  %692 = vadd.xlane.f32.xlu0 %v691_v10  ;;  %v747_v61 = vsub.s32 %v2753_v56, %v2756_v57  ;;  %v759_v0 = vsub.s32 %v756_v59, %v2756_v57  ;;  %v766_v6 = vsub.s32 %v763_v62, %v2756_v57  ;;  %v784_v10 = vadd.s32 4294967248, %v2753_v56 }
  0xf9   : > { %510 = vst.msk [vmem:[#allocation2 + $0x40] sm:$0xff] %vm501_vm1, %v2671_v9  ;;  %v482_v13 = vadd.f32 %v2176_v12, %v2623_v36  ;;  %v709_v17 = vsel %vm501_vm1, %v673_v11, 0.0  ;;  %v671_v19 = vmul.f32 %v2671_v9, %v2671_v9  ;;  %v773_v11 = vsub.s32 %v770_v2, %v2756_v57 }
  0xfa   : > { %v473_v15 = vpop.f32.mrf.mxu0  ;;  %695 = vadd.xlane.f32.xlu1 %v694_v14 }
  0xfb   : > { %513 = vst.msk [vmem:[#allocation2 + $0x58] sm:$0xff] %vm501_vm1, %v482_v13  ;;  %v474_v16 = vadd.f32 %v2623_v36, %v473_v15  ;;  %v674_v18 = vmul.f32 %v482_v13, %v482_v13  ;;  %v703_v26 = vsel %vm501_vm1, %v671_v19, 0.0  ;;  %v523_v43 = vpack.c.bf16 %v482_v13, %v2665_v5 }
  0xfc   : > { %v2179_v20 = vpop.f32.mrf.mxu0  ;;  %710 = vadd.xlane.f32.xlu0 %v709_v17  ;;  %v777_v5 = vadd.s32 4294967256, %v2753_v56 }
  0xfd   : > { %511 = vst.msk [vmem:[#allocation2 + $0x48] sm:$0xff] %vm501_vm1, %v474_v16  ;;  %v495_v21 = vadd.f32 %v2179_v20, %v2623_v36  ;;  %v712_v22 = vsel %vm501_vm1, %v674_v18, 0.0  ;;  %v672_v23 = vmul.f32 %v474_v16, %v474_v16  ;;  %v522_v45 = vpack.c.bf16 %v474_v16, %v2671_v9 }
  0xfe   : > { %v486_v24 = vpop.f32.mrf.mxu0  ;;  %713 = vadd.xlane.f32.xlu1 %v712_v22  ;;  %v542_v46 = vsel %vm501_vm1, %v523_v43, 0  ;;  %v780_v14 = vsub.s32 %v777_v5, %v2756_v57  ;;  %v791_v16 = vadd.s32 4294967240, %v2753_v56  ;;  %v787_v18 = vsub.s32 %v784_v10, %v2756_v57 }
  0xff   : > { %516 = vst.msk [vmem:[#allocation2 + $0x70] sm:$0xff] %vm501_vm1, %v495_v21  ;;  %v487_v25 = vadd.f32 %v2623_v36, %v486_v24  ;;  %v706_v29 = vsel %vm501_vm1, %v672_v23, 0.0  ;;  %v677_v35 = vmul.f32 %v495_v21, %v495_v21  ;;  %v539_v49 = vsel %vm501_vm1, %v522_v45, 0 }
 0x100   : > { %v2180_v27 = vpop.f32.mrf.mxu0  ;;  %704 = vadd.xlane.f32.xlu0 %v703_v26  ;;  %v798_v20 = vadd.s32 4294967232, %v2753_v56  ;;  %v794_v26 = vsub.s32 %v791_v16, %v2756_v57 }
 0x101   : > { %514 = vst.msk [vmem:[#allocation2 + $0x60] sm:$0xff] %vm501_vm1, %v487_v25  ;;  %v498_v28 = vadd.f32 %v2180_v27, %v2623_v36  ;;  %v675_v30 = vmul.f32 %v487_v25, %v487_v25  ;;  %v721_v40 = vsel %vm501_vm1, %v677_v35, 0.0  ;;  %v812_v27 = vadd.s32 4294967216, %v2753_v56 }
 0x102   : > { %v489_v31 = vpop.f32.mrf.mxu0  ;;  %707 = vadd.xlane.f32.xlu1 %v706_v29 }
 0x103   : > { %517 = vst.msk [vmem:[#allocation2 + $0x78] sm:$0xff] %vm501_vm1, %v498_v28  ;;  %v2697_v32 = vpack.c.bf16 %v498_v28, %v495_v21  ;;  %v490_v33 = vadd.f32 %v2623_v36, %v489_v31  ;;  %v715_v34 = vsel %vm501_vm1, %v675_v30, 0.0  ;;  %v678_v41 = vmul.f32 %v498_v28, %v498_v28 }
 0x104   : > { %716 = vadd.xlane.f32.xlu0 %v715_v34  ;;  %v819_v31 = vadd.s32 4294967208, %v2753_v56  ;;  %v826_v34 = vadd.s32 4294967200, %v2753_v56 }
 0x105   : > { %515 = vst.msk [vmem:[#allocation2 + $0x68] sm:$0xff] %vm501_vm1, %v490_v33  ;;  %v524_v37 = vpack.c.bf16 %v490_v33, %v487_v25  ;;  %2293 = vmatprep.subr.msk.bf16.mxu0 %vm501_vm1, %v2697_v32  ;;  %2294 = vmatprep.subr.msk.bf16.mxu1 %vm501_vm1, %v2697_v32  ;;  %v548_v38 = vsel %vm501_vm1, %v2697_v32, 0  ;;  %v676_v39 = vmul.f32 %v490_v33, %v490_v33  ;;  %v724_v42 = vsel %vm501_vm1, %v678_v41, 0.0 }
 0x106   : > { %2182 = vmatpush3.bf16.xpose.msra.mxu0 %v548_v38  ;;  %2285 = vmatpush3.bf16.xpose.msra.mxu1 %v548_v38  ;;  %v805_v25 = vadd.s32 4294967224, %v2753_v56 }
 0x107   : > { %2295 = vmatprep.subr.msk.bf16.mxu0 %vm501_vm1, %v524_v37  ;;  %2296 = vmatprep.subr.msk.bf16.mxu1 %vm501_vm1, %v524_v37  ;;  %v718_v36 = vsel %vm501_vm1, %v676_v39, 0.0  ;;  %v545_v44 = vsel %vm501_vm1, %v524_v37, 0  ;;  %v815_v39 = vsub.s32 %v812_v27, %v2756_v57 }
 0x108   : > { %719 = vadd.xlane.f32.xlu1 %v718_v36  ;;  %722 = vadd.xlane.f32.xlu0 %v721_v40  ;;  %v822_v40 = vsub.s32 %v819_v31, %v2756_v57 }
 0x10c   : > { %725 = vadd.xlane.f32.xlu1 %v724_v42  ;;  %v833_v42 = vadd.s32 4294967192, %v2753_v56 }
 0x10e   : > { %2184 = vmatpush3.bf16.xpose.msra.mxu0 %v545_v44  ;;  %2286 = vmatpush3.bf16.xpose.msra.mxu1 %v545_v44  ;;  %v836_v55 = vsub.s32 %v833_v42, %v2756_v57 }
 0x10f   : > { %2297 = vmatprep.subr.msk.bf16.mxu0 %vm501_vm1, %v523_v43  ;;  %2298 = vmatprep.subr.msk.bf16.mxu1 %vm501_vm1, %v523_v43 }
 0x116   : > { %2186 = vmatpush3.bf16.xpose.msra.mxu0 %v542_v46  ;;  %2287 = vmatpush3.bf16.xpose.msra.mxu1 %v542_v46  ;;  %v840_v46 = vadd.s32 4294967184, %v2753_v56 }
 0x117   : > { %2299 = vmatprep.subr.msk.bf16.mxu0 %vm501_vm1, %v522_v45  ;;  %2300 = vmatprep.subr.msk.bf16.mxu1 %vm501_vm1, %v522_v45 }
 0x118   : > { %v843_v59 = vsub.s32 %v840_v46, %v2756_v57 }
 0x11e   : > { %2188 = vmatpush3.bf16.xpose.msra.mxu0 %v539_v49  ;;  %2288 = vmatpush3.bf16.xpose.msra.mxu1 %v539_v49 }
 0x11f   : > { %2301 = vmatprep.subr.msk.bf16.mxu0 %vm501_vm1, %v521_v48  ;;  %2302 = vmatprep.subr.msk.bf16.mxu1 %vm501_vm1, %v521_v48 }
 0x126   : > { %2190 = vmatpush3.bf16.xpose.msra.mxu0 %v536_v50  ;;  %2289 = vmatpush3.bf16.xpose.msra.mxu1 %v536_v50 }
 0x127   : > { %2303 = vmatprep.subr.msk.bf16.mxu0 %vm501_vm1, %v2662_v4  ;;  %2304 = vmatprep.subr.msk.bf16.mxu1 %vm501_vm1, %v2662_v4 }
 0x12e   : > { %2192 = vmatpush3.bf16.xpose.msra.mxu0 %v533_v51  ;;  %2290 = vmatpush3.bf16.xpose.msra.mxu1 %v533_v51 }
 0x12f   : > { %2305 = vmatprep.subr.msk.bf16.mxu0 %vm501_vm1, %v2632_v47  ;;  %2306 = vmatprep.subr.msk.bf16.mxu1 %vm501_vm1, %v2632_v47 }
 0x136   : > { %2194 = vmatpush3.bf16.xpose.msra.mxu0 %v530_v53  ;;  %2291 = vmatpush3.bf16.xpose.msra.mxu1 %v530_v53 }
 0x137   : > { %2307 = vmatprep.subr.msk.bf16.mxu0 %vm501_vm1, %v2637_v52  ;;  %2308 = vmatprep.subr.msk.bf16.mxu1 %vm501_vm1, %v2637_v52  ;;  %v749_v52 = vadd.s32 4294967288, %v2753_v56 }
 0x139   : > { %v752_v60 = vsub.s32 %v749_v52, %v2756_v57  ;;  %v847_v52 = vadd.s32 4294967176, %v2753_v56 }
 0x13e   : > { %2196 = vmatpush3.bf16.xpose.msra.mxu0 %v527_v54  ;;  %2292 = vmatpush3.bf16.xpose.msra.mxu1 %v527_v54 }
 0x145   : > { %2198 = vmatmul.mubr.msk.bf16.vlgmr.msra.gmra.mxu0 %vm501_vm1, %v2632_v47  ;;  %2202 = vmatmul.mubr.msk.bf16.vlgmr.msra.gmra.mxu1 %vm501_vm1, %v521_v48 }
 0x146   : > { %2205 = vmatprep.mubr.msk.bf16.mxu1 %vm501_vm1, %v522_v45  ;;  %v829_v45 = vsub.s32 %v826_v34, %v2756_v57 }
 0x14d   : > { %2206 = vmatmul.mubr.msk.bf16.gmra.mxu1 %vm501_vm1, %v523_v43 }
 0x14e   : > { %2209 = vmatprep.mubr.msk.bf16.mxu1 %vm501_vm1, %v524_v37  ;;  %v808_v37 = vsub.s32 %v805_v25, %v2756_v57 }
 0x155   : > { %2210 = vmatmul.mubr.msk.bf16.gmra.mxu1 %vm501_vm1, %v2697_v32  ;;  %v801_v32 = vsub.s32 %v798_v20, %v2756_v57  ;;  %vm856_vm1 = vcmask 64512  }
 0x173   : > { %v687_v58 = vpop.xlane.xlu1 %686 }
 0x174   : > { %v760_v9 = vrot.slane %v687_v58, %v759_v0  ;;  %v850_v0 = vsub.s32 %v847_v52, %v2756_v57 }
 0x175   : > { %v681_v47 = vpop.xlane.xlu0 %680 }
 0x176   : > { %v748_v3 = vrot.slane %v681_v47, %v747_v61 }
 0x177   : > { %v690_v4 = vpop.xlane.xlu1 %689 }
 0x178   : > { %v767_v15 = vrot.slane %v690_v4, %v766_v6 }
 0x179   : > { %v684_v63 = vpop.xlane.xlu0 %683 }
 0x17a   : > { %v753_v1 = vrot.slane %v684_v63, %v752_v60 }
 0x17c   : > { %v755_v7 = vsel %vm754_vm2, %v753_v1, %v748_v3  ;;  %vm873_vm2 = vcmask 0  }
 0x17d   : > { %v699_v8 = vpop.xlane.xlu0 %698  ;;  %v762_v13 = vsel %vm761_vm3, %v760_v9, %v755_v7  ;;  %v2462_v7 = vmov 0.0  }
 0x17e   : > { %v769_v21 = vsel %vm768_vm4, %v767_v15, %v762_v13  ;;  %v788_v29 = vrot.slane %v699_v8, %v787_v18  ;;  %857 = vst.msk [vmem:[#allocation5] sm:$0xff] %vm856_vm1, %v2462_v7  ;;  %858 = vst.msk [vmem:[#allocation5 + $0x8] sm:$0xff] %vm856_vm1, %v2462_v7 }
 0x17f   : > { %v702_v12 = vpop.xlane.xlu1 %701  ;;  %859 = vst.msk [vmem:[#allocation5 + $0x10] sm:$0xff] %vm856_vm1, %v2462_v7  ;;  %860 = vst.msk [vmem:[#allocation5 + $0x18] sm:$0xff] %vm856_vm1, %v2462_v7 }
 0x180   : > { %v795_v38 = vrot.slane %v702_v12, %v794_v26  ;;  %861 = vst.msk [vmem:[#allocation5 + $0x20] sm:$0xff] %vm856_vm1, %v2462_v7  ;;  %862 = vst.msk [vmem:[#allocation5 + $0x28] sm:$0xff] %vm856_vm1, %v2462_v7 }
 0x181   : > { %v693_v17 = vpop.xlane.xlu0 %692  ;;  %863 = vst.msk [vmem:[#allocation5 + $0x30] sm:$0xff] %vm856_vm1, %v2462_v7  ;;  %864 = vst.msk [vmem:[#allocation5 + $0x38] sm:$0xff] %vm856_vm1, %v2462_v7 }
 0x182   : > { %v774_v19 = vrot.slane %v693_v17, %v773_v11  ;;  %865 = vst.msk [vmem:[#allocation5 + $0x40] sm:$0xff] %vm856_vm1, %v2462_v7  ;;  %866 = vst.msk [vmem:[#allocation5 + $0x48] sm:$0xff] %vm856_vm1, %v2462_v7 }
 0x183   : > { %v696_v22 = vpop.xlane.xlu1 %695  ;;  %867 = vst.msk [vmem:[#allocation5 + $0x50] sm:$0xff] %vm856_vm1, %v2462_v7  ;;  %868 = vst.msk [vmem:[#allocation5 + $0x58] sm:$0xff] %vm856_vm1, %v2462_v7 }
 0x184   : > { %v776_v23 = vsel %vm775_vm5, %v774_v19, %v769_v21  ;;  %v781_v24 = vrot.slane %v696_v22, %v780_v14  ;;  %869 = vst.msk [vmem:[#allocation5 + $0x60] sm:$0xff] %vm856_vm1, %v2462_v7  ;;  %870 = vst.msk [vmem:[#allocation5 + $0x68] sm:$0xff] %vm856_vm1, %v2462_v7 }
 0x185   : > { %v711_v28 = vpop.xlane.xlu0 %710  ;;  %871 = vst.msk [vmem:[#allocation5 + $0x70] sm:$0xff] %vm856_vm1, %v2462_v7  ;;  %872 = vst.msk [vmem:[#allocation5 + $0x78] sm:$0xff] %vm856_vm1, %v2462_v7 }
 0x186   : > { %v783_v30 = vsel %vm782_vm6, %v781_v24, %v776_v23  ;;  %v816_v50 = vrot.slane %v711_v28, %v815_v39  ;;  %874 = vst.msk [vmem:[#allocation6] sm:$0x1] %vm873_vm2, %v2462_v7 }
 0x187   : > { %v714_v33 = vpop.xlane.xlu1 %713  ;;  %v790_v35 = vsel %vm789_vm7, %v788_v29, %v783_v30 }
 0x188   : > { %v797_v43 = vsel %vm796_vm8, %v795_v38, %v790_v35  ;;  %v823_v53 = vrot.slane %v714_v33, %v822_v40 }
 0x189   : > { %v705_v36 = vpop.xlane.xlu0 %704 }
 0x18a   : > { %v802_v41 = vrot.slane %v705_v36, %v801_v32 }
 0x18b   : > { %v708_v44 = vpop.xlane.xlu1 %707 }
 0x18c   : > { %v804_v48 = vsel %vm803_vm9, %v802_v41, %v797_v43  ;;  %v809_v49 = vrot.slane %v708_v44, %v808_v37 }
 0x18d   : > { %v717_v51 = vpop.xlane.xlu0 %716 }
 0x18e   : > { %v811_v54 = vsel %vm810_vm10, %v809_v49, %v804_v48  ;;  %v830_v47 = vrot.slane %v717_v51, %v829_v45 }
 0x18f   : > { %v818_v58 = vsel %vm817_vm11, %v816_v50, %v811_v54 }
 0x190   : > { %v825_v60 = vsel %vm824_vm12, %v823_v53, %v818_v58 }
 0x191   : > { %v720_v61 = vpop.xlane.xlu1 %719  ;;  %v723_v62 = vpop.xlane.xlu0 %722  ;;  %v832_v1 = vsel %vm831_vm13, %v830_v47, %v825_v60 }
 0x192   : > { %v837_v63 = vrot.slane %v720_v61, %v836_v55  ;;  %v844_v2 = vrot.slane %v723_v62, %v843_v59 }
 0x194   : > { %v839_v3 = vsel %vm838_vm14, %v837_v63, %v832_v1 }
 0x195   : > { %v726_v4 = vpop.xlane.xlu1 %725  ;;  %v846_v56 = vsel %vm845_vm15, %v844_v2, %v839_v3 }
 0x196   : > { %v851_v5 = vrot.slane %v726_v4, %v850_v0 }
 0x198   : > { %v853_v6 = vsel %vm852_vm0, %v851_v5, %v846_v56 }
 0x199   : > { %855 = vst [vmem:[#allocation4] sm:$0x1] %v853_v6 }
 0x205   : > { %v2199_v57 = vpop.f32.mrf.mxu0  ;;  %v2203_v8 = vpop.f32.mrf.mxu1 }
 0x206   : > { %649 = vst [vmem:[#allocation3 + $0x58] sm:$0xff] %v2199_v57  ;;  %653 = vst [vmem:[#allocation3 + $0x8] sm:$0xff] %v2203_v8 }
 0x207   : > { %v584_v9 = vpop.f32.mrf.mxu0  ;;  %v600_v10 = vpop.f32.mrf.mxu1 }
 0x208   : > { %647 = vst [vmem:[#allocation3 + $0x30] sm:$0xff] %v584_v9  ;;  %651 = vst [vmem:[#allocation3 + $0x50] sm:$0xff] %v600_v10 }
 0x209   : > { %v2200_v11 = vpop.f32.mrf.mxu0  ;;  %v2204_v12 = vpop.f32.mrf.mxu1 }
 0x20a   : > { %650 = vst [vmem:[#allocation3 + $0x18] sm:$0xff] %v2200_v11  ;;  %654 = vst [vmem:[#allocation3 + $0x48] sm:$0xff] %v2204_v12 }
 0x20b   : > { %v587_v13 = vpop.f32.mrf.mxu0  ;;  %v603_v14 = vpop.f32.mrf.mxu1 }
 0x20c   : > { %648 = vst [vmem:[#allocation3] sm:$0xff] %v587_v13  ;;  %652 = vst [vmem:[#allocation3 + $0x68] sm:$0xff] %v603_v14 }
 0x20d   : > { %v2207_v15 = vpop.f32.mrf.mxu1 }
 0x20e   : > { %657 = vst [vmem:[#allocation3 + $0x10] sm:$0xff] %v2207_v15 }
 0x20f   : > { %v616_v16 = vpop.f32.mrf.mxu1 }
 0x210   : > { %655 = vst [vmem:[#allocation3 + $0x40] sm:$0xff] %v616_v16 }
 0x211   : > { %v2208_v17 = vpop.f32.mrf.mxu1 }
 0x212   : > { %658 = vst [vmem:[#allocation3 + $0x38] sm:$0xff] %v2208_v17 }
 0x213   : > { %v619_v18 = vpop.f32.mrf.mxu1 }
 0x214   : > { %656 = vst [vmem:[#allocation3 + $0x20] sm:$0xff] %v619_v18 }
 0x215   : > { %v2211_v19 = vpop.f32.mrf.mxu1 }
 0x216   : > { %661 = vst [vmem:[#allocation3 + $0x78] sm:$0xff] %v2211_v19 }
 0x217   : > { %v632_v20 = vpop.f32.mrf.mxu1 }
 0x218   : > { %659 = vst [vmem:[#allocation3 + $0x60] sm:$0xff] %v632_v20 }
 0x219   : > { %v2212_v21 = vpop.f32.mrf.mxu1 }
 0x21a   : > { %662 = vst [vmem:[#allocation3 + $0x28] sm:$0xff] %v2212_v21 }
 0x21b   : > { %v635_v22 = vpop.f32.mrf.mxu1 }
 0x21c   : > { %660 = vst [vmem:[#allocation3 + $0x70] sm:$0xff] %v635_v22 }
 0x21d PF: > { %v877_v23 = vld [vmem:[#allocation2 + $0x10] sm:$0xff]  ;;  %v2088_v24 = vld [vmem:[%s325_s14] ss:$0 sm:$0xff]  ;;  %vm930_vm3 = vcmask 130048   ;;  %v878_v28 = vld [vmem:[#allocation2 + $0x18] sm:$0xff]  ;;  %v2463_v9 = vmov 0  }
 0x21e   : > { %v875_v25 = vld [vmem:[#allocation2] sm:$0xff]  ;;  %v916_v26 = vmul.f32 %v2088_v24, %v877_v23  ;;  %v876_v29 = vld [vmem:[#allocation2 + $0x8] sm:$0xff]  ;;  %v917_v30 = vmul.f32 %v2088_v24, %v878_v28  ;;  %v882_v40 = vld [vmem:[#allocation2 + $0x38] sm:$0xff]  ;;  %2329 = vset.pattern.permute.xlu1 %v2463_v9  ;;  %2328 = vset.pattern.permute.xlu0 %v2463_v9  ;;  %vm1203_vm4 = vcmask 130112   ;;  %vm1210_vm5 = vcmask 195712   ;;  %p2090_p5 = scmp.ne.s32.totalorder %s2521_s10, 3 }
 0x21f   : > { %v914_v27 = vmul.f32 %v2088_v24, %v875_v25  ;;  %v915_v31 = vmul.f32 %v2088_v24, %v876_v29  ;;  %v880_v32 = vld [vmem:[#allocation2 + $0x28] sm:$0xff]  ;;  %v879_v33 = vld [vmem:[#allocation2 + $0x20] sm:$0xff]  ;;  %v881_v41 = vld [vmem:[#allocation2 + $0x30] sm:$0xff]  ;;  %v921_v44 = vmul.f32 %v2088_v24, %v882_v40  ;;  %vm1217_vm6 = vcmask 261312  }
 0x220   : > { %v937_v34 = vsel %vm930_vm3, %v916_v26, 0.0  ;;  %v940_v37 = vsel %vm930_vm3, %v917_v30, 0.0  ;;  %v919_v39 = vmul.f32 %v2088_v24, %v880_v32  ;;  %v918_v36 = vmul.f32 %v2088_v24, %v879_v33  ;;  %v884_v46 = vld [vmem:[#allocation2 + $0x48] sm:$0xff]  ;;  %v883_v48 = vld [vmem:[#allocation2 + $0x40] sm:$0xff]  ;;  %v886_v54 = vld [vmem:[#allocation2 + $0x58] sm:$0xff] }
 0x221   : > { %v931_v35 = vsel %vm930_vm3, %v914_v27, 0.0  ;;  %938 = vadd.xlane.f32.xlu1 %v937_v34  ;;  %v934_v38 = vsel %vm930_vm3, %v915_v31, 0.0  ;;  %v920_v45 = vmul.f32 %v2088_v24, %v881_v41  ;;  %v952_v49 = vsel %vm930_vm3, %v921_v44, 0.0  ;;  %v885_v55 = vld [vmem:[#allocation2 + $0x50] sm:$0xff]  ;;  %v888_v60 = vld [vmem:[#allocation2 + $0x68] sm:$0xff]  ;;  %v887_v61 = vld [vmem:[#allocation2 + $0x60] sm:$0xff] }
 0x222   : > { %932 = vadd.xlane.f32.xlu0 %v931_v35  ;;  %v946_v42 = vsel %vm930_vm3, %v919_v39, 0.0  ;;  %v943_v43 = vsel %vm930_vm3, %v918_v36, 0.0  ;;  %v923_v51 = vmul.f32 %v2088_v24, %v884_v46  ;;  %v922_v53 = vmul.f32 %v2088_v24, %v883_v48  ;;  %v890_v2 = vld [vmem:[#allocation2 + $0x78] sm:$0xff]  ;;  %v889_v3 = vld [vmem:[#allocation2 + $0x70] sm:$0xff]  ;;  %v2089_v8 = vld [vmem:[#allocation4] ss:$0 sm:$0xff] }
 0x223   : > { %v949_v50 = vsel %vm930_vm3, %v920_v45, 0.0  ;;  %v925_v47 = vmul.f32 %v2088_v24, %v886_v54  ;;  %v924_v59 = vmul.f32 %v2088_v24, %v885_v55  ;;  %v927_v0 = vmul.f32 %v2088_v24, %v888_v60 }
 0x224   : > { %v958_v52 = vsel %vm930_vm3, %v923_v51, 0.0  ;;  %v955_v58 = vsel %vm930_vm3, %v922_v53, 0.0  ;;  %v926_v1 = vmul.f32 %v2088_v24, %v887_v61  ;;  %v929_v56 = vmul.f32 %v2088_v24, %v890_v2 }
 0x225   : > { %941 = vadd.xlane.f32.xlu1 %v940_v37  ;;  %v964_v62 = vsel %vm930_vm3, %v925_v47, 0.0  ;;  %v961_v63 = vsel %vm930_vm3, %v924_v59, 0.0  ;;  %v970_v4 = vsel %vm930_vm3, %v927_v0, 0.0  ;;  %v928_v6 = vmul.f32 %v2088_v24, %v889_v3 }
 0x226   : > { %935 = vadd.xlane.f32.xlu0 %v934_v38  ;;  %v967_v5 = vsel %vm930_vm3, %v926_v1, 0.0  ;;  %v976_v7 = vsel %vm930_vm3, %v929_v56, 0.0  ;;  %vm1224_vm7 = vcmask 326912   ;;  %vm1231_vm8 = vcmask 392512  }
 0x227   : > { %v973_v57 = vsel %vm930_vm3, %v928_v6, 0.0  ;;  %vm1238_vm9 = vcmask 458112   ;;  %vm1245_vm10 = vcmask 523712   ;;  %vm1252_vm11 = vcmask 589312  }
 0x228   : > { %vm1259_vm12 = vcmask 654912   ;;  %vm1266_vm13 = vcmask 720512   ;;  %vm1273_vm14 = vcmask 786112   ;;  %vm1280_vm15 = vcmask 851712  }
 0x229   : > { %947 = vadd.xlane.f32.xlu1 %v946_v42  ;;  %vm1287_vm0 = vcmask 917312   ;;  %vm1294_vm1 = vcmask 982912   ;;  %vm1301_vm2 = vcmask 1048512  }
 0x22a   : > { %944 = vadd.xlane.f32.xlu0 %v943_v43 }
 0x22d   : > { %953 = vadd.xlane.f32.xlu1 %v952_v49 }
 0x22e   : > { %950 = vadd.xlane.f32.xlu0 %v949_v50 }
 0x231   : > { %959 = vadd.xlane.f32.xlu1 %v958_v52 }
 0x232   : > { %956 = vadd.xlane.f32.xlu0 %v955_v58 }
 0x235   : > { %965 = vadd.xlane.f32.xlu1 %v964_v62 }
 0x236   : > { %962 = vadd.xlane.f32.xlu0 %v961_v63 }
 0x239   : > { %971 = vadd.xlane.f32.xlu1 %v970_v4 }
 0x23a   : > { %968 = vadd.xlane.f32.xlu0 %v967_v5 }
 0x23d   : > { %977 = vadd.xlane.f32.xlu1 %v976_v7 }
 0x23e   : > { %974 = vadd.xlane.f32.xlu0 %v973_v57 }
 0x24e   : > { %1038 = vbcast.lane.b32.xlu1 %v2089_v8, 264 }
 0x252   : > { %1042 = vbcast.lane.b32.xlu1 %v2089_v8, 272 }
 0x254   : > { %1034 = vbcast.lane.b32.xlu0 %v2089_v8, 256 }
 0x256   : > { %1046 = vbcast.lane.b32.xlu1 %v2089_v8, 280 }
 0x258   : > { %1050 = vbcast.lane.b32.xlu0 %v2089_v8, 288 }
 0x25a   : > { %1054 = vbcast.lane.b32.xlu1 %v2089_v8, 296 }
 0x25c   : > { %1058 = vbcast.lane.b32.xlu0 %v2089_v8, 304 }
 0x25e   : > { %1062 = vbcast.lane.b32.xlu1 %v2089_v8, 312 }
 0x260   : > { %1066 = vbcast.lane.b32.xlu0 %v2089_v8, 320 }
 0x262   : > { %1070 = vbcast.lane.b32.xlu1 %v2089_v8, 328 }
 0x264   : > { %1074 = vbcast.lane.b32.xlu0 %v2089_v8, 336 }
 0x266   : > { %1078 = vbcast.lane.b32.xlu1 %v2089_v8, 344 }
 0x268   : > { %1082 = vbcast.lane.b32.xlu0 %v2089_v8, 352 }
 0x26a   : > { %1086 = vbcast.lane.b32.xlu1 %v2089_v8, 360 }
 0x26c   : > { %1090 = vbcast.lane.b32.xlu0 %v2089_v8, 368 }
 0x26e   : > { %1094 = vbcast.lane.b32.xlu1 %v2089_v8, 376 }
 0x2aa   : > { %v939_v10 = vpop.xlane.xlu1 %938 }
 0x2ab   : > { %v933_v11 = vpop.xlane.xlu0 %932  ;;  %v1013_v32 = vmul.f32 2.0, %v939_v10  ;;  %v1192_v10 = vlaneseq }
 0x2ac   : > { %v1011_v26 = vmul.f32 2.0, %v933_v11 }
 0x2ad   : > { %v2827_v11 = vand.u32 127, %v1192_v10 }
 0x2ae   : > { %v942_v12 = vpop.xlane.xlu1 %941 }
 0x2af   : > { %v936_v13 = vpop.xlane.xlu0 %935  ;;  %v1014_v37 = vmul.f32 2.0, %v942_v12  ;;  %v2829_v12 = vshrl.u32 %v1192_v10, 7 }
 0x2b0   : > { %v1012_v27 = vmul.f32 2.0, %v936_v13  ;;  %v1198_v13 = vadd.s32 4294967288, %v2827_v11 }
 0x2b2   : > { %v948_v14 = vpop.xlane.xlu1 %947 }
 0x2b3   : > { %v945_v15 = vpop.xlane.xlu0 %944  ;;  %v1016_v42 = vmul.f32 2.0, %v948_v14  ;;  %v1205_v14 = vadd.s32 4294967280, %v2827_v11 }
 0x2b4   : > { %v1015_v38 = vmul.f32 2.0, %v945_v15 }
 0x2b6   : > { %v954_v16 = vpop.xlane.xlu1 %953 }
 0x2b7   : > { %v951_v17 = vpop.xlane.xlu0 %950  ;;  %v1018_v49 = vmul.f32 2.0, %v954_v16  ;;  %v1201_v16 = vsub.s32 %v1198_v13, %v2829_v12  ;;  %v1296_v13 = vadd.s32 4294967176, %v2827_v11 }
 0x2b8   : > { %v1017_v43 = vmul.f32 2.0, %v951_v17  ;;  %v1196_v17 = vsub.s32 %v2827_v11, %v2829_v12 }
 0x2ba   : > { %v960_v18 = vpop.xlane.xlu1 %959 }
 0x2bb   : > { %v957_v19 = vpop.xlane.xlu0 %956  ;;  %v1020_v52 = vmul.f32 2.0, %v960_v18  ;;  %v1212_v18 = vadd.s32 4294967272, %v2827_v11 }
 0x2bc   : > { %v1019_v50 = vmul.f32 2.0, %v957_v19 }
 0x2be   : > { %v966_v20 = vpop.xlane.xlu1 %965 }
 0x2bf   : > { %v963_v21 = vpop.xlane.xlu0 %962  ;;  %v1022_v62 = vmul.f32 2.0, %v966_v20  ;;  %v1208_v20 = vsub.s32 %v1205_v14, %v2829_v12 }
 0x2c0   : > { %v1021_v58 = vmul.f32 2.0, %v963_v21  ;;  %v1219_v21 = vadd.s32 4294967264, %v2827_v11 }
 0x2c2   : > { %v972_v22 = vpop.xlane.xlu1 %971 }
 0x2c3   : > { %v969_v23 = vpop.xlane.xlu0 %968  ;;  %v1024_v4 = vmul.f32 2.0, %v972_v22 }
 0x2c4   : > { %v1023_v63 = vmul.f32 2.0, %v969_v23 }
 0x2c6   : > { %v978_v24 = vpop.xlane.xlu1 %977 }
 0x2c7   : > { %v975_v25 = vpop.xlane.xlu0 %974  ;;  %v1026_v57 = vmul.f32 2.0, %v978_v24 }
 0x2c8   : > { %v1025_v5 = vmul.f32 2.0, %v975_v25  ;;  %v1215_v25 = vsub.s32 %v1212_v18, %v2829_v12 }
 0x2ca   : > { %v1039_v28 = vpop.permute.xlu1 %1038 }
 0x2cb   : > { %v1035_v29 = vpop.permute.xlu0 %1034  ;;  %v1113_v30 = vsub.f32 %v1012_v27, %v1039_v28  ;;  %v1222_v28 = vsub.s32 %v1219_v21, %v2829_v12  ;;  %v1299_v21 = vsub.s32 %v1296_v13, %v2829_v12 }
 0x2cc   : > { %v1112_v31 = vsub.f32 %v1011_v26, %v1035_v29  ;;  %v1226_v26 = vadd.s32 4294967256, %v2827_v11  ;;  %v1233_v29 = vadd.s32 4294967248, %v2827_v11 }
 0x2cd   : > { %1148 = vperm.xlu1 %2329, %v1113_v30  }
 0x2ce   : > { %1145 = vperm.xlu0 %2328, %v1112_v31   ;;  %v1043_v33 = vpop.permute.xlu1 %1042 }
 0x2cf   : > { %v1051_v34 = vpop.permute.xlu0 %1050  ;;  %v1114_v35 = vsub.f32 %v1013_v32, %v1043_v33 }
 0x2d0   : > { %v1116_v40 = vsub.f32 %v1015_v38, %v1051_v34  ;;  %v1229_v34 = vsub.s32 %v1226_v26, %v2829_v12 }
 0x2d1   : > { %1151 = vperm.xlu1 %2329, %v1114_v35   ;;  %v1240_v35 = vadd.s32 4294967240, %v2827_v11 }
 0x2d2   : > { %v1047_v39 = vpop.permute.xlu1 %1046 }
 0x2d3   : > { %v1059_v36 = vpop.permute.xlu0 %1058  ;;  %v1115_v41 = vsub.f32 %v1014_v37, %v1047_v39  ;;  %v1236_v39 = vsub.s32 %v1233_v29, %v2829_v12  ;;  %v2866_v29 = vld [vmem:[%s3403_s4 + $0x8] sm:$0xff] }
 0x2d4   : > { %v1118_v46 = vsub.f32 %v1017_v43, %v1059_v36  ;;  %v1247_v36 = vadd.s32 4294967232, %v2827_v11  ;;  %vm1333_vm3 = vcmp.gt.f32.partialorder %v2866_v29, 0.0 }
 0x2d5   : > { %1154 = vperm.xlu0 %2328, %v1115_v41   ;;  %1157 = vperm.xlu1 %2329, %v1116_v40  }
 0x2d6   : > { %v1055_v44 = vpop.permute.xlu1 %1054 }
 0x2d7   : > { %v1067_v45 = vpop.permute.xlu0 %1066  ;;  %v1117_v48 = vsub.f32 %v1016_v42, %v1055_v44  ;;  %v1243_v44 = vsub.s32 %v1240_v35, %v2829_v12 }
 0x2d8   : > { %v1120_v54 = vsub.f32 %v1019_v50, %v1067_v45  ;;  %v1254_v45 = vadd.s32 4294967224, %v2827_v11  ;;  %v1261_v50 = vadd.s32 4294967216, %v2827_v11 }
 0x2d9   : > { %1160 = vperm.xlu0 %2328, %v1117_v48   ;;  %1163 = vperm.xlu1 %2329, %v1118_v46  }
 0x2da   : > { %v1063_v51 = vpop.permute.xlu1 %1062 }
 0x2db   : > { %v1075_v53 = vpop.permute.xlu0 %1074  ;;  %v1119_v55 = vsub.f32 %v1018_v49, %v1063_v51  ;;  %v1250_v49 = vsub.s32 %v1247_v36, %v2829_v12 }
 0x2dc   : > { %v1122_v60 = vsub.f32 %v1021_v58, %v1075_v53  ;;  %v1268_v58 = vadd.s32 4294967208, %v2827_v11 }
 0x2dd   : > { %1166 = vperm.xlu0 %2328, %v1119_v55   ;;  %1169 = vperm.xlu1 %2329, %v1120_v54  }
 0x2de   : > { %v1071_v47 = vpop.permute.xlu1 %1070 }
 0x2df   : > { %v1083_v59 = vpop.permute.xlu0 %1082  ;;  %v1121_v61 = vsub.f32 %v1020_v52, %v1071_v47  ;;  %v1257_v52 = vsub.s32 %v1254_v45, %v2829_v12 }
 0x2e0   : > { %v1124_v1 = vsub.f32 %v1023_v63, %v1083_v59 }
 0x2e1   : > { %1172 = vperm.xlu0 %2328, %v1121_v61   ;;  %1175 = vperm.xlu1 %2329, %v1122_v60   ;;  %v1264_v60 = vsub.s32 %v1261_v50, %v2829_v12  ;;  %v1275_v61 = vadd.s32 4294967200, %v2827_v11  ;;  %v984_v50 = vld [vmem:[#allocation3 + $0x68] sm:$0xff] }
 0x2e2   : > { %v1079_v0 = vpop.permute.xlu1 %1078 }
 0x2e3   : > { %v1123_v2 = vsub.f32 %v1022_v62, %v1079_v0  ;;  %v1091_v3 = vpop.permute.xlu0 %1090 }
 0x2e4   : > { %v1126_v6 = vsub.f32 %v1025_v5, %v1091_v3  ;;  %v1282_v3 = vadd.s32 4294967192, %v2827_v11 }
 0x2e5   : > { %1178 = vperm.xlu0 %2328, %v1123_v2   ;;  %1181 = vperm.xlu1 %2329, %v1124_v1   ;;  %v1271_v2 = vsub.s32 %v1268_v58, %v2829_v12 }
 0x2e6   : > { %v1087_v56 = vpop.permute.xlu1 %1086  ;;  %v1285_v10 = vsub.s32 %v1282_v3, %v2829_v12 }
 0x2e7   : > { %v1125_v7 = vsub.f32 %v1024_v4, %v1087_v56  ;;  %v1278_v56 = vsub.s32 %v1275_v61, %v2829_v12  ;;  %v986_v61 = vld [vmem:[#allocation3 + $0x48] sm:$0xff] }
 0x2e9   : > { %1184 = vperm.xlu0 %2328, %v1125_v7   ;;  %1187 = vperm.xlu1 %2329, %v1126_v6   ;;  %v1289_v6 = vadd.s32 4294967184, %v2827_v11  ;;  %v983_v11 = vld [vmem:[#allocation3 + $0x50] sm:$0xff] }
 0x2ea   : > { %v1095_v8 = vpop.permute.xlu1 %1094  ;;  %v999_v35 = vmul.f32 2.0, %v983_v11  ;;  %v3002_v11 = vld [vmem:[%s3403_s4 + $0x58] sm:$0xff] }
 0x2eb   : > { %v1127_v9 = vsub.f32 %v1026_v57, %v1095_v8 }
 0x2ed   : > { %1190 = vperm.xlu0 %2328, %v1127_v9  }
 0x348   : > { %v1149_v15 = vpop.permute.xlu1 %1148 }
 0x349   : > { %v1146_v19 = vpop.permute.xlu0 %1145  ;;  %v1202_v23 = vrot.slane %v1149_v15, %v1201_v16  ;;  %v1292_v16 = vsub.s32 %v1289_v6, %v2829_v12  ;;  %v2871_v12 = vld [vmem:[%s3403_s4] sm:$0xff] }
 0x34a   : > { %v1197_v24 = vrot.slane %v1146_v19, %v1196_v17  ;;  %v988_v6 = vld [vmem:[#allocation3 + $0x20] sm:$0xff] }
 0x34c   : > { %v1152_v22 = vpop.permute.xlu1 %1151  ;;  %v1204_v32 = vsel %vm1203_vm4, %v1202_v23, %v1197_v24  ;;  %v979_v23 = vld [vmem:[#allocation3 + $0x30] sm:$0xff]  ;;  %vm1332_vm4 = vcmp.gt.f32.partialorder %v2871_v12, 0.0 }
 0x34d   : > { %v1209_v27 = vrot.slane %v1152_v22, %v1208_v20  ;;  %v980_v22 = vld [vmem:[#allocation3] sm:$0xff] }
 0x34f   : > { %v1211_v37 = vsel %vm1210_vm5, %v1209_v27, %v1204_v32  ;;  %v981_v27 = vld [vmem:[#allocation3 + $0x58] sm:$0xff] }
 0x350   : > { %v1158_v30 = vpop.permute.xlu1 %1157  ;;  %v1155_v31 = vpop.permute.xlu0 %1154 }
 0x351   : > { %v1216_v33 = vrot.slane %v1155_v31, %v1215_v25  ;;  %v1223_v38 = vrot.slane %v1158_v30, %v1222_v28  ;;  %v996_v30 = vmul.f32 2.0, %v980_v22  ;;  %v995_v31 = vmul.f32 2.0, %v979_v23 }
 0x353   : > { %v1218_v40 = vsel %vm1217_vm6, %v1216_v33, %v1211_v37  ;;  %v982_v37 = vld [vmem:[#allocation3 + $0x18] sm:$0xff] }
 0x354   : > { %v1164_v41 = vpop.permute.xlu1 %1163  ;;  %v1161_v42 = vpop.permute.xlu0 %1160  ;;  %v1225_v48 = vsel %vm1224_vm7, %v1223_v38, %v1218_v40  ;;  %v985_v38 = vld [vmem:[#allocation3 + $0x8] sm:$0xff] }
 0x355   : > { %v1230_v43 = vrot.slane %v1161_v42, %v1229_v34  ;;  %v1237_v46 = vrot.slane %v1164_v41, %v1236_v39  ;;  %v997_v34 = vmul.f32 2.0, %v981_v27  ;;  %v2882_v41 = vld [vmem:[%s3403_s4 + $0x10] sm:$0xff]  ;;  %v2887_v42 = vld [vmem:[%s3403_s4 + $0x20] sm:$0xff] }
 0x356   : > { %vm1334_vm5 = vcmp.gt.f32.partialorder %v2882_v41, 0.0  ;;  %vm1336_vm6 = vcmp.gt.f32.partialorder %v2887_v42, 0.0  ;;  %v992_v27 = vld [vmem:[#allocation3 + $0x70] sm:$0xff] }
 0x357   : > { %v1232_v51 = vsel %vm1231_vm8, %v1230_v43, %v1225_v48  ;;  %v998_v43 = vmul.f32 2.0, %v982_v37  ;;  %v3026_v37 = vld [vmem:[%s3403_s4 + $0x68] sm:$0xff] }
 0x358   : > { %v1170_v53 = vpop.permute.xlu1 %1169  ;;  %v1167_v54 = vpop.permute.xlu0 %1166  ;;  %v1239_v59 = vsel %vm1238_vm9, %v1237_v46, %v1232_v51  ;;  %v987_v51 = vld [vmem:[#allocation3 + $0x40] sm:$0xff] }
 0x359   : > { %v1244_v55 = vrot.slane %v1167_v54, %v1243_v44  ;;  %v1251_v47 = vrot.slane %v1170_v53, %v1250_v49  ;;  %v1001_v44 = vmul.f32 2.0, %v985_v38  ;;  %v2906_v53 = vld [vmem:[%s3403_s4 + $0x18] sm:$0xff]  ;;  %v2911_v54 = vld [vmem:[%s3403_s4 + $0x30] sm:$0xff] }
 0x35a   : > { %vm1335_vm7 = vcmp.gt.f32.partialorder %v2906_v53, 0.0  ;;  %vm1338_vm8 = vcmp.gt.f32.partialorder %v2911_v54, 0.0 }
 0x35b   : > { %v1246_v62 = vsel %vm1245_vm10, %v1244_v55, %v1239_v59  ;;  %v1000_v55 = vmul.f32 2.0, %v984_v50 }
 0x35c   : > { %v1176_v63 = vpop.permute.xlu1 %1175  ;;  %v1173_v0 = vpop.permute.xlu0 %1172  ;;  %v1253_v5 = vsel %vm1252_vm11, %v1251_v47, %v1246_v62  ;;  %v989_v62 = vld [vmem:[#allocation3 + $0x10] sm:$0xff] }
 0x35d   : > { %v1258_v1 = vrot.slane %v1173_v0, %v1257_v52  ;;  %v1265_v4 = vrot.slane %v1176_v63, %v1264_v60  ;;  %v1003_v52 = vmul.f32 2.0, %v987_v51  ;;  %v2930_v63 = vld [vmem:[%s3403_s4 + $0x28] sm:$0xff]  ;;  %v2935_v0 = vld [vmem:[%s3403_s4 + $0x40] sm:$0xff]  ;;  %v1562_v51 = vld [vmem:[%s3404_s5 + $0x70] sm:$0xff] }
 0x35e   : > { %vm1337_vm9 = vcmp.gt.f32.partialorder %v2930_v63, 0.0  ;;  %vm1340_vm10 = vcmp.gt.f32.partialorder %v2935_v0, 0.0  ;;  %v1560_v63 = vld [vmem:[%s3404_s5 + $0x60] sm:$0xff] }
 0x35f   : > { %v1260_v7 = vsel %vm1259_vm12, %v1258_v1, %v1253_v5  ;;  %v1002_v1 = vmul.f32 2.0, %v986_v61 }
 0x360   : > { %v1182_v57 = vpop.permute.xlu1 %1181  ;;  %v1179_v8 = vpop.permute.xlu0 %1178  ;;  %v1267_v15 = vsel %vm1266_vm13, %v1265_v4, %v1260_v7  ;;  %v991_v7 = vld [vmem:[#allocation3 + $0x60] sm:$0xff] }
 0x361   : > { %v1272_v9 = vrot.slane %v1179_v8, %v1271_v2  ;;  %v1279_v14 = vrot.slane %v1182_v57, %v1278_v56  ;;  %v1005_v2 = vmul.f32 2.0, %v989_v62  ;;  %v2954_v57 = vld [vmem:[%s3403_s4 + $0x38] sm:$0xff]  ;;  %v2959_v8 = vld [vmem:[%s3403_s4 + $0x50] sm:$0xff] }
 0x362   : > { %vm1339_vm11 = vcmp.gt.f32.partialorder %v2954_v57, 0.0  ;;  %vm1342_vm12 = vcmp.gt.f32.partialorder %v2959_v8, 0.0  ;;  %v1559_v57 = vld [vmem:[%s3404_s5 + $0x58] sm:$0xff] }
 0x363   : > { %v1274_v17 = vsel %vm1273_vm14, %v1272_v9, %v1267_v15  ;;  %v1004_v9 = vmul.f32 2.0, %v988_v6 }
 0x364   : > { %v1188_v18 = vpop.permute.xlu1 %1187  ;;  %v1185_v19 = vpop.permute.xlu0 %1184  ;;  %v1281_v25 = vsel %vm1280_vm15, %v1279_v14, %v1274_v17  ;;  %v990_v17 = vld [vmem:[#allocation3 + $0x38] sm:$0xff]  ;;  %vm1343_vm15 = vcmp.gt.f32.partialorder %v3002_v11, 0.0 }
 0x365   : > { %v1286_v20 = vrot.slane %v1185_v19, %v1285_v10  ;;  %v1293_v24 = vrot.slane %v1188_v18, %v1292_v16  ;;  %v1007_v10 = vmul.f32 2.0, %v991_v7  ;;  %v993_v18 = vld [vmem:[#allocation3 + $0x78] sm:$0xff]  ;;  %v2978_v19 = vld [vmem:[%s3403_s4 + $0x48] sm:$0xff] }
 0x366   : > { %v1009_v22 = vmul.f32 2.0, %v993_v18  ;;  %vm1341_vm13 = vcmp.gt.f32.partialorder %v2978_v19, 0.0  ;;  %v1557_v19 = vld [vmem:[%s3404_s5 + $0x48] sm:$0xff]  ;;  %v1555_v11 = vld [vmem:[%s3404_s5 + $0x38] sm:$0xff] }
 0x367   : > { %v1288_v26 = vsel %vm1287_vm0, %v1286_v20, %v1281_v25  ;;  %v2983_v20 = vld [vmem:[%s3403_s4 + $0x60] sm:$0xff] }
 0x368   : > { %v1191_v28 = vpop.permute.xlu0 %1190  ;;  %v1295_v33 = vsel %vm1294_vm1, %v1293_v24, %v1288_v26  ;;  %vm1344_vm14 = vcmp.gt.f32.partialorder %v2983_v20, 0.0  ;;  %vm1345_vm1 = vcmp.gt.f32.partialorder %v3026_v37, 0.0  ;;  %v1553_v37 = vld [vmem:[%s3404_s5 + $0x28] sm:$0xff] }
 0x369   : > { %v1300_v32 = vrot.slane %v1191_v28, %v1299_v21  ;;  %v1006_v21 = vmul.f32 2.0, %v990_v17  ;;  %v3007_v28 = vld [vmem:[%s3403_s4 + $0x70] sm:$0xff] }
 0x36a   : > { %vm1346_vm0 = vcmp.gt.f32.partialorder %v3007_v28, 0.0 }
 0x36b   : > { %v2873_v39 = vsel %vm1301_vm2, %v1300_v32, %v1295_v33 }
 0x36c   : > { %v1317_v36 = vadd.f32 %v2873_v39, %v996_v30  ;;  %v1316_v40 = vadd.f32 %v2873_v39, %v995_v31  ;;  %v1318_v48 = vadd.f32 %v2873_v39, %v997_v34  ;;  %v1320_v49 = vadd.f32 %v2873_v39, %v999_v35  ;;  %v994_v35 = vld [vmem:[#allocation3 + $0x28] sm:$0xff] }
 0x36d   : > { %v1319_v59 = vadd.f32 %v2873_v39, %v998_v43  ;;  %v1322_v60 = vadd.f32 %v2873_v39, %v1001_v44  ;;  %v1321_v5 = vadd.f32 %v2873_v39, %v1000_v55  ;;  %v1324_v56 = vadd.f32 %v2873_v39, %v1003_v52  ;;  %v3043_v44 = vld [vmem:[%s3403_s4 + $0x78] sm:$0xff] }
 0x36e   : > { %v2891_v45 = vsel %vm1333_vm3, %v1317_v36, -1e+30  ;;  %v2895_v46 = vsel %vm1332_vm4, %v1316_v40, -1e+30  ;;  %v2915_v58 = vsel %vm1334_vm5, %v1318_v48, -1e+30  ;;  %v1323_v15 = vadd.f32 %v2873_v39, %v1002_v1 }
 0x36f   : > { %1366 = vmax.xlane.f32.xlu0 %v2891_v45  ;;  %1364 = vmax.xlane.f32.xlu1 %v2895_v46  ;;  %v2919_v47 = vsel %vm1336_vm6, %v1320_v49, -1e+30  ;;  %v2939_v3 = vsel %vm1335_vm7, %v1319_v59, -1e+30  ;;  %v2943_v4 = vsel %vm1338_vm8, %v1322_v60, -1e+30  ;;  %v1326_v16 = vadd.f32 %v2873_v39, %v1005_v2 }
 0x370   : > { %v2963_v13 = vsel %vm1337_vm9, %v1321_v5, -1e+30  ;;  %v2967_v14 = vsel %vm1340_vm10, %v1324_v56, -1e+30  ;;  %v2987_v23 = vsel %vm1339_vm11, %v1323_v15, -1e+30  ;;  %v1325_v25 = vadd.f32 %v2873_v39, %v1004_v9 }
 0x371   : > { %v2991_v24 = vsel %vm1342_vm12, %v1326_v16, -1e+30  ;;  %v1328_v26 = vadd.f32 %v2873_v39, %v1007_v10  ;;  %v1008_v30 = vmul.f32 2.0, %v992_v27  ;;  %v1327_v33 = vadd.f32 %v2873_v39, %v1006_v21  ;;  %v1563_v55 = vld [vmem:[%s3404_s5 + $0x78] sm:$0xff] }
 0x372   : > { %v3011_v31 = vsel %vm1341_vm13, %v1325_v25, -1e+30  ;;  %v1330_v34 = vadd.f32 %v2873_v39, %v1009_v22  ;;  %v1010_v43 = vmul.f32 2.0, %v994_v35  ;;  %vm1347_vm2 = vcmp.gt.f32.partialorder %v3043_v44, 0.0 }
 0x373   : > { %1368 = vmax.xlane.f32.xlu0 %v2915_v58  ;;  %1372 = vmax.xlane.f32.xlu1 %v2919_v47  ;;  %v3015_v32 = vsel %vm1344_vm14, %v1328_v26, -1e+30  ;;  %v3030_v38 = vsel %vm1343_vm15, %v1327_v33, -1e+30  ;;  %v1329_v40 = vadd.f32 %v2873_v39, %v1008_v30  ;;  %v1571_v52 = vpack.c.bf16 %v1563_v55, %v1562_v51 }
 0x374   : > { %v3034_v36 = vsel %vm1346_vm0, %v1330_v34, -1e+30  ;;  %v1331_v49 = vadd.f32 %v2873_v39, %v1010_v43 }
 0x375   : > { %v3047_v48 = vsel %vm1345_vm1, %v1329_v40, -1e+30  ;;  %2213 = vmatprep.subr.bf16.mxu0 %v1571_v52 }
 0x376   : > { %v3054_v50 = vsel %vm1347_vm2, %v1331_v49, -1e+30  ;;  %2214 = vmatpush3.bf16.msra.mxu0 %v1571_v52 }
 0x377   : > { %1370 = vmax.xlane.f32.xlu0 %v2939_v3  ;;  %1376 = vmax.xlane.f32.xlu1 %v2943_v4 }
 0x37b   : > { %1374 = vmax.xlane.f32.xlu0 %v2963_v13  ;;  %1380 = vmax.xlane.f32.xlu1 %v2967_v14 }
 0x37f   : > { %1378 = vmax.xlane.f32.xlu0 %v2987_v23  ;;  %1384 = vmax.xlane.f32.xlu1 %v2991_v24 }
 0x383   : > { %1382 = vmax.xlane.f32.xlu0 %v3011_v31  ;;  %1388 = vmax.xlane.f32.xlu1 %v3015_v32 }
 0x387   : > { %1386 = vmax.xlane.f32.xlu0 %v3030_v38  ;;  %1392 = vmax.xlane.f32.xlu1 %v3034_v36 }
 0x38b   : > { %1390 = vmax.xlane.f32.xlu0 %v3047_v48 }
 0x38f   : > { %1394 = vmax.xlane.f32.xlu0 %v3054_v50 }
 0x3f8   : > { %v1367_v39 = vpop.xlane.xlu0 %1366  ;;  %v1365_v59 = vpop.xlane.xlu1 %1364 }
 0x3f9   : > { %v1397_v60 = vsub.f32 %v2891_v45, %v1367_v39  ;;  %v1396_v61 = vsub.f32 %v2895_v46, %v1365_v59 }
 0x3fb   : > { %v1414_v62 = vmul.f32 1.442695, %v1397_v60  ;;  %v1412_v1 = vmul.f32 1.442695, %v1396_v61 }
 0x3fc   : > { %v1369_v2 = vpop.xlane.xlu0 %1368  ;;  %v1373_v5 = vpop.xlane.xlu1 %1372 }
 0x3fd   : > { %2330 = vpow2.f32 %v1414_v62  ;;  %v1398_v56 = vsub.f32 %v2915_v58, %v1369_v2  ;;  %v1400_v6 = vsub.f32 %v2919_v47, %v1373_v5 }
 0x3fe   : > { %2332 = vpow2.f32 %v1412_v1 }
 0x3ff   : > { %v1416_v7 = vmul.f32 1.442695, %v1398_v56  ;;  %v1420_v9 = vmul.f32 1.442695, %v1400_v6 }
 0x400   : > { %v1371_v10 = vpop.xlane.xlu0 %1370  ;;  %v1377_v15 = vpop.xlane.xlu1 %1376 }
 0x401   : > { %2334 = vpow2.f32 %v1416_v7  ;;  %v1399_v16 = vsub.f32 %v2939_v3, %v1371_v10  ;;  %v1402_v45 = vsub.f32 %v2943_v4, %v1377_v15  ;;  %v1561_v7 = vld [vmem:[%s3404_s5 + $0x68] sm:$0xff] }
 0x402   : > { %2336 = vpow2.f32 %v1420_v9  ;;  %v1570_v10 = vpack.c.bf16 %v1561_v7, %v1560_v63 }
 0x403   : > { %v1418_v46 = vmul.f32 1.442695, %v1399_v16  ;;  %v1424_v17 = vmul.f32 1.442695, %v1402_v45  ;;  %v1558_v45 = vld [vmem:[%s3404_s5 + $0x50] sm:$0xff] }
 0x404   : > { %v1375_v18 = vpop.xlane.xlu0 %1374  ;;  %v1381_v21 = vpop.xlane.xlu1 %1380  ;;  %2215 = vmatprep.subr.bf16.mxu0 %v1570_v10 }
 0x405   : > { %2338 = vpow2.f32 %v1418_v46  ;;  %v1401_v58 = vsub.f32 %v2963_v13, %v1375_v18  ;;  %v1404_v47 = vsub.f32 %v2967_v14, %v1381_v21  ;;  %2216 = vmatpush3.bf16.msra.mxu0 %v1570_v10 }
 0x406   : > { %2340 = vpow2.f32 %v1424_v17  ;;  %v1569_v17 = vpack.c.bf16 %v1559_v57, %v1558_v45 }
 0x407   : > { %v1422_v22 = vmul.f32 1.442695, %v1401_v58  ;;  %v1428_v25 = vmul.f32 1.442695, %v1404_v47  ;;  %v1556_v58 = vld [vmem:[%s3404_s5 + $0x40] sm:$0xff] }
 0x408   : > { %v1379_v26 = vpop.xlane.xlu0 %1378  ;;  %v1385_v27 = vpop.xlane.xlu1 %1384  ;;  %2217 = vmatprep.subr.bf16.mxu0 %v1569_v17 }
 0x409   : > { %2342 = vpow2.f32 %v1422_v22  ;;  %v1403_v3 = vsub.f32 %v2987_v23, %v1379_v26  ;;  %v1406_v4 = vsub.f32 %v2991_v24, %v1385_v27  ;;  %2218 = vmatpush3.bf16.msra.mxu0 %v1569_v17  ;;  %v1568_v22 = vpack.c.bf16 %v1557_v19, %v1556_v58  ;;  %v1554_v27 = vld [vmem:[%s3404_s5 + $0x30] sm:$0xff] }
 0x40a   : > { %v2331_v30 = vpop.eup %2330  ;;  %2344 = vpow2.f32 %v1428_v25 }
 0x40b   : > { %v2333_v33 = vpop.eup %2332  ;;  %v1426_v34 = vmul.f32 1.442695, %v1403_v3  ;;  %v3075_v35 = vsel %vm1333_vm3, %v2331_v30, 0.0  ;;  %v1432_v13 = vmul.f32 1.442695, %v1406_v4  ;;  %2219 = vmatprep.subr.bf16.mxu0 %v1568_v22  ;;  %v1567_v4 = vpack.c.bf16 %v1555_v11, %v1554_v27 }
 0x40c   : > { %1462 = vadd.xlane.f32.xlu0 %v3075_v35  ;;  %v1383_v14 = vpop.xlane.xlu0 %1382  ;;  %v3080_v40 = vsel %vm1332_vm4, %v2333_v33, 0.0  ;;  %v1389_v43 = vpop.xlane.xlu1 %1388  ;;  %v1552_v33 = vld [vmem:[%s3404_s5 + $0x20] sm:$0xff]  ;;  %vm1939_vm3 = vcmask 0   ;;  %vm1830_vm4 = vcmask 64512  }
 0x40d   : > { %2346 = vpow2.f32 %v1426_v34  ;;  %v1405_v23 = vsub.f32 %v3011_v31, %v1383_v14  ;;  %1460 = vadd.xlane.f32.xlu1 %v3080_v40  ;;  %v1408_v24 = vsub.f32 %v3015_v32, %v1389_v43  ;;  %2220 = vmatpush3.bf16.msra.mxu0 %v1568_v22  ;;  %v1550_v14 = vld [vmem:[%s3404_s5 + $0x10] sm:$0xff]  ;;  %v1551_v43 = vld [vmem:[%s3404_s5 + $0x18] sm:$0xff] }
 0x40e   : > { %v2335_v29 = vpop.eup %2334  ;;  %2348 = vpow2.f32 %v1432_v13  ;;  %2221 = vmatprep.subr.bf16.mxu0 %v1567_v4  ;;  %v1566_v13 = vpack.c.bf16 %v1553_v37, %v1552_v33  ;;  %v1565_v44 = vpack.c.bf16 %v1551_v43, %v1550_v14 }
 0x40f   : > { %v1430_v49 = vmul.f32 1.442695, %v1405_v23  ;;  %v3087_v51 = vsel %vm1334_vm5, %v2335_v29, 0.0  ;;  %v1436_v55 = vmul.f32 1.442695, %v1408_v24  ;;  %v2337_v39 = vpop.eup %2336  ;;  %v1548_v23 = vld [vmem:[%s3404_s5] sm:$0xff] }
 0x410   : > { %v1387_v52 = vpop.xlane.xlu0 %1386  ;;  %v1393_v12 = vpop.xlane.xlu1 %1392  ;;  %v3099_v1 = vsel %vm1336_vm6, %v2337_v39, 0.0  ;;  %v1549_v24 = vld [vmem:[%s3404_s5 + $0x8] sm:$0xff] }
 0x411   : > { %2350 = vpow2.f32 %v1430_v49  ;;  %v1407_v59 = vsub.f32 %v3030_v38, %v1387_v52  ;;  %1464 = vadd.xlane.f32.xlu1 %v3087_v51  ;;  %v1410_v31 = vsub.f32 %v3034_v36, %v1393_v12  ;;  %2222 = vmatpush3.bf16.msra.mxu0 %v1567_v4  ;;  %v1564_v29 = vpack.c.bf16 %v1549_v24, %v1548_v23  ;;  %v1707_v49 = vld [vmem:[%s2537_s18 + $0x70] sm:$0xff]  ;;  %v1705_v52 = vld [vmem:[%s2537_s18 + $0x60] sm:$0xff]  ;;  %v1706_v39 = vld [vmem:[%s2537_s18 + $0x68] sm:$0xff] }
 0x412   : > { %v2339_v60 = vpop.eup %2338  ;;  %2352 = vpow2.f32 %v1436_v55  ;;  %2223 = vmatprep.subr.bf16.mxu0 %v1566_v13  ;;  %v1708_v55 = vld [vmem:[%s2537_s18 + $0x78] sm:$0xff] }
 0x413   : > { %v1434_v32 = vmul.f32 1.442695, %v1407_v59  ;;  %v3094_v61 = vsel %vm1335_vm7, %v2339_v60, 0.0  ;;  %v1440_v41 = vmul.f32 1.442695, %v1410_v31  ;;  %v2341_v38 = vpop.eup %2340  ;;  %v1716_v12 = vpack.c.bf16 %v1708_v55, %v1707_v49  ;;  %v1703_v31 = vld [vmem:[%s2537_s18 + $0x50] sm:$0xff] }
 0x414   : > { %1466 = vadd.xlane.f32.xlu0 %v3094_v61  ;;  %v1391_v62 = vpop.xlane.xlu0 %1390  ;;  %v3110_v42 = vsel %vm1338_vm8, %v2341_v38, 0.0  ;;  %v1715_v59 = vpack.c.bf16 %v1706_v39, %v1705_v52  ;;  %v1704_v60 = vld [vmem:[%s2537_s18 + $0x58] sm:$0xff] }
 0x415   : > { %2354 = vpow2.f32 %v1434_v32  ;;  %v1409_v2 = vsub.f32 %v3047_v48, %v1391_v62  ;;  %1468 = vadd.xlane.f32.xlu1 %v3099_v1  ;;  %2224 = vmatpush3.bf16.msra.mxu0 %v1566_v13  ;;  %v1714_v32 = vpack.c.bf16 %v1704_v60, %v1703_v31 }
 0x416   : > { %v2343_v36 = vpop.eup %2342  ;;  %2356 = vpow2.f32 %v1440_v41  ;;  %2225 = vmatprep.subr.bf16.mxu0 %v1565_v44  ;;  %2245 = vmatprep.subr.bf16.mxu1 %v1716_v12 }
 0x417   : > { %v1438_v5 = vmul.f32 1.442695, %v1409_v2  ;;  %v3105_v53 = vsel %vm1337_vm9, %v2343_v36, 0.0  ;;  %v2345_v6 = vpop.eup %2344  ;;  %2246 = vmatpush3.bf16.msra.mxu1 %v1716_v12 }
 0x418   : > { %1470 = vadd.xlane.f32.xlu0 %v3105_v53  ;;  %v1395_v56 = vpop.xlane.xlu0 %1394  ;;  %2247 = vmatprep.subr.bf16.mxu1 %v1715_v59 }
 0x419   : > { %2358 = vpow2.f32 %v1438_v5  ;;  %v1411_v48 = vsub.f32 %v3054_v50, %v1395_v56  ;;  %1472 = vadd.xlane.f32.xlu1 %v3110_v42  ;;  %v3127_v50 = vsel %vm1340_vm10, %v2345_v6, 0.0  ;;  %2226 = vmatpush3.bf16.msra.mxu0 %v1565_v44 }
 0x41a   : > { %v2347_v9 = vpop.eup %2346  ;;  %2227 = vmatprep.subr.bf16.mxu0 %v1564_v29 }
 0x41b   : > { %v1442_v15 = vmul.f32 1.442695, %v1411_v48  ;;  %v3122_v54 = vsel %vm1339_vm11, %v2347_v9, 0.0  ;;  %v2349_v16 = vpop.eup %2348  ;;  %2248 = vmatpush3.bf16.msra.mxu1 %v1715_v59 }
 0x41c   : > { %1474 = vadd.xlane.f32.xlu0 %v3122_v54  ;;  %v3143_v18 = vsel %vm1342_vm12, %v2349_v16, 0.0  ;;  %2249 = vmatprep.subr.bf16.mxu1 %v1714_v32 }
 0x41d   : > { %2360 = vpow2.f32 %v1442_v15  ;;  %1476 = vadd.xlane.f32.xlu1 %v3127_v50  ;;  %2228 = vmatpush3.bf16.msra.mxu0 %v1564_v29 }
 0x41e   : > { %v2351_v46 = vpop.eup %2350 }
 0x41f   : > { %v3138_v0 = vsel %vm1341_vm13, %v2351_v46, 0.0  ;;  %v2353_v21 = vpop.eup %2352  ;;  %2250 = vmatpush3.bf16.msra.mxu1 %v1714_v32 }
 0x420   : > { %1478 = vadd.xlane.f32.xlu0 %v3138_v0  ;;  %v3159_v25 = vsel %vm1344_vm14, %v2353_v21, 0.0 }
 0x421   : > { %1480 = vadd.xlane.f32.xlu1 %v3143_v18 }
 0x422   : > { %v2355_v47 = vpop.eup %2354 }
 0x423   : > { %v3154_v8 = vsel %vm1343_vm15, %v2355_v47, 0.0  ;;  %v2357_v26 = vpop.eup %2356 }
 0x424   : > { %1482 = vadd.xlane.f32.xlu0 %v3154_v8  ;;  %v3175_v30 = vsel %vm1346_vm0, %v2357_v26, 0.0 }
 0x425   : > { %1484 = vadd.xlane.f32.xlu1 %v3159_v25 }
 0x426   : > { %v2359_v3 = vpop.eup %2358 }
 0x427   : > { %v3170_v20 = vsel %vm1345_vm1, %v2359_v3, 0.0 }
 0x428   : > { %1486 = vadd.xlane.f32.xlu0 %v3170_v20 }
 0x429   : > { %1488 = vadd.xlane.f32.xlu1 %v3175_v30 }
 0x42a   : > { %v2361_v34 = vpop.eup %2360 }
 0x42b   : > { %v3186_v28 = vsel %vm1347_vm2, %v2361_v34, 0.0 }
 0x42c   : > { %1490 = vadd.xlane.f32.xlu0 %v3186_v28 }
 0x495   : > { %v1463_v41 = vpop.xlane.xlu0 %1462 }
 0x496   : > { %v1493_v62 = vadd.f32 1e-12, %v1463_v41  ;;  %v1461_v38 = vpop.xlane.xlu1 %1460 }
 0x497   : > { %v1492_v2 = vadd.f32 1e-12, %v1461_v38 }
 0x498   : > { %2362 = vrcp.f32 %v1493_v62 }
 0x499   : > { %2364 = vrcp.f32 %v1492_v2 }
 0x49a   : > { %v1465_v36 = vpop.xlane.xlu1 %1464 }
 0x49b   : > { %v1494_v5 = vadd.f32 1e-12, %v1465_v36 }
 0x49d   : > { %2366 = vrcp.f32 %v1494_v5  ;;  %v1467_v56 = vpop.xlane.xlu0 %1466 }
 0x49e   : > { %v1495_v6 = vadd.f32 1e-12, %v1467_v56  ;;  %v1469_v48 = vpop.xlane.xlu1 %1468 }
 0x49f   : > { %v1496_v63 = vadd.f32 1e-12, %v1469_v48 }
 0x4a0   : > { %2368 = vrcp.f32 %v1495_v6 }
 0x4a1   : > { %2370 = vrcp.f32 %v1496_v63  ;;  %v1471_v7 = vpop.xlane.xlu0 %1470 }
 0x4a2   : > { %v1497_v9 = vadd.f32 1e-12, %v1471_v7  ;;  %v1473_v10 = vpop.xlane.xlu1 %1472 }
 0x4a3   : > { %v1498_v15 = vadd.f32 1e-12, %v1473_v10 }
 0x4a4   : > { %2372 = vrcp.f32 %v1497_v9 }
 0x4a5   : > { %v2363_v16 = vpop.eup %2362  ;;  %2374 = vrcp.f32 %v1498_v15  ;;  %v1475_v45 = vpop.xlane.xlu0 %1474 }
 0x4a6   : > { %v2365_v57 = vpop.eup %2364  ;;  %v1499_v46 = vadd.f32 1e-12, %v1475_v45  ;;  %v1477_v17 = vpop.xlane.xlu1 %1476  ;;  %v3208_v21 = vmul.f32 %v2363_v16, %v3075_v35 }
 0x4a7   : > { %v1500_v58 = vadd.f32 1e-12, %v1477_v17  ;;  %v3211_v19 = vmul.f32 %v2365_v57, %v3080_v40 }
 0x4a8   : > { %2376 = vrcp.f32 %v1499_v46  ;;  %v1849_v47 = vadd.f32 1e-12, %v3208_v21 }
 0x4a9   : > { %2378 = vrcp.f32 %v1500_v58  ;;  %v1479_v22 = vpop.xlane.xlu0 %1478  ;;  %v1540_v26 = vpack.c.bf16 %v3208_v21, %v3211_v19  ;;  %v1848_v27 = vadd.f32 1e-12, %v3211_v19 }
 0x4aa   : > { %v2367_v11 = vpop.eup %2366  ;;  %v1501_v3 = vadd.f32 1e-12, %v1479_v22  ;;  %v1481_v4 = vpop.xlane.xlu1 %1480  ;;  %2380 = vlog2.f32 %v1849_v47 }
 0x4ab   : > { %v1502_v35 = vadd.f32 1e-12, %v1481_v4  ;;  %2229 = vmatprep.mubr.bf16.mxu0 %v1540_v26  ;;  %2382 = vlog2.f32 %v1848_v27  ;;  %v3218_v40 = vmul.f32 %v2367_v11, %v3087_v51 }
 0x4ac   : > { %2384 = vrcp.f32 %v1501_v3 }
 0x4ad   : > { %v2369_v33 = vpop.eup %2368  ;;  %2386 = vrcp.f32 %v1502_v35  ;;  %v1483_v37 = vpop.xlane.xlu0 %1482  ;;  %v1850_v34 = vadd.f32 1e-12, %v3218_v40 }
 0x4ae   : > { %v2371_v13 = vpop.eup %2370  ;;  %v1503_v14 = vadd.f32 1e-12, %v1483_v37  ;;  %v1485_v43 = vpop.xlane.xlu1 %1484  ;;  %v3222_v44 = vmul.f32 %v2369_v33, %v3094_v61 }
 0x4af   : > { %v1504_v23 = vadd.f32 1e-12, %v1485_v43  ;;  %2388 = vlog2.f32 %v1850_v34  ;;  %v3225_v24 = vmul.f32 %v2371_v13, %v3099_v1 }
 0x4b0   : > { %2390 = vrcp.f32 %v1503_v14  ;;  %v1541_v51 = vpack.c.bf16 %v3222_v44, %v3218_v40  ;;  %v1851_v29 = vadd.f32 1e-12, %v3222_v44 }
 0x4b1   : > { %v2373_v49 = vpop.eup %2372  ;;  %2392 = vrcp.f32 %v1504_v23  ;;  %v1487_v55 = vpop.xlane.xlu0 %1486  ;;  %v1852_v52 = vadd.f32 1e-12, %v3225_v24 }
 0x4b2   : > { %v2375_v12 = vpop.eup %2374  ;;  %v1505_v39 = vadd.f32 1e-12, %v1487_v55  ;;  %v1489_v61 = vpop.xlane.xlu1 %1488  ;;  %2230 = vmatmul.mubr.bf16.vlgmr.msra.gmra.mxu0 %v1541_v51  ;;  %2394 = vlog2.f32 %v1851_v29  ;;  %v3232_v59 = vmul.f32 %v2373_v49, %v3105_v53 }
 0x4b3   : > { %v1506_v1 = vadd.f32 1e-12, %v1489_v61  ;;  %2396 = vlog2.f32 %v1852_v52  ;;  %v3235_v31 = vmul.f32 %v2375_v12, %v3110_v42 }
 0x4b4   : > { %2398 = vrcp.f32 %v1505_v39  ;;  %v1542_v60 = vpack.c.bf16 %v3232_v59, %v3225_v24  ;;  %v1853_v32 = vadd.f32 1e-12, %v3232_v59 }
 0x4b5   : > { %v2377_v41 = vpop.eup %2376  ;;  %2400 = vrcp.f32 %v1506_v1  ;;  %v1491_v62 = vpop.xlane.xlu0 %1490  ;;  %v1854_v38 = vadd.f32 1e-12, %v3235_v31 }
 0x4b6   : > { %v2379_v2 = vpop.eup %2378  ;;  %v1507_v36 = vadd.f32 1e-12, %v1491_v62  ;;  %2233 = vmatprep.mubr.bf16.mxu0 %v1542_v60  ;;  %2402 = vlog2.f32 %v1853_v32  ;;  %v3242_v53 = vmul.f32 %v2377_v41, %v3122_v54 }
 0x4b7   : > { %v2381_v42 = vpop.eup %2380  ;;  %2404 = vlog2.f32 %v1854_v38  ;;  %v3245_v5 = vmul.f32 %v2379_v2, %v3127_v50 }
 0x4b8   : > { %v2383_v56 = vpop.eup %2382  ;;  %v1867_v6 = vmul.f32 0.6931472, %v2381_v42  ;;  %2406 = vrcp.f32 %v1507_v36  ;;  %v1543_v48 = vpack.c.bf16 %v3242_v53, %v3235_v31  ;;  %v1855_v63 = vadd.f32 1e-12, %v3242_v53 }
 0x4b9   : > { %v2385_v7 = vpop.eup %2384  ;;  %v1865_v9 = vmul.f32 0.6931472, %v2383_v56  ;;  %v1856_v10 = vadd.f32 1e-12, %v3245_v5 }
 0x4ba   : > { %v2387_v15 = vpop.eup %2386  ;;  %2234 = vmatmul.mubr.bf16.gmra.mxu0 %v1543_v48  ;;  %2408 = vlog2.f32 %v1855_v63  ;;  %v3252_v54 = vmul.f32 %v2385_v7, %v3138_v0  ;;  %v1897_v57 = vmul.f32 %v1867_v6, %v3208_v21 }
 0x4bb   : > { %2410 = vlog2.f32 %v1856_v10  ;;  %v3255_v50 = vmul.f32 %v2387_v15, %v3143_v18  ;;  %v1896_v45 = vmul.f32 %v1865_v9, %v3211_v19 }
 0x4bc   : > { %v2389_v16 = vpop.eup %2388  ;;  %v1544_v46 = vpack.c.bf16 %v3252_v54, %v3245_v5  ;;  %v1857_v17 = vadd.f32 1e-12, %v3252_v54 }
 0x4bd   : > { %v2391_v58 = vpop.eup %2390  ;;  %v1869_v47 = vmul.f32 0.6931472, %v2389_v16  ;;  %v1858_v22 = vadd.f32 1e-12, %v3255_v50  ;;  %v1912_v11 = vadd.f32 %v1897_v57, %v1896_v45 }
 0x4be   : > { %v2393_v0 = vpop.eup %2392  ;;  %2237 = vmatprep.mubr.bf16.mxu0 %v1544_v46  ;;  %2412 = vlog2.f32 %v1857_v17  ;;  %v3264_v18 = vmul.f32 %v2391_v58, %v3154_v8 }
 0x4bf   : > { %v2395_v26 = vpop.eup %2394  ;;  %v1898_v19 = vmul.f32 %v1869_v47, %v3218_v40  ;;  %2414 = vlog2.f32 %v1858_v22  ;;  %v3268_v21 = vmul.f32 %v2393_v0, %v3159_v25 }
 0x4c0   : > { %v2397_v27 = vpop.eup %2396  ;;  %v1871_v3 = vmul.f32 0.6931472, %v2395_v26  ;;  %v1545_v4 = vpack.c.bf16 %v3264_v18, %v3255_v50  ;;  %v1859_v35 = vadd.f32 1e-12, %v3264_v18 }
 0x4c1   : > { %v2399_v33 = vpop.eup %2398  ;;  %v1873_v37 = vmul.f32 0.6931472, %v2397_v27  ;;  %v1860_v8 = vadd.f32 1e-12, %v3268_v21  ;;  %v1913_v40 = vadd.f32 %v1912_v11, %v1898_v19 }
 0x4c2   : > { %v2401_v34 = vpop.eup %2400  ;;  %v1899_v13 = vmul.f32 %v1871_v3, %v3222_v44  ;;  %2238 = vmatmul.mubr.bf16.gmra.mxu0 %v1545_v4  ;;  %2416 = vlog2.f32 %v1859_v35  ;;  %v1537_v25 = vmul.f32 %v2399_v33, %v3170_v20  ;;  %v1701_v35 = vld [vmem:[%s2537_s18 + $0x40] sm:$0xff] }
 0x4c3   : > { %v2403_v14 = vpop.eup %2402  ;;  %v1900_v43 = vmul.f32 %v1873_v37, %v3225_v24  ;;  %2418 = vlog2.f32 %v1860_v8  ;;  %v1538_v23 = vmul.f32 %v2401_v34, %v3175_v30  ;;  %v1699_v37 = vld [vmem:[%s2537_s18 + $0x30] sm:$0xff]  ;;  %v1700_v8 = vld [vmem:[%s2537_s18 + $0x38] sm:$0xff] }
 0x4c4   : > { %v2405_v51 = vpop.eup %2404  ;;  %v1914_v29 = vadd.f32 %v1913_v40, %v1899_v13  ;;  %v1875_v49 = vmul.f32 0.6931472, %v2403_v14  ;;  %v1546_v55 = vpack.c.bf16 %v1537_v25, %v3268_v21  ;;  %v1861_v52 = vadd.f32 1e-12, %v1537_v25  ;;  %v1697_v13 = vld [vmem:[%s2537_s18 + $0x20] sm:$0xff]  ;;  %v1698_v40 = vld [vmem:[%s2537_s18 + $0x28] sm:$0xff] }
 0x4c5   : > { %v2407_v12 = vpop.eup %2406  ;;  %v1877_v39 = vmul.f32 0.6931472, %v2405_v51  ;;  %v1862_v44 = vadd.f32 1e-12, %v1538_v23  ;;  %v1712_v34 = vpack.c.bf16 %v1700_v8, %v1699_v37  ;;  %v1695_v14 = vld [vmem:[%s2537_s18 + $0x10] sm:$0xff]  ;;  %v1693_v51 = vld [vmem:[%s2537_s18] sm:$0xff] }
 0x4c6   : > { %v1901_v61 = vmul.f32 %v1875_v49, %v3232_v59  ;;  %v1915_v1 = vadd.f32 %v1914_v29, %v1900_v43  ;;  %2241 = vmatprep.mubr.bf16.mxu0 %v1546_v55  ;;  %v1539_v20 = vmul.f32 %v2407_v12, %v3186_v28  ;;  %2420 = vlog2.f32 %v1861_v52  ;;  %v1696_v43 = vld [vmem:[%s2537_s18 + $0x18] sm:$0xff]  ;;  %v1694_v29 = vld [vmem:[%s2537_s18 + $0x8] sm:$0xff] }
 0x4c7   : > { %v2409_v24 = vpop.eup %2408  ;;  %v1902_v60 = vmul.f32 %v1877_v39, %v3235_v31  ;;  %2422 = vlog2.f32 %v1862_v44  ;;  %v1709_v49 = vpack.c.bf16 %v1694_v29, %v1693_v51 }
 0x4c8   : > { %v2411_v30 = vpop.eup %2410  ;;  %v1916_v32 = vadd.f32 %v1915_v1, %v1901_v61  ;;  %v1879_v41 = vmul.f32 0.6931472, %v2409_v24  ;;  %v1547_v62 = vpack.c.bf16 %v1539_v20, %v1538_v23  ;;  %v1863_v38 = vadd.f32 1e-12, %v1539_v20 }
 0x4c9   : > { %v1881_v2 = vmul.f32 0.6931472, %v2411_v30 }
 0x4ca   : > { %v1903_v36 = vmul.f32 %v1879_v41, %v3242_v53  ;;  %v1917_v42 = vadd.f32 %v1916_v32, %v1902_v60  ;;  %2242 = vmatmul.mubr.bf16.gmra.mxu0 %v1547_v62  ;;  %2424 = vlog2.f32 %v1863_v38 }
 0x4cb   : > { %v2413_v59 = vpop.eup %2412  ;;  %v1904_v48 = vmul.f32 %v1881_v2, %v3245_v5 }
 0x4cc   : > { %v2415_v56 = vpop.eup %2414  ;;  %v1918_v6 = vadd.f32 %v1917_v42, %v1903_v36  ;;  %v1883_v28 = vmul.f32 0.6931472, %v2413_v59 }
 0x4cd   : > { %v1885_v63 = vmul.f32 0.6931472, %v2415_v56 }
 0x4ce   : > { %v1905_v31 = vmul.f32 %v1883_v28, %v3252_v54  ;;  %v1919_v7 = vadd.f32 %v1918_v6, %v1904_v48 }
 0x4cf   : > { %v2417_v9 = vpop.eup %2416  ;;  %v1906_v15 = vmul.f32 %v1885_v63, %v3255_v50 }
 0x4d0   : > { %v2419_v10 = vpop.eup %2418  ;;  %v1887_v16 = vmul.f32 0.6931472, %v2417_v9  ;;  %v1920_v45 = vadd.f32 %v1919_v7, %v1905_v31 }
 0x4d1   : > { %v1889_v53 = vmul.f32 0.6931472, %v2419_v10 }
 0x4d2   : > { %v1907_v57 = vmul.f32 %v1887_v16, %v3264_v18  ;;  %v1921_v46 = vadd.f32 %v1920_v45, %v1906_v15 }
 0x4d3   : > { %v2421_v17 = vpop.eup %2420  ;;  %v1908_v5 = vmul.f32 %v1889_v53, %v3268_v21  ;;  %v1702_v21 = vld [vmem:[%s2537_s18 + $0x48] sm:$0xff]  ;;  %v1847_v53 = vld [vmem:[#allocation6] sm:$0x1] }
 0x4d4   : > { %v2423_v58 = vpop.eup %2422  ;;  %v1891_v47 = vmul.f32 0.6931472, %v2421_v17  ;;  %v1922_v54 = vadd.f32 %v1921_v46, %v1907_v57  ;;  %v1713_v33 = vpack.c.bf16 %v1702_v21, %v1701_v35  ;;  %v1671_v17 = vld [vmem:[#allocation5 + $0x10] sm:$0xff] }
 0x4d5   : > { %v1893_v22 = vmul.f32 0.6931472, %v2423_v58 }
 0x4d6   : > { %v1909_v0 = vmul.f32 %v1891_v47, %v1537_v25  ;;  %v1923_v50 = vadd.f32 %v1922_v54, %v1908_v5  ;;  %2251 = vmatprep.subr.bf16.mxu1 %v1713_v33  ;;  %v1711_v25 = vpack.c.bf16 %v1698_v40, %v1697_v13  ;;  %v1669_v47 = vld [vmem:[#allocation5] sm:$0xff] }
 0x4d7   : > { %v2425_v26 = vpop.eup %2424  ;;  %v1910_v27 = vmul.f32 %v1893_v22, %v1538_v23  ;;  %2252 = vmatpush3.bf16.msra.mxu1 %v1713_v33  ;;  %v1710_v23 = vpack.c.bf16 %v1696_v43, %v1695_v14  ;;  %v1672_v22 = vld [vmem:[#allocation5 + $0x18] sm:$0xff] }
 0x4d8   : > { %v1895_v19 = vmul.f32 0.6931472, %v2425_v26  ;;  %v1924_v18 = vadd.f32 %v1923_v50, %v1909_v0  ;;  %2253 = vmatprep.subr.bf16.mxu1 %v1712_v34  ;;  %v1670_v26 = vld [vmem:[#allocation5 + $0x8] sm:$0xff]  ;;  %v1676_v33 = vld [vmem:[#allocation5 + $0x38] sm:$0xff] }
 0x4da   : > { %v1911_v11 = vmul.f32 %v1895_v19, %v1539_v20  ;;  %v1925_v3 = vadd.f32 %v1924_v18, %v1910_v27  ;;  %v1675_v18 = vld [vmem:[#allocation5 + $0x30] sm:$0xff] }
 0x4db   : > { %2254 = vmatpush3.bf16.msra.mxu1 %v1712_v34  ;;  %v1674_v34 = vld [vmem:[#allocation5 + $0x28] sm:$0xff] }
 0x4dc   : > { %v1926_v4 = vadd.f32 %v1925_v3, %v1911_v11  ;;  %2255 = vmatprep.subr.bf16.mxu1 %v1711_v25 }
 0x4de   : > { %1927 = vadd.xlane.f32.xlu1 %v1926_v4  ;;  %v1673_v4 = vld [vmem:[#allocation5 + $0x20] sm:$0xff] }
 0x4df   : > { %2256 = vmatpush3.bf16.msra.mxu1 %v1711_v25  ;;  %v1679_v25 = vld [vmem:[#allocation5 + $0x50] sm:$0xff] }
 0x4e0   : > { %2257 = vmatprep.subr.bf16.mxu1 %v1710_v23 }
 0x4e3   : > { %2258 = vmatpush3.bf16.msra.mxu1 %v1710_v23  ;;  %v1677_v23 = vld [vmem:[#allocation5 + $0x40] sm:$0xff] }
 0x4e4   : > { %2259 = vmatprep.subr.bf16.mxu1 %v1709_v49 }
 0x4e7   : > { %2260 = vmatpush3.bf16.msra.mxu1 %v1709_v49  ;;  %v1680_v49 = vld [vmem:[#allocation5 + $0x58] sm:$0xff] }
 0x567   : > { %v1928_v55 = vpop.xlane.xlu1 %1927 }
 0x568   : > { %v1929_v52 = vrot.slane %v1928_v55, 4 }
 0x56a   : > { %v1930_v12 = vadd.f32 %v1929_v52, %v1928_v55 }
 0x56c   : > { %v1931_v39 = vrot.slane %v1930_v12, 2 }
 0x56e   : > { %v1932_v44 = vadd.f32 %v1931_v39, %v1930_v12  ;;  %v1678_v12 = vld [vmem:[#allocation5 + $0x48] sm:$0xff] }
 0x570   : > { %v1933_v61 = vrot.slane %v1932_v44, 1 }
 0x572   : > { %v2231_v1 = vpop.f32.mrf.mxu0  ;;  %v1934_v20 = vadd.f32 %v1933_v61, %v1932_v44  ;;  %v1683_v61 = vld [vmem:[#allocation5 + $0x70] sm:$0xff] }
 0x574   : > { %v1606_v24 = vpop.f32.mrf.mxu0  ;;  %2309 = vpush %v1934_v20 }
 0x576   : > { %v2232_v60 = vpop.f32.mrf.mxu0 }
 0x577   : > { %v1686_v41 = vpack.c.bf16 %v2232_v60, %v2231_v1 }
 0x578   : > { %v1609_v30 = vpop.f32.mrf.mxu0 }
 0x579   : > { %v1685_v32 = vpack.c.bf16 %v1609_v30, %v1606_v24  ;;  %v1681_v24 = vld [vmem:[#allocation5 + $0x60] sm:$0xff] }
 0x57a   : > { %v2235_v62 = vpop.f32.mrf.mxu0 }
 0x57b   : > { %2261 = vmatprep.mubr.bf16.mxu1 %v1685_v32  ;;  %v1684_v32 = vld [vmem:[#allocation5 + $0x78] sm:$0xff] }
 0x57c   : > { %v1622_v38 = vpop.f32.mrf.mxu0  ;;  %2262 = vmatmul.mubr.bf16.vlgmr.msra.gmra.mxu1 %v1686_v41 }
 0x57e   : > { %v2236_v2 = vpop.f32.mrf.mxu0 }
 0x57f   : > { %v1688_v59 = vpack.c.bf16 %v2236_v2, %v2235_v62 }
 0x580   : > { %v1625_v36 = vpop.f32.mrf.mxu0 }
 0x581   : > { %v1687_v42 = vpack.c.bf16 %v1625_v36, %v1622_v38  ;;  %v1682_v38 = vld [vmem:[#allocation5 + $0x68] sm:$0xff] }
 0x582   : > { %v2239_v56 = vpop.f32.mrf.mxu0 }
 0x583   : > { %2265 = vmatprep.mubr.bf16.mxu1 %v1687_v42 }
 0x584   : > { %v1638_v6 = vpop.f32.mrf.mxu0  ;;  %2266 = vmatmul.mubr.bf16.gmra.mxu1 %v1688_v59 }
 0x586   : > { %v2240_v28 = vpop.f32.mrf.mxu0 }
 0x587   : > { %v1690_v31 = vpack.c.bf16 %v2240_v28, %v2239_v56 }
 0x588   : > { %v1641_v48 = vpop.f32.mrf.mxu0 }
 0x589   : > { %v1689_v63 = vpack.c.bf16 %v1641_v48, %v1638_v6 }
 0x58a   : > { %v2243_v7 = vpop.f32.mrf.mxu0 }
 0x58b   : > { %2269 = vmatprep.mubr.bf16.mxu1 %v1689_v63 }
 0x58c   : > { %v1654_v9 = vpop.f32.mrf.mxu0  ;;  %2270 = vmatmul.mubr.bf16.gmra.mxu1 %v1690_v31 }
 0x58e   : > { %v2244_v10 = vpop.f32.mrf.mxu0 }
 0x58f   : > { %v1692_v45 = vpack.c.bf16 %v2244_v10, %v2243_v7 }
 0x590   : > { %v1657_v15 = vpop.f32.mrf.mxu0 }
 0x591   : > { %v1691_v16 = vpack.c.bf16 %v1657_v15, %v1654_v9 }
 0x593   : > { %2273 = vmatprep.mubr.bf16.mxu1 %v1691_v16 }
 0x594   : > { %2274 = vmatmul.mubr.bf16.gmra.mxu1 %v1692_v45 }
 0x5a5   : > { %s2310_s18 = spop %2309 }
 0x5a6   : > { %s1936_s13 = ssub.f32 0.0, %s2310_s18 }
 0x5a8   : > { %v1937_v57 = vstv %s1936_s13 }
 0x5a9   : > { %v1938_v46 = vadd.f32 %v1937_v57, %v1847_v53 }
 0x5ab   : > { %1940 = vst.msk [vmem:[#allocation6] sm:$0x1] %vm1939_vm3, %v1938_v46 }
 0x63c   : > { %v2263_v58 = vpop.f32.mrf.mxu1 }
 0x63d   : > { %v1816_v5 = vadd.f32 %v2263_v58, %v1671_v17 }
 0x63e   : > { %v1751_v54 = vpop.f32.mrf.mxu1 }
 0x63f   : > { %1833 = vst.msk [vmem:[#allocation5 + $0x10] sm:$0xff] %vm1830_vm4, %v1816_v5  ;;  %v1814_v0 = vadd.f32 %v1751_v54, %v1669_v47 }
 0x640   : > { %v2264_v50 = vpop.f32.mrf.mxu1 }
 0x641   : > { %1831 = vst.msk [vmem:[#allocation5] sm:$0xff] %vm1830_vm4, %v1814_v0  ;;  %v1817_v19 = vadd.f32 %v2264_v50, %v1672_v22 }
 0x642   : > { %v1754_v27 = vpop.f32.mrf.mxu1 }
 0x643   : > { %1834 = vst.msk [vmem:[#allocation5 + $0x18] sm:$0xff] %vm1830_vm4, %v1817_v19  ;;  %v1815_v11 = vadd.f32 %v1754_v27, %v1670_v26 }
 0x644   : > { %v2267_v3 = vpop.f32.mrf.mxu1 }
 0x645   : > { %1832 = vst.msk [vmem:[#allocation5 + $0x8] sm:$0xff] %vm1830_vm4, %v1815_v11  ;;  %v1820_v35 = vadd.f32 %v2267_v3, %v1675_v18 }
 0x646   : > { %v1767_v21 = vpop.f32.mrf.mxu1 }
 0x647   : > { %1837 = vst.msk [vmem:[#allocation5 + $0x30] sm:$0xff] %vm1830_vm4, %v1820_v35  ;;  %v1818_v37 = vadd.f32 %v1767_v21, %v1673_v4 }
 0x648   : > { %v2268_v8 = vpop.f32.mrf.mxu1 }
 0x649   : > { %1835 = vst.msk [vmem:[#allocation5 + $0x20] sm:$0xff] %vm1830_vm4, %v1818_v37  ;;  %v1821_v13 = vadd.f32 %v2268_v8, %v1676_v33 }
 0x64a   : > { %v1770_v40 = vpop.f32.mrf.mxu1 }
 0x64b   : > { %1838 = vst.msk [vmem:[#allocation5 + $0x38] sm:$0xff] %vm1830_vm4, %v1821_v13  ;;  %v1819_v14 = vadd.f32 %v1770_v40, %v1674_v34 }
 0x64c   : > { %v2271_v43 = vpop.f32.mrf.mxu1 }
 0x64d   : > { %1836 = vst.msk [vmem:[#allocation5 + $0x28] sm:$0xff] %vm1830_vm4, %v1819_v14  ;;  %v1824_v51 = vadd.f32 %v2271_v43, %v1679_v25 }
 0x64e   : > { %v1783_v29 = vpop.f32.mrf.mxu1 }
 0x64f   : > { %1841 = vst.msk [vmem:[#allocation5 + $0x50] sm:$0xff] %vm1830_vm4, %v1824_v51  ;;  %v1822_v55 = vadd.f32 %v1783_v29, %v1677_v23 }
 0x650   : > { %v2272_v52 = vpop.f32.mrf.mxu1 }
 0x651   : > { %1839 = vst.msk [vmem:[#allocation5 + $0x40] sm:$0xff] %vm1830_vm4, %v1822_v55  ;;  %v1825_v39 = vadd.f32 %v2272_v52, %v1680_v49 }
 0x652   : > { %v1786_v44 = vpop.f32.mrf.mxu1 }
 0x653   : > { %1842 = vst.msk [vmem:[#allocation5 + $0x58] sm:$0xff] %vm1830_vm4, %v1825_v39  ;;  %v1823_v1 = vadd.f32 %v1786_v44, %v1678_v12 }
 0x654   : > { %v2275_v20 = vpop.f32.mrf.mxu1 }
 0x655   : > { %1840 = vst.msk [vmem:[#allocation5 + $0x48] sm:$0xff] %vm1830_vm4, %v1823_v1  ;;  %v1828_v60 = vadd.f32 %v2275_v20, %v1683_v61 }
 0x656   : > { %v1799_v30 = vpop.f32.mrf.mxu1 }
 0x657   : > { %1845 = vst.msk [vmem:[#allocation5 + $0x70] sm:$0xff] %vm1830_vm4, %v1828_v60  ;;  %v1826_v41 = vadd.f32 %v1799_v30, %v1681_v24 }
 0x658   : > { %v2276_v62 = vpop.f32.mrf.mxu1 }
 0x659   : > { %1843 = vst.msk [vmem:[#allocation5 + $0x60] sm:$0xff] %vm1830_vm4, %v1826_v41  ;;  %v1829_v2 = vadd.f32 %v2276_v62, %v1684_v32  ;;  %1944 = sbr.rel (%p2090_p5) target bundleno = 1642 (0x66a), region = 60 }
 0x65a   : > { %v1802_v36 = vpop.f32.mrf.mxu1 }
 0x65b   : > { %1846 = vst.msk [vmem:[#allocation5 + $0x78] sm:$0xff] %vm1830_vm4, %v1829_v2  ;;  %v1827_v42 = vadd.f32 %v1802_v36, %v1682_v38 }
 0x65d   : > { %1844 = vst.msk [vmem:[#allocation5 + $0x68] sm:$0xff] %vm1830_vm4, %v1827_v42 }
 0x65e   : > { %v1945_v59 = vld [vmem:[#allocation5] sm:$0xff]  ;;  %v2091_v56 = vld [vmem:[%s3406_s7] ss:$0 sm:$0xff]  ;;  %v1946_v6 = vld [vmem:[#allocation5 + $0x8] sm:$0xff] }
 0x65f   : > { %v1968_v28 = vadd.f32 %v2091_v56, %v1945_v59  ;;  %v1969_v48 = vadd.f32 %v2091_v56, %v1946_v6  ;;  %v1947_v63 = vld [vmem:[#allocation5 + $0x10] sm:$0xff]  ;;  %v1948_v31 = vld [vmem:[#allocation5 + $0x18] sm:$0xff]  ;;  %v1949_v7 = vld [vmem:[#allocation5 + $0x20] sm:$0xff] }
 0x660   : > { %v1970_v9 = vadd.f32 %v2091_v56, %v1947_v63  ;;  %v1971_v10 = vadd.f32 %v2091_v56, %v1948_v31  ;;  %v1972_v15 = vadd.f32 %v2091_v56, %v1949_v7  ;;  %v1950_v16 = vld [vmem:[#allocation5 + $0x28] sm:$0xff]  ;;  %v1951_v45 = vld [vmem:[#allocation5 + $0x30] sm:$0xff]  ;;  %v1952_v53 = vld [vmem:[#allocation5 + $0x38] sm:$0xff] }
 0x661   : > { %1984 = vst.msk [vmem:[%s3407_s8] sm:$0xff] %vm1830_vm4, %v1968_v28  ;;  %1985 = vst.msk [vmem:[%s3407_s8 + $0x8] sm:$0xff] %vm1830_vm4, %v1969_v48  ;;  %v1973_v57 = vadd.f32 %v2091_v56, %v1950_v16  ;;  %v1974_v46 = vadd.f32 %v2091_v56, %v1951_v45  ;;  %v1975_v17 = vadd.f32 %v2091_v56, %v1952_v53  ;;  %v1953_v58 = vld [vmem:[#allocation5 + $0x40] sm:$0xff]  ;;  %v1954_v47 = vld [vmem:[#allocation5 + $0x48] sm:$0xff] }
 0x662   : > { %v1955_v5 = vld [vmem:[#allocation5 + $0x50] sm:$0xff]  ;;  %1986 = vst.msk [vmem:[%s3407_s8 + $0x10] sm:$0xff] %vm1830_vm4, %v1970_v9  ;;  %1987 = vst.msk [vmem:[%s3407_s8 + $0x18] sm:$0xff] %vm1830_vm4, %v1971_v10  ;;  %v1976_v54 = vadd.f32 %v2091_v56, %v1953_v58  ;;  %v1977_v22 = vadd.f32 %v2091_v56, %v1954_v47  ;;  %v1956_v50 = vld [vmem:[#allocation5 + $0x58] sm:$0xff] }
 0x663   : > { %1988 = vst.msk [vmem:[%s3407_s8 + $0x20] sm:$0xff] %vm1830_vm4, %v1972_v15  ;;  %v1978_v0 = vadd.f32 %v2091_v56, %v1955_v5  ;;  %v1957_v26 = vld [vmem:[#allocation5 + $0x60] sm:$0xff]  ;;  %1989 = vst.msk [vmem:[%s3407_s8 + $0x28] sm:$0xff] %vm1830_vm4, %v1973_v57  ;;  %v1979_v27 = vadd.f32 %v2091_v56, %v1956_v50  ;;  %v1959_v3 = vld [vmem:[#allocation5 + $0x70] sm:$0xff] }
 0x664   : > { %v1958_v19 = vld [vmem:[#allocation5 + $0x68] sm:$0xff]  ;;  %1990 = vst.msk [vmem:[%s3407_s8 + $0x30] sm:$0xff] %vm1830_vm4, %v1974_v46  ;;  %1991 = vst.msk [vmem:[%s3407_s8 + $0x38] sm:$0xff] %vm1830_vm4, %v1975_v17  ;;  %v1980_v18 = vadd.f32 %v2091_v56, %v1957_v26  ;;  %v1960_v4 = vld [vmem:[#allocation5 + $0x78] sm:$0xff]  ;;  %v1982_v21 = vadd.f32 %v2091_v56, %v1959_v3 }
 0x665   : > { %v1981_v11 = vadd.f32 %v2091_v56, %v1958_v19  ;;  %v2000_v35 = vld [vmem:[#allocation6] sm:$0x1]  ;;  %1992 = vst.msk [vmem:[%s3407_s8 + $0x40] sm:$0xff] %vm1830_vm4, %v1976_v54  ;;  %1993 = vst.msk [vmem:[%s3407_s8 + $0x48] sm:$0xff] %vm1830_vm4, %v1977_v22  ;;  %v1983_v33 = vadd.f32 %v2091_v56, %v1960_v4 }
 0x666   : > { %1994 = vst.msk [vmem:[%s3407_s8 + $0x50] sm:$0xff] %vm1830_vm4, %v1978_v0  ;;  %v2001_v37 = vmul.f32 0.001953125, %v2000_v35  ;;  %1995 = vst.msk [vmem:[%s3407_s8 + $0x58] sm:$0xff] %vm1830_vm4, %v1979_v27 }
 0x667   : > { %1996 = vst.msk [vmem:[%s3407_s8 + $0x60] sm:$0xff] %vm1830_vm4, %v1980_v18  ;;  %1997 = vst.msk [vmem:[%s3407_s8 + $0x68] sm:$0xff] %vm1830_vm4, %v1981_v11 }
 0x668   : > { %1998 = vst.msk [vmem:[%s3407_s8 + $0x70] sm:$0xff] %vm1830_vm4, %v1982_v21  ;;  %1999 = vst.msk [vmem:[%s3407_s8 + $0x78] sm:$0xff] %vm1830_vm4, %v1983_v33 }
 0x669   : > { %2002 = vst.msk [vmem:[#allocation6] sm:$0x1] %vm1939_vm3, %v2001_v37 }
 0x66a PF: > { %p2315_p6 = scmp.eq.s32.totalorder %s2521_s10, 3  ;;  %s2464_s29 = smov [#allocation6]  }
 0x66b   : > { %s2013_s12 = sshll.u32 %s2464_s29, 4  ;;  %s2014_s12 = int_to_ptr.vmem [resolvable:$true] %s2013_s12 }
 0x66c   : > { %s2426_s18 = scalar_lea.vmem %s2014_s12, 16  ;;  %s2432_s13 = scalar_lea.vmem %s2014_s12, 32 }
 0x66d   : > { %p2427_p7 = scmp.ne.s32.totalorder %s2014_s12, %s2426_s18  ;;  %p2433_p10 = scmp.lt.s32.totalorder %s2014_s12, %s2014_s12 }
 0x66e   : > { %p2434_p11 = scmp.lt.s32.totalorder %s2432_s13, %s2426_s18 }
 0x66f   : > { %p2428_p8 = pnand %p2427_p7, %p2315_p6 }
 0x670   : > { %p2435_p12 = por %p2434_p11, %p2433_p10 }
 0x671   : > { %p2429_p9 = pneg %p2428_p8 }
 0x673   : > { %p2436_p13 = pnand %p2435_p12, %p2429_p9 }
 0x675   : > { %2439 = shalt.err (!%p2436_p13)
}
 0x676   : > { %2312 = dma.vmem_to_hbm [thread:$0]  (%p2315_p6), %s2014_s12, 16, %s3408_s9, [#allocation7]  }
 0x677   : > { %2455 = dma.done.wait (%p2315_p6), [#allocation7], 16  }
 0x678   : > { %2457 = vsyncadd (%p2315_p6), [#allocation7], 4294967280 }
 0x679 PF: > { %s21_s30 = sadd.s32 1, %s2460_s30  }
 0x67a   : > { %p18_p0 = scmp.ge.s32.totalorder %s21_s30, 6  }
 0x67c   :  { %20 = sbr.rel (!%p18_p0) target bundleno = 1 (0x1), region = 98 }
 0x681   :  { %2029 = vsyncpa [#allocation7], 1 }
 0x682   :  { %2031 = vsyncpa [#allocation7 + $0x1], 1 }

</bundles_post_ra>
